<compile_context>
chip_gen: v5e
topology: v5e:2x2
jax: 0.10.0
libtpu: 0.0.40
codegen_flags: <defaults>
</compile_context>

<pallas_src>
import jax
import jax.numpy as jnp
from jax import lax
from jax.experimental import pallas as pl
from jax.experimental.pallas import tpu as pltpu

# ---- static hyper-parameters (the `params` object of the PyTorch module) ----
A_NUM   = 2     # self.A_num
L       = 2     # params.fr_n_layers
D0      = 16    # params.signal_dim_0 == params.fr_inner_dim_0
N1      = 8     # params.signal_dim_1
D1      = 16    # params.fr_inner_dim_1
KOUT    = 6     # params.fr_kernel_out
STRIDE  = 2     # params.fr_upsampling
PAD_OUT = 2     # out_layer padding
OPAD    = 1     # out_layer output_padding
BN_EPS  = 1e-5
LOG_EPS = 1e-12

HOUT = (D0 - 1) * STRIDE - 2 * PAD_OUT + KOUT + OPAD      # 33
WOUT = (D1 - 1) * STRIDE - 2 * PAD_OUT + KOUT + OPAD      # 33

WP = 48           # per-sample padded output width (bt * WP lanes, lane dense)
HP = 40           # padded output height (multiple of 8)


def _mm(a, b):
    return lax.dot_general(a, b, (((1,), (0,)), ((), ())),
                           preferred_element_type=jnp.float32)


# ------------------------------- fused kernel --------------------------------
def _fused_kernel(inp_ref, bdwf_ref, wls_ref, wbd_ref, msum_ref, w3_ref,
                  ra_ref, rbn_ref, bsel_ref, bdbt_ref, acat_ref, cat_ref,
                  out_ref):
    bf16 = jnp.bfloat16
    lanes = msum_ref.shape[0]                       # bt * D1

    # ---------- frontend: input_layer + concat_pre as ONE real-embedded matmul
    in_cat = inp_ref[0].astype(bf16)                # (D0, 2*bt*N1), [real | imag]
    g_cat = _mm(in_cat, bdwf_ref[...])              # (D0, 2*lanes) f32
    g_r = g_cat[:, :lanes]
    g_i = g_cat[:, lanes:]

    # both branches share g -> stacked copy (hoisted out of the loop)
    g2_r = jnp.concatenate([g_r, g_r], axis=0)      # (2*D0, lanes)
    g2_i = jnp.concatenate([g_i, g_i], axis=0)
    msum = msum_ref[...]                            # (lanes, lanes) segmented sum

    # ---------- iterative complex layers (one real-embedded matmul per product)
    x_r, x_i = g_r, g_i
    for i in range(L):
        x_cat = jnp.concatenate([x_r, x_i], axis=0).astype(bf16)   # (2*D0, lanes)
        iq = _mm(wls_ref[i], x_cat)                                 # (4*D0, lanes)
        iq_r, iq_i = iq[:2 * D0], iq[2 * D0:]

        fac = 1.0 + jnp.log(iq_r * iq_r + iq_i * iq_i + LOG_EPS)
        ei_cat = jnp.concatenate([fac * iq_r, -(fac * iq_i)],
                                 axis=0).astype(bf16)
        x2 = _mm(wbd_ref[i], ei_cat)                                # (4*D0, lanes)
        x2_r, x2_i = x2[:2 * D0], x2[2 * D0:]

        tmp_r = g2_r * x2_r - g2_i * x2_i
        tmp_i = g2_r * x2_i + g2_i * x2_r
        tmp_cat = jnp.concatenate([tmp_r, tmp_i], axis=0).astype(bf16)
        wgt = _mm(tmp_cat, msum)                    # sum over d1, broadcast back
        wgt_r, wgt_i = wgt[:2 * D0], wgt[2 * D0:]

        # cos / -sin of atan2(wgt_i, wgt_r), rsqrt form (EUP), atan2(0,0)->(1,0)
        ssq = wgt_r * wgt_r + wgt_i * wgt_i
        inv = lax.rsqrt(ssq)
        cw_r = jnp.where(ssq == 0.0, 1.0, wgt_r * inv)
        cw_i = jnp.where(ssq == 0.0, 0.0, -wgt_i * inv)

        o_r = g2_r * cw_r - g2_i * cw_i
        o_i = g2_r * cw_i + g2_i * cw_r

        cr0 = cat_ref[i, 0]
        cr1 = cat_ref[i, 1]
        ci0 = cat_ref[i, 2]
        ci1 = cat_ref[i, 3]
        oa_r, ob_r = o_r[:D0], o_r[D0:]
        oa_i, ob_i = o_i[:D0], o_i[D0:]
        x_r = cr0 * oa_r + cr1 * ob_r - (ci0 * oa_i + ci1 * ob_i)
        x_i = cr0 * oa_i + cr1 * ob_i + ci0 * oa_r + ci1 * ob_r

    # ---------- input_layer3 (one matmul) + per-sample max normalization ------
    x_cat = jnp.concatenate([x_r, x_i], axis=0).astype(bf16)
    y = _mm(w3_ref[...], x_cat)                                     # (4*D0, lanes)
    y_r, y_i = y[:2 * D0], y[2 * D0:]
    ab = jnp.sqrt(y_r * y_r + y_i * y_i)                            # (2*D0, lanes)

    # segmented (per-sample) max: log2(D1) lane roll-and-max tree (XLU), then a
    # 0/1 selector matmul broadcasts each group-leader lane back to its group.
    # pltpu.roll follows jnp.roll semantics: roll(v, s)[j] = v[j - s].
    m = ab
    s = 1
    while s < D1:
        m = jnp.maximum(m, pltpu.roll(m, s, 1))
        s *= 2
    m = _mm(m, bsel_ref[...])                        # leader lane -> whole group
    m_row = jnp.max(m, axis=0, keepdims=True)        # (1, lanes) per-sample max
    inv_row = pl.reciprocal(jnp.maximum(m_row, 1e-30), approx=True)
    x = ab * inv_row                                 # |y| / max_sample |y|

    # ---------- mod2 residual blocks: circular 3x3 convs ----------------------
    lane_mod = lax.broadcasted_iota(jnp.int32, (2 * D0, lanes), 1) % D1
    first_l = lane_mod == 0
    last_l = lane_mod == (D1 - 1)
    sp_wrap = (lanes - (D1 - 1)) % lanes             # roll by -(D1-1)
    sm_main = (lanes - 1) % lanes                    # roll by -1

    def shift_p(v):   # per-sample circular lane shift by +1 (XLU rolls + patch)
        return jnp.where(first_l, pltpu.roll(v, sp_wrap, 1),
                         pltpu.roll(v, 1, 1))

    def shift_m(v):   # per-sample circular lane shift by -1
        return jnp.where(last_l, pltpu.roll(v, D1 - 1, 1),
                         pltpu.roll(v, sm_main, 1))

    for i in range(L):
        a1 = ra_ref[i, 0]                            # (6*D0, 2*D0)
        a2 = ra_ref[i, 1]
        s1 = rbn_ref[i, 0]                           # (2*D0, 1)
        b1 = rbn_ref[i, 1]
        s2 = rbn_ref[i, 2]
        b2 = rbn_ref[i, 3]

        y = _mm(a1, x.astype(bf16))                  # (6*D0, lanes)
        h = y[0:2 * D0] + shift_p(y[2 * D0:4 * D0]) + shift_m(y[4 * D0:6 * D0])
        h = jnp.maximum(h * s1 + b1, 0.0)
        y = _mm(a2, h.astype(bf16))
        h = y[0:2 * D0] + shift_p(y[2 * D0:4 * D0]) + shift_m(y[4 * D0:6 * D0])
        h = h * s2 + b2
        x = jnp.maximum(x + h, 0.0)

    # ---------- out_layer ConvTranspose2d as matmuls (no zero-insertion) ------
    xcat = jnp.concatenate([x[:D0], x[D0:]], axis=1).astype(bf16)   # (D0, 2*lanes)
    zs = [_mm(xcat, bdbt_ref[kh]) for kh in range(KOUT)]            # (D0, bt*WP)
    zcat = jnp.concatenate(zs, axis=0).astype(bf16)                 # (KOUT*D0, bt*WP)
    out_ref[0] = _mm(acat_ref[...], zcat)                           # (HP, bt*WP)


# ------------------------ operator pre-computation (wrapper) ------------------
def _roll_mat(s, n=D0):
    # R_s @ x == jnp.roll(x, s, axis=0)
    return jnp.roll(jnp.eye(n, dtype=jnp.float32), -s, axis=1)


def _block_diag(a, b):
    za = jnp.zeros((a.shape[0], b.shape[1]), jnp.float32)
    zb = jnp.zeros((b.shape[0], a.shape[1]), jnp.float32)
    return jnp.block([[a, za], [zb, b]])


def _cplx_left(wr, wi):
    # y = W x (complex) with [x_r; x_i] stacked on sublanes -> one real matmul.
    return jnp.block([[wr, -wi], [wi, wr]])


def _preprocess(p, bt):
    f32 = jnp.float32
    bf16 = jnp.bfloat16
    eye_bt = jnp.eye(bt, dtype=f32)
    lanes = bt * D1
    pre = {}

    # frontend: input_layer + concat_pre folded into one effective complex weight,
    # real-embedded along lanes ([in_r | in_i] is the contraction side).
    cp = p["cp_w"]
    wf_r = (cp[0] * p["w1_r"][0] + cp[1] * p["w1_r"][1]
            - (cp[2] * p["w1_i"][0] + cp[3] * p["w1_i"][1]))
    wf_i = (cp[0] * p["w1_i"][0] + cp[1] * p["w1_i"][1]
            + cp[2] * p["w1_r"][0] + cp[3] * p["w1_r"][1])
    bdwf_r = jnp.kron(eye_bt, wf_r.T)                # (bt*N1, bt*D1)
    bdwf_i = jnp.kron(eye_bt, wf_i.T)
    pre["bdwf"] = jnp.block([[bdwf_r, bdwf_i],
                             [-bdwf_i, bdwf_r]]).astype(bf16)   # (2*bt*N1, 2*lanes)

    # complex_mod1 weights: stacked branches / block-diag, real-embedded (left)
    wls, wbd = [], []
    for i in range(L):
        war, wbr = p["wm_r"][i], p["wm_r"][i + L]
        wai, wbi = p["wm_i"][i], p["wm_i"][i + L]
        wls.append(_cplx_left(jnp.concatenate([war, wbr], axis=0),
                              jnp.concatenate([wai, wbi], axis=0)))
        wbd.append(_cplx_left(_block_diag(war.T, wbr.T),
                              _block_diag(wai.T, wbi.T)))
    pre["wls"] = jnp.stack(wls).astype(bf16)          # (L, 4*D0, 2*D0)
    pre["wbd"] = jnp.stack(wbd).astype(bf16)          # (L, 4*D0, 4*D0)

    pre["msum"] = jnp.kron(eye_bt, jnp.ones((D1, D1), f32)).astype(bf16)
    pre["cat_w"] = p["concat_w"].astype(f32)

    pre["w3"] = _cplx_left(p["w3_r"].reshape(A_NUM * D0, D0),
                           p["w3_i"].reshape(A_NUM * D0, D0)).astype(bf16)

    # residual-block circular 3x3 convs -> row-circulant + channel-mix operators
    rolls = [_roll_mat(1 - kh) for kh in range(3)]

    def conv_to_ops(w):                               # w: (A, A, 3, 3)
        a_kw = []
        for kw in range(3):
            blocks = []
            for co in range(A_NUM):
                row = []
                for ci in range(A_NUM):
                    m = sum(w[co, ci, kh, kw] * rolls[kh] for kh in range(3))
                    row.append(m)
                blocks.append(jnp.concatenate(row, axis=1))
            a_kw.append(jnp.concatenate(blocks, axis=0))        # (2*D0, 2*D0)
        # order: [kw=1 -> no lane shift, kw=0 -> +1 shift, kw=2 -> -1 shift]
        return jnp.concatenate([a_kw[1], a_kw[0], a_kw[2]], axis=0)

    ra, rbn = [], []
    for i in range(L):
        ra.append(jnp.stack([conv_to_ops(p["mod2_w1"][i]),
                             conv_to_ops(p["mod2_w2"][i])]))
        rbn.append(jnp.stack([jnp.repeat(p["mod2_bn"][i, j], D0)[:, None]
                              for j in range(4)]))
    pre["ra"] = jnp.stack(ra).astype(bf16)            # (L, 2, 6*D0, 2*D0)
    pre["rbn"] = jnp.stack(rbn)                       # (L, 4, 2*D0, 1) f32

    # segmented-max broadcast: group-leader lane (last lane of each D1 group,
    # matching the jnp.roll-semantics max tree) -> all lanes of its group.
    lane_idx = jnp.arange(lanes)
    leader = (lane_idx // D1) * D1 + (D1 - 1)
    pre["bsel"] = (lane_idx[:, None] == leader[None, :]).astype(f32)

    # ConvTranspose2d as (left row-spread) @ x @ (right col-spread) matmuls,
    # both input channels merged along the contraction axis (K = 2*lanes).
    iw = jnp.arange(D1)[:, None]
    ow = jnp.arange(WOUT)[None, :]
    kw_idx = ow + PAD_OUT - STRIDE * iw
    valid = (kw_idx >= 0) & (kw_idx < KOUT)
    kw_safe = jnp.clip(kw_idx, 0, KOUT - 1)
    per_ch = []
    for ci in range(A_NUM):
        ch = []
        for kh in range(KOUT):
            row = p["wout"][ci, 0, kh]                # (KOUT,)
            bt_m = jnp.where(valid, row[kw_safe], 0.0)   # (D1, WOUT)
            bt_m = jnp.pad(bt_m, ((0, 0), (0, WP - WOUT)))
            ch.append(jnp.kron(eye_bt, bt_m))         # (lanes, bt*WP)
        per_ch.append(ch)
    pre["bdbt"] = jnp.stack(
        [jnp.concatenate([per_ch[0][kh], per_ch[1][kh]], axis=0)
         for kh in range(KOUT)]).astype(bf16)         # (KOUT, 2*lanes, bt*WP)

    oh = jnp.arange(HOUT)[:, None]
    ih = jnp.arange(D0)[None, :]
    acat = jnp.concatenate(
        [(oh + PAD_OUT - STRIDE * ih == kh).astype(f32) for kh in range(KOUT)],
        axis=1)                                       # (HOUT, KOUT*D0)
    pre["acat"] = jnp.pad(acat, ((0, HP - HOUT), (0, 0))).astype(bf16)
    return pre


# --------------------------------- wrapper -----------------------------------
def fr_module_forward(inp, p, bt=None):
    f32 = jnp.float32
    B = inp.shape[0]
    if bt is None:
        # 256-lane packing fills the v6e/v7x MXU; keep 128 lanes for small B.
        bt = 16 if B >= 16 else 8
    pad_b = (-B) % bt
    if pad_b:
        inp = jnp.concatenate(
            [inp, jnp.zeros((pad_b,) + inp.shape[1:], inp.dtype)], axis=0)
    Bp = B + pad_b
    T = Bp // bt

    pre = _preprocess(p, bt)

    # pack batch into lanes: (T, D0, 2*bt*N1); lane = c*(bt*N1) + b_local*N1 + n1
    inp_packed = (inp.astype(f32)
                  .reshape(T, bt, 2, D0, N1)
                  .transpose(0, 2, 3, 1, 4)           # (T, 2, D0, bt, N1)
                  .reshape(T, 2, D0, bt * N1)
                  .transpose(0, 2, 1, 3)              # (T, D0, 2, bt*N1)
                  .reshape(T, D0, 2 * bt * N1))

    lanes_w = bt * WP

    def full(a):
        return pl.BlockSpec(a.shape, lambda t, _nd=a.ndim: (0,) * _nd)

    smem_spec = pl.BlockSpec(memory_space=pltpu.MemorySpace.SMEM)

    out_packed = pl.pallas_call(
        _fused_kernel,
        grid=(T,),
        in_specs=[
            pl.BlockSpec((1, D0, 2 * bt * N1), lambda t: (t, 0, 0)),
            full(pre["bdwf"]), full(pre["wls"]), full(pre["wbd"]),
            full(pre["msum"]), full(pre["w3"]),
            full(pre["ra"]), full(pre["rbn"]),
            full(pre["bsel"]), full(pre["bdbt"]), full(pre["acat"]),
            smem_spec,
        ],
        out_specs=pl.BlockSpec((1, HP, lanes_w), lambda t: (t, 0, 0)),
        out_shape=jax.ShapeDtypeStruct((T, HP, lanes_w), f32),
        compiler_params=pltpu.CompilerParams(dimension_semantics=("parallel",)),
    )(inp_packed,
      pre["bdwf"], pre["wls"], pre["wbd"], pre["msum"], pre["w3"],
      pre["ra"], pre["rbn"], pre["bsel"], pre["bdbt"], pre["acat"],
      pre["cat_w"])

    out = (out_packed.reshape(T, HP, bt, WP)
           .transpose(0, 2, 1, 3)
           .reshape(Bp, HP, WP)[:B, :HOUT, :WOUT])
    return out                                        # (B, HOUT, WOUT)


# ------------------------ deterministic parameter init -----------------------
def init_params(key):
    def nrm(k, shape, scale=0.3):
        return scale * jax.random.normal(k, shape, jnp.float32)

    keys = jax.random.split(key, 16)
    p = {}
    p["w1_r"] = nrm(keys[0], (A_NUM, D1, N1))            # input_layer (real)
    p["w1_i"] = nrm(keys[1], (A_NUM, D1, N1))            # input_layer (imag)
    p["cp_w"] = nrm(keys[2], (4,))                       # concat_pre 1x1
    p["wm_r"] = nrm(keys[3], (2 * L, D0, D0))            # complex_mod1 (real)
    p["wm_i"] = nrm(keys[4], (2 * L, D0, D0))            # complex_mod1 (imag)
    p["concat_w"] = nrm(keys[5], (L, 4))                 # per-layer concat 1x1
    p["w3_r"] = nrm(keys[6], (A_NUM, D0, D0))            # input_layer3 (real)
    p["w3_i"] = nrm(keys[7], (A_NUM, D0, D0))            # input_layer3 (imag)
    p["mod2_w1"] = nrm(keys[8], (L, A_NUM, A_NUM, 3, 3))
    p["mod2_w2"] = nrm(keys[9], (L, A_NUM, A_NUM, 3, 3))

    def make_bn(k):
        k1, k2, k3, k4 = jax.random.split(k, 4)
        gamma = 1.0 + 0.1 * jax.random.normal(k1, (A_NUM,), jnp.float32)
        beta = 0.05 * jax.random.normal(k2, (A_NUM,), jnp.float32)
        mean = 0.1 * jax.random.normal(k3, (A_NUM,), jnp.float32)
        var = 1.0 + 0.1 * jax.random.uniform(k4, (A_NUM,), jnp.float32)
        scale = gamma / jnp.sqrt(var + BN_EPS)
        shift = beta - mean * scale
        return scale, shift

    bnk = jax.random.split(keys[10], 2 * L)
    rows = []
    for i in range(L):
        s1, b1 = make_bn(bnk[2 * i])
        s2, b2 = make_bn(bnk[2 * i + 1])
        rows.append(jnp.stack([s1, b1, s2, b2]))
    p["mod2_bn"] = jnp.stack(rows)                       # (L, 4, A_NUM)

    p["wout"] = nrm(keys[11], (A_NUM, 1, KOUT, KOUT))    # ConvTranspose2d weight
    return p


if __name__ == "__main__":
    key = jax.random.PRNGKey(0)
    k_inp, k_par = jax.random.split(key)
    # inp: (batch, 2, signal_dim_0, signal_dim_1); channel 0 = real, 1 = imag
    B = 8
    inp = jax.random.normal(k_inp, (B, 2, D0, N1), jnp.float32)
    params = init_params(k_par)

    fwd = jax.jit(lambda a: fr_module_forward(a, params))
    out = jax.block_until_ready(fwd(inp))
    assert out.shape == (B, HOUT, WOUT), out.shape
    print("KERNEL_OK")
</pallas_src>

<mosaic_0001>
module attributes {stable_mosaic.version = 11 : i64} {
  func.func @_fused_kernel(%arg0: i32, %arg1: memref<1x16x128xf32, #tpu.memory_space<vmem>>, %arg2: memref<128x256xbf16, #tpu.memory_space<vmem>>, %arg3: memref<2x64x32xbf16, #tpu.memory_space<vmem>>, %arg4: memref<2x64x64xbf16, #tpu.memory_space<vmem>>, %arg5: memref<128x128xbf16, #tpu.memory_space<vmem>>, %arg6: memref<64x32xbf16, #tpu.memory_space<vmem>>, %arg7: memref<2x2x96x32xbf16, #tpu.memory_space<vmem>>, %arg8: memref<2x4x32x1xf32, #tpu.memory_space<vmem>>, %arg9: memref<128x128xf32, #tpu.memory_space<vmem>>, %arg10: memref<6x256x384xbf16, #tpu.memory_space<vmem>>, %arg11: memref<40x96xbf16, #tpu.memory_space<vmem>>, %arg12: memref<2x4xf32, #tpu.memory_space<smem>>, %arg13: memref<1x40x384xf32, #tpu.memory_space<vmem>>) attributes {dimension_semantics = [#tpu.dimension_semantics<parallel>], iteration_bounds = array<i64: 1>, scalar_prefetch = 0 : i64, scratch_operands = 0 : i64, tpu.core_type = #tpu.core_type<tc>, window_params = [{transform_indices = @transform_0, window_bounds = array<i64: 1, 16, 128>}, {pipeline_mode = #tpu.pipeline_mode<synchronous>, transform_indices = @transform_1, window_bounds = array<i64: 128, 256>}, {pipeline_mode = #tpu.pipeline_mode<synchronous>, transform_indices = @transform_2, window_bounds = array<i64: 2, 64, 32>}, {pipeline_mode = #tpu.pipeline_mode<synchronous>, transform_indices = @transform_3, window_bounds = array<i64: 2, 64, 64>}, {pipeline_mode = #tpu.pipeline_mode<synchronous>, transform_indices = @transform_4, window_bounds = array<i64: 128, 128>}, {pipeline_mode = #tpu.pipeline_mode<synchronous>, transform_indices = @transform_5, window_bounds = array<i64: 64, 32>}, {pipeline_mode = #tpu.pipeline_mode<synchronous>, transform_indices = @transform_6, window_bounds = array<i64: 2, 2, 96, 32>}, {pipeline_mode = #tpu.pipeline_mode<synchronous>, transform_indices = @transform_7, window_bounds = array<i64: 2, 4, 32, 1>}, {pipeline_mode = #tpu.pipeline_mode<synchronous>, transform_indices = @transform_8, window_bounds = array<i64: 128, 128>}, {pipeline_mode = #tpu.pipeline_mode<synchronous>, transform_indices = @transform_9, window_bounds = array<i64: 6, 256, 384>}, {pipeline_mode = #tpu.pipeline_mode<synchronous>, transform_indices = @transform_10, window_bounds = array<i64: 40, 96>}, {transform_indices = @transform_11, window_bounds = array<i64: 2, 4>}, {transform_indices = @transform_12, window_bounds = array<i64: 1, 40, 384>}]} {
    %c0 = arith.constant 0 : index
    %c0_0 = arith.constant 0 : index
    %c0_1 = arith.constant 0 : index
    %0 = vector.load %arg1[%c0, %c0_0, %c0_1] : memref<1x16x128xf32, #tpu.memory_space<vmem>>, vector<1x16x128xf32>
    %1 = vector.shape_cast %0 : vector<1x16x128xf32> to vector<16x128xf32>
    %2 = arith.truncf %1 : vector<16x128xf32> to vector<16x128xbf16>
    %c0_2 = arith.constant 0 : index
    %c0_3 = arith.constant 0 : index
    %3 = vector.load %arg2[%c0_2, %c0_3] : memref<128x256xbf16, #tpu.memory_space<vmem>>, vector<128x256xbf16>
    %cst = arith.constant dense<0.000000e+00> : vector<16x256xf32>
    %4 = tpu.matmul %2, %3, %cst {dimension_numbers = #tpu.dot_dimension_numbers<[1], [0], [0], [1], [0, 0, 1, 1], [], []>} : vector<16x128xbf16>, vector<128x256xbf16>, vector<16x256xf32> -> vector<16x256xf32>
    %5 = vector.extract_strided_slice %4 {offsets = [0, 0], sizes = [16, 128], strides = [1, 1]} : vector<16x256xf32> to vector<16x128xf32>
    %6 = vector.extract_strided_slice %4 {offsets = [0, 128], sizes = [16, 128], strides = [1, 1]} : vector<16x256xf32> to vector<16x128xf32>
    %7 = tpu.concatenate %5, %5 in 0 : vector<16x128xf32>, vector<16x128xf32> -> vector<32x128xf32>
    %8 = tpu.concatenate %6, %6 in 0 : vector<16x128xf32>, vector<16x128xf32> -> vector<32x128xf32>
    %c0_4 = arith.constant 0 : index
    %c0_5 = arith.constant 0 : index
    %9 = vector.load %arg5[%c0_4, %c0_5] : memref<128x128xbf16, #tpu.memory_space<vmem>>, vector<128x128xbf16>
    %10 = tpu.concatenate %5, %6 in 0 : vector<16x128xf32>, vector<16x128xf32> -> vector<32x128xf32>
    %11 = arith.truncf %10 : vector<32x128xf32> to vector<32x128xbf16>
    %c0_6 = arith.constant 0 : index
    %c0_7 = arith.constant 0 : index
    %c0_8 = arith.constant 0 : index
    %12 = vector.load %arg3[%c0_6, %c0_7, %c0_8] : memref<2x64x32xbf16, #tpu.memory_space<vmem>>, vector<1x64x32xbf16>
    %13 = vector.shape_cast %12 : vector<1x64x32xbf16> to vector<64x32xbf16>
    %cst_9 = arith.constant dense<0.000000e+00> : vector<64x128xf32>
    %14 = tpu.matmul %13, %11, %cst_9 {dimension_numbers = #tpu.dot_dimension_numbers<[1], [0], [0], [1], [0, 0, 1, 1], [], []>} : vector<64x32xbf16>, vector<32x128xbf16>, vector<64x128xf32> -> vector<64x128xf32>
    %15 = vector.extract_strided_slice %14 {offsets = [0, 0], sizes = [32, 128], strides = [1, 1]} : vector<64x128xf32> to vector<32x128xf32>
    %16 = vector.extract_strided_slice %14 {offsets = [32, 0], sizes = [32, 128], strides = [1, 1]} : vector<64x128xf32> to vector<32x128xf32>
    %17 = arith.mulf %15, %15 : vector<32x128xf32>
    %18 = arith.mulf %16, %16 : vector<32x128xf32>
    %19 = arith.addf %17, %18 : vector<32x128xf32>
    %cst_10 = arith.constant 9.99999996E-13 : f32
    %20 = vector.broadcast %cst_10 : f32 to vector<32x128xf32>
    %21 = arith.addf %19, %20 : vector<32x128xf32>
    %22 = math.log %21 : vector<32x128xf32>
    %cst_11 = arith.constant 1.000000e+00 : f32
    %23 = vector.broadcast %cst_11 : f32 to vector<32x128xf32>
    %24 = arith.addf %23, %22 : vector<32x128xf32>
    %25 = arith.mulf %24, %15 : vector<32x128xf32>
    %26 = arith.mulf %24, %16 : vector<32x128xf32>
    %cst_12 = arith.constant 0.000000e+00 : f32
    %27 = vector.broadcast %cst_12 : f32 to vector<32x128xf32>
    %28 = arith.subf %27, %26 : vector<32x128xf32>
    %29 = tpu.concatenate %25, %28 in 0 : vector<32x128xf32>, vector<32x128xf32> -> vector<64x128xf32>
    %30 = arith.truncf %29 : vector<64x128xf32> to vector<64x128xbf16>
    %c0_13 = arith.constant 0 : index
    %c0_14 = arith.constant 0 : index
    %c0_15 = arith.constant 0 : index
    %31 = vector.load %arg4[%c0_13, %c0_14, %c0_15] : memref<2x64x64xbf16, #tpu.memory_space<vmem>>, vector<1x64x64xbf16>
    %32 = vector.shape_cast %31 : vector<1x64x64xbf16> to vector<64x64xbf16>
    %cst_16 = arith.constant dense<0.000000e+00> : vector<64x128xf32>
    %33 = tpu.matmul %32, %30, %cst_16 {dimension_numbers = #tpu.dot_dimension_numbers<[1], [0], [0], [1], [0, 0, 1, 1], [], []>} : vector<64x64xbf16>, vector<64x128xbf16>, vector<64x128xf32> -> vector<64x128xf32>
    %34 = vector.extract_strided_slice %33 {offsets = [0, 0], sizes = [32, 128], strides = [1, 1]} : vector<64x128xf32> to vector<32x128xf32>
    %35 = vector.extract_strided_slice %33 {offsets = [32, 0], sizes = [32, 128], strides = [1, 1]} : vector<64x128xf32> to vector<32x128xf32>
    %36 = arith.mulf %7, %34 : vector<32x128xf32>
    %37 = arith.mulf %8, %35 : vector<32x128xf32>
    %38 = arith.subf %36, %37 : vector<32x128xf32>
    %39 = arith.mulf %7, %35 : vector<32x128xf32>
    %40 = arith.mulf %8, %34 : vector<32x128xf32>
    %41 = arith.addf %39, %40 : vector<32x128xf32>
    %42 = tpu.concatenate %38, %41 in 0 : vector<32x128xf32>, vector<32x128xf32> -> vector<64x128xf32>
    %43 = arith.truncf %42 : vector<64x128xf32> to vector<64x128xbf16>
    %cst_17 = arith.constant dense<0.000000e+00> : vector<64x128xf32>
    %44 = tpu.matmul %43, %9, %cst_17 {dimension_numbers = #tpu.dot_dimension_numbers<[1], [0], [0], [1], [0, 0, 1, 1], [], []>} : vector<64x128xbf16>, vector<128x128xbf16>, vector<64x128xf32> -> vector<64x128xf32>
    %45 = vector.extract_strided_slice %44 {offsets = [0, 0], sizes = [32, 128], strides = [1, 1]} : vector<64x128xf32> to vector<32x128xf32>
    %46 = vector.extract_strided_slice %44 {offsets = [32, 0], sizes = [32, 128], strides = [1, 1]} : vector<64x128xf32> to vector<32x128xf32>
    %47 = arith.mulf %45, %45 : vector<32x128xf32>
    %48 = arith.mulf %46, %46 : vector<32x128xf32>
    %49 = arith.addf %47, %48 : vector<32x128xf32>
    %50 = math.rsqrt %49 : vector<32x128xf32>
    %cst_18 = arith.constant 0.000000e+00 : f32
    %51 = vector.broadcast %cst_18 : f32 to vector<32x128xf32>
    %52 = arith.cmpf oeq, %49, %51 : vector<32x128xf32>
    %53 = arith.mulf %45, %50 : vector<32x128xf32>
    %cst_19 = arith.constant 1.000000e+00 : f32
    %54 = vector.broadcast %cst_19 : f32 to vector<32x128xf32>
    %55 = arith.select %52, %54, %53 : vector<32x128xi1>, vector<32x128xf32>
    %cst_20 = arith.constant 0.000000e+00 : f32
    %56 = vector.broadcast %cst_20 : f32 to vector<32x128xf32>
    %57 = arith.cmpf oeq, %49, %56 : vector<32x128xf32>
    %cst_21 = arith.constant 0.000000e+00 : f32
    %58 = vector.broadcast %cst_21 : f32 to vector<32x128xf32>
    %59 = arith.subf %58, %46 : vector<32x128xf32>
    %60 = arith.mulf %59, %50 : vector<32x128xf32>
    %cst_22 = arith.constant 0.000000e+00 : f32
    %61 = vector.broadcast %cst_22 : f32 to vector<32x128xf32>
    %62 = arith.select %57, %61, %60 : vector<32x128xi1>, vector<32x128xf32>
    %63 = arith.mulf %7, %55 : vector<32x128xf32>
    %64 = arith.mulf %8, %62 : vector<32x128xf32>
    %65 = arith.subf %63, %64 : vector<32x128xf32>
    %66 = arith.mulf %7, %62 : vector<32x128xf32>
    %67 = arith.mulf %8, %55 : vector<32x128xf32>
    %68 = arith.addf %66, %67 : vector<32x128xf32>
    %c0_23 = arith.constant 0 : index
    %c0_24 = arith.constant 0 : index
    %69 = memref.load %arg12[%c0_23, %c0_24] : memref<2x4xf32, #tpu.memory_space<smem>>
    %c0_25 = arith.constant 0 : index
    %c1 = arith.constant 1 : index
    %70 = memref.load %arg12[%c0_25, %c1] : memref<2x4xf32, #tpu.memory_space<smem>>
    %c0_26 = arith.constant 0 : index
    %c2 = arith.constant 2 : index
    %71 = memref.load %arg12[%c0_26, %c2] : memref<2x4xf32, #tpu.memory_space<smem>>
    %c0_27 = arith.constant 0 : index
    %c3 = arith.constant 3 : index
    %72 = memref.load %arg12[%c0_27, %c3] : memref<2x4xf32, #tpu.memory_space<smem>>
    %73 = vector.extract_strided_slice %65 {offsets = [0, 0], sizes = [16, 128], strides = [1, 1]} : vector<32x128xf32> to vector<16x128xf32>
    %74 = vector.extract_strided_slice %65 {offsets = [16, 0], sizes = [16, 128], strides = [1, 1]} : vector<32x128xf32> to vector<16x128xf32>
    %75 = vector.extract_strided_slice %68 {offsets = [0, 0], sizes = [16, 128], strides = [1, 1]} : vector<32x128xf32> to vector<16x128xf32>
    %76 = vector.extract_strided_slice %68 {offsets = [16, 0], sizes = [16, 128], strides = [1, 1]} : vector<32x128xf32> to vector<16x128xf32>
    %77 = vector.broadcast %69 : f32 to vector<16x128xf32>
    %78 = arith.mulf %77, %73 : vector<16x128xf32>
    %79 = vector.broadcast %70 : f32 to vector<16x128xf32>
    %80 = arith.mulf %79, %74 : vector<16x128xf32>
    %81 = arith.addf %78, %80 : vector<16x128xf32>
    %82 = vector.broadcast %71 : f32 to vector<16x128xf32>
    %83 = arith.mulf %82, %75 : vector<16x128xf32>
    %84 = vector.broadcast %72 : f32 to vector<16x128xf32>
    %85 = arith.mulf %84, %76 : vector<16x128xf32>
    %86 = arith.addf %83, %85 : vector<16x128xf32>
    %87 = arith.subf %81, %86 : vector<16x128xf32>
    %88 = vector.broadcast %69 : f32 to vector<16x128xf32>
    %89 = arith.mulf %88, %75 : vector<16x128xf32>
    %90 = vector.broadcast %70 : f32 to vector<16x128xf32>
    %91 = arith.mulf %90, %76 : vector<16x128xf32>
    %92 = arith.addf %89, %91 : vector<16x128xf32>
    %93 = vector.broadcast %71 : f32 to vector<16x128xf32>
    %94 = arith.mulf %93, %73 : vector<16x128xf32>
    %95 = arith.addf %92, %94 : vector<16x128xf32>
    %96 = vector.broadcast %72 : f32 to vector<16x128xf32>
    %97 = arith.mulf %96, %74 : vector<16x128xf32>
    %98 = arith.addf %95, %97 : vector<16x128xf32>
    %99 = tpu.concatenate %87, %98 in 0 : vector<16x128xf32>, vector<16x128xf32> -> vector<32x128xf32>
    %100 = arith.truncf %99 : vector<32x128xf32> to vector<32x128xbf16>
    %c1_28 = arith.constant 1 : index
    %c0_29 = arith.constant 0 : index
    %c0_30 = arith.constant 0 : index
    %101 = vector.load %arg3[%c1_28, %c0_29, %c0_30] : memref<2x64x32xbf16, #tpu.memory_space<vmem>>, vector<1x64x32xbf16>
    %102 = vector.shape_cast %101 : vector<1x64x32xbf16> to vector<64x32xbf16>
    %cst_31 = arith.constant dense<0.000000e+00> : vector<64x128xf32>
    %103 = tpu.matmul %102, %100, %cst_31 {dimension_numbers = #tpu.dot_dimension_numbers<[1], [0], [0], [1], [0, 0, 1, 1], [], []>} : vector<64x32xbf16>, vector<32x128xbf16>, vector<64x128xf32> -> vector<64x128xf32>
    %104 = vector.extract_strided_slice %103 {offsets = [0, 0], sizes = [32, 128], strides = [1, 1]} : vector<64x128xf32> to vector<32x128xf32>
    %105 = vector.extract_strided_slice %103 {offsets = [32, 0], sizes = [32, 128], strides = [1, 1]} : vector<64x128xf32> to vector<32x128xf32>
    %106 = arith.mulf %104, %104 : vector<32x128xf32>
    %107 = arith.mulf %105, %105 : vector<32x128xf32>
    %108 = arith.addf %106, %107 : vector<32x128xf32>
    %cst_32 = arith.constant 9.99999996E-13 : f32
    %109 = vector.broadcast %cst_32 : f32 to vector<32x128xf32>
    %110 = arith.addf %108, %109 : vector<32x128xf32>
    %111 = math.log %110 : vector<32x128xf32>
    %cst_33 = arith.constant 1.000000e+00 : f32
    %112 = vector.broadcast %cst_33 : f32 to vector<32x128xf32>
    %113 = arith.addf %112, %111 : vector<32x128xf32>
    %114 = arith.mulf %113, %104 : vector<32x128xf32>
    %115 = arith.mulf %113, %105 : vector<32x128xf32>
    %cst_34 = arith.constant 0.000000e+00 : f32
    %116 = vector.broadcast %cst_34 : f32 to vector<32x128xf32>
    %117 = arith.subf %116, %115 : vector<32x128xf32>
    %118 = tpu.concatenate %114, %117 in 0 : vector<32x128xf32>, vector<32x128xf32> -> vector<64x128xf32>
    %119 = arith.truncf %118 : vector<64x128xf32> to vector<64x128xbf16>
    %c1_35 = arith.constant 1 : index
    %c0_36 = arith.constant 0 : index
    %c0_37 = arith.constant 0 : index
    %120 = vector.load %arg4[%c1_35, %c0_36, %c0_37] : memref<2x64x64xbf16, #tpu.memory_space<vmem>>, vector<1x64x64xbf16>
    %121 = vector.shape_cast %120 : vector<1x64x64xbf16> to vector<64x64xbf16>
    %cst_38 = arith.constant dense<0.000000e+00> : vector<64x128xf32>
    %122 = tpu.matmul %121, %119, %cst_38 {dimension_numbers = #tpu.dot_dimension_numbers<[1], [0], [0], [1], [0, 0, 1, 1], [], []>} : vector<64x64xbf16>, vector<64x128xbf16>, vector<64x128xf32> -> vector<64x128xf32>
    %123 = vector.extract_strided_slice %122 {offsets = [0, 0], sizes = [32, 128], strides = [1, 1]} : vector<64x128xf32> to vector<32x128xf32>
    %124 = vector.extract_strided_slice %122 {offsets = [32, 0], sizes = [32, 128], strides = [1, 1]} : vector<64x128xf32> to vector<32x128xf32>
    %125 = arith.mulf %7, %123 : vector<32x128xf32>
    %126 = arith.mulf %8, %124 : vector<32x128xf32>
    %127 = arith.subf %125, %126 : vector<32x128xf32>
    %128 = arith.mulf %7, %124 : vector<32x128xf32>
    %129 = arith.mulf %8, %123 : vector<32x128xf32>
    %130 = arith.addf %128, %129 : vector<32x128xf32>
    %131 = tpu.concatenate %127, %130 in 0 : vector<32x128xf32>, vector<32x128xf32> -> vector<64x128xf32>
    %132 = arith.truncf %131 : vector<64x128xf32> to vector<64x128xbf16>
    %cst_39 = arith.constant dense<0.000000e+00> : vector<64x128xf32>
    %133 = tpu.matmul %132, %9, %cst_39 {dimension_numbers = #tpu.dot_dimension_numbers<[1], [0], [0], [1], [0, 0, 1, 1], [], []>} : vector<64x128xbf16>, vector<128x128xbf16>, vector<64x128xf32> -> vector<64x128xf32>
    %134 = vector.extract_strided_slice %133 {offsets = [0, 0], sizes = [32, 128], strides = [1, 1]} : vector<64x128xf32> to vector<32x128xf32>
    %135 = vector.extract_strided_slice %133 {offsets = [32, 0], sizes = [32, 128], strides = [1, 1]} : vector<64x128xf32> to vector<32x128xf32>
    %136 = arith.mulf %134, %134 : vector<32x128xf32>
    %137 = arith.mulf %135, %135 : vector<32x128xf32>
    %138 = arith.addf %136, %137 : vector<32x128xf32>
    %139 = math.rsqrt %138 : vector<32x128xf32>
    %cst_40 = arith.constant 0.000000e+00 : f32
    %140 = vector.broadcast %cst_40 : f32 to vector<32x128xf32>
    %141 = arith.cmpf oeq, %138, %140 : vector<32x128xf32>
    %142 = arith.mulf %134, %139 : vector<32x128xf32>
    %cst_41 = arith.constant 1.000000e+00 : f32
    %143 = vector.broadcast %cst_41 : f32 to vector<32x128xf32>
    %144 = arith.select %141, %143, %142 : vector<32x128xi1>, vector<32x128xf32>
    %cst_42 = arith.constant 0.000000e+00 : f32
    %145 = vector.broadcast %cst_42 : f32 to vector<32x128xf32>
    %146 = arith.cmpf oeq, %138, %145 : vector<32x128xf32>
    %cst_43 = arith.constant 0.000000e+00 : f32
    %147 = vector.broadcast %cst_43 : f32 to vector<32x128xf32>
    %148 = arith.subf %147, %135 : vector<32x128xf32>
    %149 = arith.mulf %148, %139 : vector<32x128xf32>
    %cst_44 = arith.constant 0.000000e+00 : f32
    %150 = vector.broadcast %cst_44 : f32 to vector<32x128xf32>
    %151 = arith.select %146, %150, %149 : vector<32x128xi1>, vector<32x128xf32>
    %152 = arith.mulf %7, %144 : vector<32x128xf32>
    %153 = arith.mulf %8, %151 : vector<32x128xf32>
    %154 = arith.subf %152, %153 : vector<32x128xf32>
    %155 = arith.mulf %7, %151 : vector<32x128xf32>
    %156 = arith.mulf %8, %144 : vector<32x128xf32>
    %157 = arith.addf %155, %156 : vector<32x128xf32>
    %c1_45 = arith.constant 1 : index
    %c0_46 = arith.constant 0 : index
    %158 = memref.load %arg12[%c1_45, %c0_46] : memref<2x4xf32, #tpu.memory_space<smem>>
    %c1_47 = arith.constant 1 : index
    %c1_48 = arith.constant 1 : index
    %159 = memref.load %arg12[%c1_47, %c1_48] : memref<2x4xf32, #tpu.memory_space<smem>>
    %c1_49 = arith.constant 1 : index
    %c2_50 = arith.constant 2 : index
    %160 = memref.load %arg12[%c1_49, %c2_50] : memref<2x4xf32, #tpu.memory_space<smem>>
    %c1_51 = arith.constant 1 : index
    %c3_52 = arith.constant 3 : index
    %161 = memref.load %arg12[%c1_51, %c3_52] : memref<2x4xf32, #tpu.memory_space<smem>>
    %162 = vector.extract_strided_slice %154 {offsets = [0, 0], sizes = [16, 128], strides = [1, 1]} : vector<32x128xf32> to vector<16x128xf32>
    %163 = vector.extract_strided_slice %154 {offsets = [16, 0], sizes = [16, 128], strides = [1, 1]} : vector<32x128xf32> to vector<16x128xf32>
    %164 = vector.extract_strided_slice %157 {offsets = [0, 0], sizes = [16, 128], strides = [1, 1]} : vector<32x128xf32> to vector<16x128xf32>
    %165 = vector.extract_strided_slice %157 {offsets = [16, 0], sizes = [16, 128], strides = [1, 1]} : vector<32x128xf32> to vector<16x128xf32>
    %166 = vector.broadcast %158 : f32 to vector<16x128xf32>
    %167 = arith.mulf %166, %162 : vector<16x128xf32>
    %168 = vector.broadcast %159 : f32 to vector<16x128xf32>
    %169 = arith.mulf %168, %163 : vector<16x128xf32>
    %170 = arith.addf %167, %169 : vector<16x128xf32>
    %171 = vector.broadcast %160 : f32 to vector<16x128xf32>
    %172 = arith.mulf %171, %164 : vector<16x128xf32>
    %173 = vector.broadcast %161 : f32 to vector<16x128xf32>
    %174 = arith.mulf %173, %165 : vector<16x128xf32>
    %175 = arith.addf %172, %174 : vector<16x128xf32>
    %176 = arith.subf %170, %175 : vector<16x128xf32>
    %177 = vector.broadcast %158 : f32 to vector<16x128xf32>
    %178 = arith.mulf %177, %164 : vector<16x128xf32>
    %179 = vector.broadcast %159 : f32 to vector<16x128xf32>
    %180 = arith.mulf %179, %165 : vector<16x128xf32>
    %181 = arith.addf %178, %180 : vector<16x128xf32>
    %182 = vector.broadcast %160 : f32 to vector<16x128xf32>
    %183 = arith.mulf %182, %162 : vector<16x128xf32>
    %184 = arith.addf %181, %183 : vector<16x128xf32>
    %185 = vector.broadcast %161 : f32 to vector<16x128xf32>
    %186 = arith.mulf %185, %163 : vector<16x128xf32>
    %187 = arith.addf %184, %186 : vector<16x128xf32>
    %188 = tpu.concatenate %176, %187 in 0 : vector<16x128xf32>, vector<16x128xf32> -> vector<32x128xf32>
    %189 = arith.truncf %188 : vector<32x128xf32> to vector<32x128xbf16>
    %c0_53 = arith.constant 0 : index
    %c0_54 = arith.constant 0 : index
    %190 = vector.load %arg6[%c0_53, %c0_54] : memref<64x32xbf16, #tpu.memory_space<vmem>>, vector<64x32xbf16>
    %cst_55 = arith.constant dense<0.000000e+00> : vector<64x128xf32>
    %191 = tpu.matmul %190, %189, %cst_55 {dimension_numbers = #tpu.dot_dimension_numbers<[1], [0], [0], [1], [0, 0, 1, 1], [], []>} : vector<64x32xbf16>, vector<32x128xbf16>, vector<64x128xf32> -> vector<64x128xf32>
    %192 = vector.extract_strided_slice %191 {offsets = [0, 0], sizes = [32, 128], strides = [1, 1]} : vector<64x128xf32> to vector<32x128xf32>
    %193 = vector.extract_strided_slice %191 {offsets = [32, 0], sizes = [32, 128], strides = [1, 1]} : vector<64x128xf32> to vector<32x128xf32>
    %194 = arith.mulf %192, %192 : vector<32x128xf32>
    %195 = arith.mulf %193, %193 : vector<32x128xf32>
    %196 = arith.addf %194, %195 : vector<32x128xf32>
    %197 = math.sqrt %196 : vector<32x128xf32>
    %c1_i32 = arith.constant 1 : i32
    %198 = tpu.dynamic_rotate %197 by %c1_i32 dim 1 : vector<32x128xf32>, i32 -> vector<32x128xf32>
    %199 = arith.maximumf %197, %198 : vector<32x128xf32>
    %c2_i32 = arith.constant 2 : i32
    %200 = tpu.dynamic_rotate %199 by %c2_i32 dim 1 : vector<32x128xf32>, i32 -> vector<32x128xf32>
    %201 = arith.maximumf %199, %200 : vector<32x128xf32>
    %c4_i32 = arith.constant 4 : i32
    %202 = tpu.dynamic_rotate %201 by %c4_i32 dim 1 : vector<32x128xf32>, i32 -> vector<32x128xf32>
    %203 = arith.maximumf %201, %202 : vector<32x128xf32>
    %c8_i32 = arith.constant 8 : i32
    %204 = tpu.dynamic_rotate %203 by %c8_i32 dim 1 : vector<32x128xf32>, i32 -> vector<32x128xf32>
    %205 = arith.maximumf %203, %204 : vector<32x128xf32>
    %c0_56 = arith.constant 0 : index
    %c0_57 = arith.constant 0 : index
    %206 = vector.load %arg9[%c0_56, %c0_57] : memref<128x128xf32, #tpu.memory_space<vmem>>, vector<128x128xf32>
    %cst_58 = arith.constant dense<0.000000e+00> : vector<32x128xf32>
    %207 = tpu.matmul %205, %206, %cst_58 {dimension_numbers = #tpu.dot_dimension_numbers<[1], [0], [0], [1], [0, 0, 1, 1], [], []>} : vector<32x128xf32>, vector<128x128xf32>, vector<32x128xf32> -> vector<32x128xf32>
    %cst_59 = arith.constant dense<0xFF800000> : vector<128xf32>
    %208 = vector.multi_reduction <maximumf>, %207, %cst_59 [0] : vector<32x128xf32> to vector<128xf32>
    %209 = vector.shape_cast %208 : vector<128xf32> to vector<1x128xf32>
    %cst_60 = arith.constant 1.000000e-30 : f32
    %210 = vector.broadcast %cst_60 : f32 to vector<1x128xf32>
    %211 = arith.maximumf %209, %210 : vector<1x128xf32>
    %212 = tpu.reciprocal %211 {approx = true} : vector<1x128xf32> -> vector<1x128xf32>
    %213 = vector.broadcast %212 : vector<1x128xf32> to vector<32x128xf32>
    %214 = arith.mulf %197, %213 : vector<32x128xf32>
    %215 = tpu.iota {dimensions = array<i32: 1>} : vector<32x128xi32>
    %c16_i32 = arith.constant 16 : i32
    %c0_i32 = arith.constant 0 : i32
    %216 = arith.cmpi eq, %c16_i32, %c0_i32 : i32
    %c1_i32_61 = arith.constant 1 : i32
    %217 = arith.select %216, %c1_i32_61, %c16_i32 : i32
    %218 = vector.broadcast %217 : i32 to vector<32x128xi32>
    %219 = arith.remsi %215, %218 : vector<32x128xi32>
    %c0_i32_62 = arith.constant 0 : i32
    %220 = vector.broadcast %c0_i32_62 : i32 to vector<32x128xi32>
    %221 = arith.cmpi ne, %219, %220 : vector<32x128xi32>
    %c0_i32_63 = arith.constant 0 : i32
    %222 = vector.broadcast %c0_i32_63 : i32 to vector<32x128xi32>
    %223 = arith.cmpi slt, %219, %222 : vector<32x128xi32>
    %c0_i32_64 = arith.constant 0 : i32
    %224 = arith.cmpi slt, %217, %c0_i32_64 : i32
    %225 = vector.broadcast %224 : i1 to vector<32x128xi1>
    %226 = vector.broadcast %225 : vector<32x128xi1> to vector<32x128xi1>
    %227 = arith.xori %223, %226 : vector<32x128xi1>
    %228 = arith.andi %227, %221 : vector<32x128xi1>
    %229 = vector.broadcast %217 : i32 to vector<32x128xi32>
    %230 = arith.addi %219, %229 : vector<32x128xi32>
    %231 = arith.select %228, %230, %219 : vector<32x128xi1>, vector<32x128xi32>
    %c0_i32_65 = arith.constant 0 : i32
    %232 = vector.broadcast %c0_i32_65 : i32 to vector<32x128xi32>
    %233 = arith.cmpi eq, %231, %232 : vector<32x128xi32>
    %c15_i32 = arith.constant 15 : i32
    %234 = vector.broadcast %c15_i32 : i32 to vector<32x128xi32>
    %235 = arith.cmpi eq, %231, %234 : vector<32x128xi32>
    %c0_66 = arith.constant 0 : index
    %c0_67 = arith.constant 0 : index
    %c0_68 = arith.constant 0 : index
    %c0_69 = arith.constant 0 : index
    %236 = vector.load %arg7[%c0_66, %c0_67, %c0_68, %c0_69] : memref<2x2x96x32xbf16, #tpu.memory_space<vmem>>, vector<1x1x96x32xbf16>
    %237 = vector.shape_cast %236 : vector<1x1x96x32xbf16> to vector<96x32xbf16>
    %c0_70 = arith.constant 0 : index
    %c1_71 = arith.constant 1 : index
    %c0_72 = arith.constant 0 : index
    %c0_73 = arith.constant 0 : index
    %238 = vector.load %arg7[%c0_70, %c1_71, %c0_72, %c0_73] : memref<2x2x96x32xbf16, #tpu.memory_space<vmem>>, vector<1x1x96x32xbf16>
    %239 = vector.shape_cast %238 : vector<1x1x96x32xbf16> to vector<96x32xbf16>
    %c0_74 = arith.constant 0 : index
    %c0_75 = arith.constant 0 : index
    %c0_76 = arith.constant 0 : index
    %c0_77 = arith.constant 0 : index
    %240 = vector.load %arg8[%c0_74, %c0_75, %c0_76, %c0_77] : memref<2x4x32x1xf32, #tpu.memory_space<vmem>>, vector<1x1x32x1xf32>
    %241 = vector.shape_cast %240 : vector<1x1x32x1xf32> to vector<32x1xf32>
    %c0_78 = arith.constant 0 : index
    %c1_79 = arith.constant 1 : index
    %c0_80 = arith.constant 0 : index
    %c0_81 = arith.constant 0 : index
    %242 = vector.load %arg8[%c0_78, %c1_79, %c0_80, %c0_81] : memref<2x4x32x1xf32, #tpu.memory_space<vmem>>, vector<1x1x32x1xf32>
    %243 = vector.shape_cast %242 : vector<1x1x32x1xf32> to vector<32x1xf32>
    %c0_82 = arith.constant 0 : index
    %c2_83 = arith.constant 2 : index
    %c0_84 = arith.constant 0 : index
    %c0_85 = arith.constant 0 : index
    %244 = vector.load %arg8[%c0_82, %c2_83, %c0_84, %c0_85] : memref<2x4x32x1xf32, #tpu.memory_space<vmem>>, vector<1x1x32x1xf32>
    %245 = vector.shape_cast %244 : vector<1x1x32x1xf32> to vector<32x1xf32>
    %c0_86 = arith.constant 0 : index
    %c3_87 = arith.constant 3 : index
    %c0_88 = arith.constant 0 : index
    %c0_89 = arith.constant 0 : index
    %246 = vector.load %arg8[%c0_86, %c3_87, %c0_88, %c0_89] : memref<2x4x32x1xf32, #tpu.memory_space<vmem>>, vector<1x1x32x1xf32>
    %247 = vector.shape_cast %246 : vector<1x1x32x1xf32> to vector<32x1xf32>
    %248 = arith.truncf %214 : vector<32x128xf32> to vector<32x128xbf16>
    %cst_90 = arith.constant dense<0.000000e+00> : vector<96x128xf32>
    %249 = tpu.matmul %237, %248, %cst_90 {dimension_numbers = #tpu.dot_dimension_numbers<[1], [0], [0], [1], [0, 0, 1, 1], [], []>} : vector<96x32xbf16>, vector<32x128xbf16>, vector<96x128xf32> -> vector<96x128xf32>
    %250 = vector.extract_strided_slice %249 {offsets = [0, 0], sizes = [32, 128], strides = [1, 1]} : vector<96x128xf32> to vector<32x128xf32>
    %251 = vector.extract_strided_slice %249 {offsets = [32, 0], sizes = [32, 128], strides = [1, 1]} : vector<96x128xf32> to vector<32x128xf32>
    %c113_i32 = arith.constant 113 : i32
    %252 = tpu.dynamic_rotate %251 by %c113_i32 dim 1 : vector<32x128xf32>, i32 -> vector<32x128xf32>
    %c1_i32_91 = arith.constant 1 : i32
    %253 = tpu.dynamic_rotate %251 by %c1_i32_91 dim 1 : vector<32x128xf32>, i32 -> vector<32x128xf32>
    %254 = arith.select %233, %252, %253 : vector<32x128xi1>, vector<32x128xf32>
    %255 = arith.addf %250, %254 : vector<32x128xf32>
    %256 = vector.extract_strided_slice %249 {offsets = [64, 0], sizes = [32, 128], strides = [1, 1]} : vector<96x128xf32> to vector<32x128xf32>
    %c15_i32_92 = arith.constant 15 : i32
    %257 = tpu.dynamic_rotate %256 by %c15_i32_92 dim 1 : vector<32x128xf32>, i32 -> vector<32x128xf32>
    %c127_i32 = arith.constant 127 : i32
    %258 = tpu.dynamic_rotate %256 by %c127_i32 dim 1 : vector<32x128xf32>, i32 -> vector<32x128xf32>
    %259 = arith.select %235, %257, %258 : vector<32x128xi1>, vector<32x128xf32>
    %260 = arith.addf %255, %259 : vector<32x128xf32>
    %261 = vector.broadcast %241 : vector<32x1xf32> to vector<32x128xf32>
    %262 = arith.mulf %260, %261 : vector<32x128xf32>
    %263 = vector.broadcast %243 : vector<32x1xf32> to vector<32x128xf32>
    %264 = arith.addf %262, %263 : vector<32x128xf32>
    %cst_93 = arith.constant 0.000000e+00 : f32
    %265 = vector.broadcast %cst_93 : f32 to vector<32x128xf32>
    %266 = arith.maximumf %264, %265 : vector<32x128xf32>
    %267 = arith.truncf %266 : vector<32x128xf32> to vector<32x128xbf16>
    %cst_94 = arith.constant dense<0.000000e+00> : vector<96x128xf32>
    %268 = tpu.matmul %239, %267, %cst_94 {dimension_numbers = #tpu.dot_dimension_numbers<[1], [0], [0], [1], [0, 0, 1, 1], [], []>} : vector<96x32xbf16>, vector<32x128xbf16>, vector<96x128xf32> -> vector<96x128xf32>
    %269 = vector.extract_strided_slice %268 {offsets = [0, 0], sizes = [32, 128], strides = [1, 1]} : vector<96x128xf32> to vector<32x128xf32>
    %270 = vector.extract_strided_slice %268 {offsets = [32, 0], sizes = [32, 128], strides = [1, 1]} : vector<96x128xf32> to vector<32x128xf32>
    %c113_i32_95 = arith.constant 113 : i32
    %271 = tpu.dynamic_rotate %270 by %c113_i32_95 dim 1 : vector<32x128xf32>, i32 -> vector<32x128xf32>
    %c1_i32_96 = arith.constant 1 : i32
    %272 = tpu.dynamic_rotate %270 by %c1_i32_96 dim 1 : vector<32x128xf32>, i32 -> vector<32x128xf32>
    %273 = arith.select %233, %271, %272 : vector<32x128xi1>, vector<32x128xf32>
    %274 = arith.addf %269, %273 : vector<32x128xf32>
    %275 = vector.extract_strided_slice %268 {offsets = [64, 0], sizes = [32, 128], strides = [1, 1]} : vector<96x128xf32> to vector<32x128xf32>
    %c15_i32_97 = arith.constant 15 : i32
    %276 = tpu.dynamic_rotate %275 by %c15_i32_97 dim 1 : vector<32x128xf32>, i32 -> vector<32x128xf32>
    %c127_i32_98 = arith.constant 127 : i32
    %277 = tpu.dynamic_rotate %275 by %c127_i32_98 dim 1 : vector<32x128xf32>, i32 -> vector<32x128xf32>
    %278 = arith.select %235, %276, %277 : vector<32x128xi1>, vector<32x128xf32>
    %279 = arith.addf %274, %278 : vector<32x128xf32>
    %280 = vector.broadcast %245 : vector<32x1xf32> to vector<32x128xf32>
    %281 = arith.mulf %279, %280 : vector<32x128xf32>
    %282 = vector.broadcast %247 : vector<32x1xf32> to vector<32x128xf32>
    %283 = arith.addf %281, %282 : vector<32x128xf32>
    %284 = arith.addf %214, %283 : vector<32x128xf32>
    %cst_99 = arith.constant 0.000000e+00 : f32
    %285 = vector.broadcast %cst_99 : f32 to vector<32x128xf32>
    %286 = arith.maximumf %284, %285 : vector<32x128xf32>
    %c1_100 = arith.constant 1 : index
    %c0_101 = arith.constant 0 : index
    %c0_102 = arith.constant 0 : index
    %c0_103 = arith.constant 0 : index
    %287 = vector.load %arg7[%c1_100, %c0_101, %c0_102, %c0_103] : memref<2x2x96x32xbf16, #tpu.memory_space<vmem>>, vector<1x1x96x32xbf16>
    %288 = vector.shape_cast %287 : vector<1x1x96x32xbf16> to vector<96x32xbf16>
    %c1_104 = arith.constant 1 : index
    %c1_105 = arith.constant 1 : index
    %c0_106 = arith.constant 0 : index
    %c0_107 = arith.constant 0 : index
    %289 = vector.load %arg7[%c1_104, %c1_105, %c0_106, %c0_107] : memref<2x2x96x32xbf16, #tpu.memory_space<vmem>>, vector<1x1x96x32xbf16>
    %290 = vector.shape_cast %289 : vector<1x1x96x32xbf16> to vector<96x32xbf16>
    %c1_108 = arith.constant 1 : index
    %c0_109 = arith.constant 0 : index
    %c0_110 = arith.constant 0 : index
    %c0_111 = arith.constant 0 : index
    %291 = vector.load %arg8[%c1_108, %c0_109, %c0_110, %c0_111] : memref<2x4x32x1xf32, #tpu.memory_space<vmem>>, vector<1x1x32x1xf32>
    %292 = vector.shape_cast %291 : vector<1x1x32x1xf32> to vector<32x1xf32>
    %c1_112 = arith.constant 1 : index
    %c1_113 = arith.constant 1 : index
    %c0_114 = arith.constant 0 : index
    %c0_115 = arith.constant 0 : index
    %293 = vector.load %arg8[%c1_112, %c1_113, %c0_114, %c0_115] : memref<2x4x32x1xf32, #tpu.memory_space<vmem>>, vector<1x1x32x1xf32>
    %294 = vector.shape_cast %293 : vector<1x1x32x1xf32> to vector<32x1xf32>
    %c1_116 = arith.constant 1 : index
    %c2_117 = arith.constant 2 : index
    %c0_118 = arith.constant 0 : index
    %c0_119 = arith.constant 0 : index
    %295 = vector.load %arg8[%c1_116, %c2_117, %c0_118, %c0_119] : memref<2x4x32x1xf32, #tpu.memory_space<vmem>>, vector<1x1x32x1xf32>
    %296 = vector.shape_cast %295 : vector<1x1x32x1xf32> to vector<32x1xf32>
    %c1_120 = arith.constant 1 : index
    %c3_121 = arith.constant 3 : index
    %c0_122 = arith.constant 0 : index
    %c0_123 = arith.constant 0 : index
    %297 = vector.load %arg8[%c1_120, %c3_121, %c0_122, %c0_123] : memref<2x4x32x1xf32, #tpu.memory_space<vmem>>, vector<1x1x32x1xf32>
    %298 = vector.shape_cast %297 : vector<1x1x32x1xf32> to vector<32x1xf32>
    %299 = arith.truncf %286 : vector<32x128xf32> to vector<32x128xbf16>
    %cst_124 = arith.constant dense<0.000000e+00> : vector<96x128xf32>
    %300 = tpu.matmul %288, %299, %cst_124 {dimension_numbers = #tpu.dot_dimension_numbers<[1], [0], [0], [1], [0, 0, 1, 1], [], []>} : vector<96x32xbf16>, vector<32x128xbf16>, vector<96x128xf32> -> vector<96x128xf32>
    %301 = vector.extract_strided_slice %300 {offsets = [0, 0], sizes = [32, 128], strides = [1, 1]} : vector<96x128xf32> to vector<32x128xf32>
    %302 = vector.extract_strided_slice %300 {offsets = [32, 0], sizes = [32, 128], strides = [1, 1]} : vector<96x128xf32> to vector<32x128xf32>
    %c113_i32_125 = arith.constant 113 : i32
    %303 = tpu.dynamic_rotate %302 by %c113_i32_125 dim 1 : vector<32x128xf32>, i32 -> vector<32x128xf32>
    %c1_i32_126 = arith.constant 1 : i32
    %304 = tpu.dynamic_rotate %302 by %c1_i32_126 dim 1 : vector<32x128xf32>, i32 -> vector<32x128xf32>
    %305 = arith.select %233, %303, %304 : vector<32x128xi1>, vector<32x128xf32>
    %306 = arith.addf %301, %305 : vector<32x128xf32>
    %307 = vector.extract_strided_slice %300 {offsets = [64, 0], sizes = [32, 128], strides = [1, 1]} : vector<96x128xf32> to vector<32x128xf32>
    %c15_i32_127 = arith.constant 15 : i32
    %308 = tpu.dynamic_rotate %307 by %c15_i32_127 dim 1 : vector<32x128xf32>, i32 -> vector<32x128xf32>
    %c127_i32_128 = arith.constant 127 : i32
    %309 = tpu.dynamic_rotate %307 by %c127_i32_128 dim 1 : vector<32x128xf32>, i32 -> vector<32x128xf32>
    %310 = arith.select %235, %308, %309 : vector<32x128xi1>, vector<32x128xf32>
    %311 = arith.addf %306, %310 : vector<32x128xf32>
    %312 = vector.broadcast %292 : vector<32x1xf32> to vector<32x128xf32>
    %313 = arith.mulf %311, %312 : vector<32x128xf32>
    %314 = vector.broadcast %294 : vector<32x1xf32> to vector<32x128xf32>
    %315 = arith.addf %313, %314 : vector<32x128xf32>
    %cst_129 = arith.constant 0.000000e+00 : f32
    %316 = vector.broadcast %cst_129 : f32 to vector<32x128xf32>
    %317 = arith.maximumf %315, %316 : vector<32x128xf32>
    %318 = arith.truncf %317 : vector<32x128xf32> to vector<32x128xbf16>
    %cst_130 = arith.constant dense<0.000000e+00> : vector<96x128xf32>
    %319 = tpu.matmul %290, %318, %cst_130 {dimension_numbers = #tpu.dot_dimension_numbers<[1], [0], [0], [1], [0, 0, 1, 1], [], []>} : vector<96x32xbf16>, vector<32x128xbf16>, vector<96x128xf32> -> vector<96x128xf32>
    %320 = vector.extract_strided_slice %319 {offsets = [0, 0], sizes = [32, 128], strides = [1, 1]} : vector<96x128xf32> to vector<32x128xf32>
    %321 = vector.extract_strided_slice %319 {offsets = [32, 0], sizes = [32, 128], strides = [1, 1]} : vector<96x128xf32> to vector<32x128xf32>
    %c113_i32_131 = arith.constant 113 : i32
    %322 = tpu.dynamic_rotate %321 by %c113_i32_131 dim 1 : vector<32x128xf32>, i32 -> vector<32x128xf32>
    %c1_i32_132 = arith.constant 1 : i32
    %323 = tpu.dynamic_rotate %321 by %c1_i32_132 dim 1 : vector<32x128xf32>, i32 -> vector<32x128xf32>
    %324 = arith.select %233, %322, %323 : vector<32x128xi1>, vector<32x128xf32>
    %325 = arith.addf %320, %324 : vector<32x128xf32>
    %326 = vector.extract_strided_slice %319 {offsets = [64, 0], sizes = [32, 128], strides = [1, 1]} : vector<96x128xf32> to vector<32x128xf32>
    %c15_i32_133 = arith.constant 15 : i32
    %327 = tpu.dynamic_rotate %326 by %c15_i32_133 dim 1 : vector<32x128xf32>, i32 -> vector<32x128xf32>
    %c127_i32_134 = arith.constant 127 : i32
    %328 = tpu.dynamic_rotate %326 by %c127_i32_134 dim 1 : vector<32x128xf32>, i32 -> vector<32x128xf32>
    %329 = arith.select %235, %327, %328 : vector<32x128xi1>, vector<32x128xf32>
    %330 = arith.addf %325, %329 : vector<32x128xf32>
    %331 = vector.broadcast %296 : vector<32x1xf32> to vector<32x128xf32>
    %332 = arith.mulf %330, %331 : vector<32x128xf32>
    %333 = vector.broadcast %298 : vector<32x1xf32> to vector<32x128xf32>
    %334 = arith.addf %332, %333 : vector<32x128xf32>
    %335 = arith.addf %286, %334 : vector<32x128xf32>
    %cst_135 = arith.constant 0.000000e+00 : f32
    %336 = vector.broadcast %cst_135 : f32 to vector<32x128xf32>
    %337 = arith.maximumf %335, %336 : vector<32x128xf32>
    %338 = vector.extract_strided_slice %337 {offsets = [0, 0], sizes = [16, 128], strides = [1, 1]} : vector<32x128xf32> to vector<16x128xf32>
    %339 = vector.extract_strided_slice %337 {offsets = [16, 0], sizes = [16, 128], strides = [1, 1]} : vector<32x128xf32> to vector<16x128xf32>
    %340 = tpu.concatenate %338, %339 in 1 : vector<16x128xf32>, vector<16x128xf32> -> vector<16x256xf32>
    %341 = arith.truncf %340 : vector<16x256xf32> to vector<16x256xbf16>
    %c0_136 = arith.constant 0 : index
    %c0_137 = arith.constant 0 : index
    %c0_138 = arith.constant 0 : index
    %342 = vector.load %arg10[%c0_136, %c0_137, %c0_138] : memref<6x256x384xbf16, #tpu.memory_space<vmem>>, vector<1x256x384xbf16>
    %343 = vector.shape_cast %342 : vector<1x256x384xbf16> to vector<256x384xbf16>
    %cst_139 = arith.constant dense<0.000000e+00> : vector<16x384xf32>
    %344 = tpu.matmul %341, %343, %cst_139 {dimension_numbers = #tpu.dot_dimension_numbers<[1], [0], [0], [1], [0, 0, 1, 1], [], []>} : vector<16x256xbf16>, vector<256x384xbf16>, vector<16x384xf32> -> vector<16x384xf32>
    %c1_140 = arith.constant 1 : index
    %c0_141 = arith.constant 0 : index
    %c0_142 = arith.constant 0 : index
    %345 = vector.load %arg10[%c1_140, %c0_141, %c0_142] : memref<6x256x384xbf16, #tpu.memory_space<vmem>>, vector<1x256x384xbf16>
    %346 = vector.shape_cast %345 : vector<1x256x384xbf16> to vector<256x384xbf16>
    %cst_143 = arith.constant dense<0.000000e+00> : vector<16x384xf32>
    %347 = tpu.matmul %341, %346, %cst_143 {dimension_numbers = #tpu.dot_dimension_numbers<[1], [0], [0], [1], [0, 0, 1, 1], [], []>} : vector<16x256xbf16>, vector<256x384xbf16>, vector<16x384xf32> -> vector<16x384xf32>
    %c2_144 = arith.constant 2 : index
    %c0_145 = arith.constant 0 : index
    %c0_146 = arith.constant 0 : index
    %348 = vector.load %arg10[%c2_144, %c0_145, %c0_146] : memref<6x256x384xbf16, #tpu.memory_space<vmem>>, vector<1x256x384xbf16>
    %349 = vector.shape_cast %348 : vector<1x256x384xbf16> to vector<256x384xbf16>
    %cst_147 = arith.constant dense<0.000000e+00> : vector<16x384xf32>
    %350 = tpu.matmul %341, %349, %cst_147 {dimension_numbers = #tpu.dot_dimension_numbers<[1], [0], [0], [1], [0, 0, 1, 1], [], []>} : vector<16x256xbf16>, vector<256x384xbf16>, vector<16x384xf32> -> vector<16x384xf32>
    %c3_148 = arith.constant 3 : index
    %c0_149 = arith.constant 0 : index
    %c0_150 = arith.constant 0 : index
    %351 = vector.load %arg10[%c3_148, %c0_149, %c0_150] : memref<6x256x384xbf16, #tpu.memory_space<vmem>>, vector<1x256x384xbf16>
    %352 = vector.shape_cast %351 : vector<1x256x384xbf16> to vector<256x384xbf16>
    %cst_151 = arith.constant dense<0.000000e+00> : vector<16x384xf32>
    %353 = tpu.matmul %341, %352, %cst_151 {dimension_numbers = #tpu.dot_dimension_numbers<[1], [0], [0], [1], [0, 0, 1, 1], [], []>} : vector<16x256xbf16>, vector<256x384xbf16>, vector<16x384xf32> -> vector<16x384xf32>
    %c4 = arith.constant 4 : index
    %c0_152 = arith.constant 0 : index
    %c0_153 = arith.constant 0 : index
    %354 = vector.load %arg10[%c4, %c0_152, %c0_153] : memref<6x256x384xbf16, #tpu.memory_space<vmem>>, vector<1x256x384xbf16>
    %355 = vector.shape_cast %354 : vector<1x256x384xbf16> to vector<256x384xbf16>
    %cst_154 = arith.constant dense<0.000000e+00> : vector<16x384xf32>
    %356 = tpu.matmul %341, %355, %cst_154 {dimension_numbers = #tpu.dot_dimension_numbers<[1], [0], [0], [1], [0, 0, 1, 1], [], []>} : vector<16x256xbf16>, vector<256x384xbf16>, vector<16x384xf32> -> vector<16x384xf32>
    %c5 = arith.constant 5 : index
    %c0_155 = arith.constant 0 : index
    %c0_156 = arith.constant 0 : index
    %357 = vector.load %arg10[%c5, %c0_155, %c0_156] : memref<6x256x384xbf16, #tpu.memory_space<vmem>>, vector<1x256x384xbf16>
    %358 = vector.shape_cast %357 : vector<1x256x384xbf16> to vector<256x384xbf16>
    %cst_157 = arith.constant dense<0.000000e+00> : vector<16x384xf32>
    %359 = tpu.matmul %341, %358, %cst_157 {dimension_numbers = #tpu.dot_dimension_numbers<[1], [0], [0], [1], [0, 0, 1, 1], [], []>} : vector<16x256xbf16>, vector<256x384xbf16>, vector<16x384xf32> -> vector<16x384xf32>
    %360 = tpu.concatenate %344, %347, %350, %353, %356, %359 in 0 : vector<16x384xf32>, vector<16x384xf32>, vector<16x384xf32>, vector<16x384xf32>, vector<16x384xf32>, vector<16x384xf32> -> vector<96x384xf32>
    %361 = arith.truncf %360 : vector<96x384xf32> to vector<96x384xbf16>
    %c0_158 = arith.constant 0 : index
    %c0_159 = arith.constant 0 : index
    %362 = vector.load %arg11[%c0_158, %c0_159] : memref<40x96xbf16, #tpu.memory_space<vmem>>, vector<40x96xbf16>
    %cst_160 = arith.constant dense<0.000000e+00> : vector<40x384xf32>
    %363 = tpu.matmul %362, %361, %cst_160 {dimension_numbers = #tpu.dot_dimension_numbers<[1], [0], [0], [1], [0, 0, 1, 1], [], []>} : vector<40x96xbf16>, vector<96x384xbf16>, vector<40x384xf32> -> vector<40x384xf32>
    %c0_161 = arith.constant 0 : index
    %c0_162 = arith.constant 0 : index
    %c0_163 = arith.constant 0 : index
    %364 = vector.load %arg13[%c0_161, %c0_162, %c0_163] : memref<1x40x384xf32, #tpu.memory_space<vmem>>, vector<1x40x384xf32>
    %365 = vector.shape_cast %364 : vector<1x40x384xf32> to vector<40x384xf32>
    %366 = vector.shape_cast %363 : vector<40x384xf32> to vector<1x40x384xf32>
    tpu.vector_store %arg13[%c0_161, %c0_162, %c0_163], %366 {strides = array<i32>} : memref<1x40x384xf32, #tpu.memory_space<vmem>>, vector<1x40x384xf32>,
    return
  }
  func.func @transform_0(%arg0: i32) -> (i32, i32, i32) {
    %c0_i32 = arith.constant 0 : i32
    %c0_i32_0 = arith.constant 0 : i32
    %c0_i32_1 = arith.constant 0 : i32
    return %arg0, %c0_i32, %c0_i32_0 : i32, i32, i32
  }
  func.func @transform_1(%arg0: i32) -> (i32, i32) {
    %c0_i32 = arith.constant 0 : i32
    %c0_i32_0 = arith.constant 0 : i32
    %c0_i32_1 = arith.constant 0 : i32
    return %c0_i32, %c0_i32_0 : i32, i32
  }
  func.func @transform_2(%arg0: i32) -> (i32, i32, i32) {
    %c0_i32 = arith.constant 0 : i32
    %c0_i32_0 = arith.constant 0 : i32
    %c0_i32_1 = arith.constant 0 : i32
    %c0_i32_2 = arith.constant 0 : i32
    return %c0_i32, %c0_i32_0, %c0_i32_1 : i32, i32, i32
  }
  func.func @transform_3(%arg0: i32) -> (i32, i32, i32) {
    %c0_i32 = arith.constant 0 : i32
    %c0_i32_0 = arith.constant 0 : i32
    %c0_i32_1 = arith.constant 0 : i32
    %c0_i32_2 = arith.constant 0 : i32
    return %c0_i32, %c0_i32_0, %c0_i32_1 : i32, i32, i32
  }
  func.func @transform_4(%arg0: i32) -> (i32, i32) {
    %c0_i32 = arith.constant 0 : i32
    %c0_i32_0 = arith.constant 0 : i32
    %c0_i32_1 = arith.constant 0 : i32
    return %c0_i32, %c0_i32_0 : i32, i32
  }
  func.func @transform_5(%arg0: i32) -> (i32, i32) {
    %c0_i32 = arith.constant 0 : i32
    %c0_i32_0 = arith.constant 0 : i32
    %c0_i32_1 = arith.constant 0 : i32
    return %c0_i32, %c0_i32_0 : i32, i32
  }
  func.func @transform_6(%arg0: i32) -> (i32, i32, i32, i32) {
    %c0_i32 = arith.constant 0 : i32
    %c0_i32_0 = arith.constant 0 : i32
    %c0_i32_1 = arith.constant 0 : i32
    %c0_i32_2 = arith.constant 0 : i32
    %c0_i32_3 = arith.constant 0 : i32
    return %c0_i32, %c0_i32_0, %c0_i32_1, %c0_i32_2 : i32, i32, i32, i32
  }
  func.func @transform_7(%arg0: i32) -> (i32, i32, i32, i32) {
    %c0_i32 = arith.constant 0 : i32
    %c0_i32_0 = arith.constant 0 : i32
    %c0_i32_1 = arith.constant 0 : i32
    %c0_i32_2 = arith.constant 0 : i32
    %c0_i32_3 = arith.constant 0 : i32
    return %c0_i32, %c0_i32_0, %c0_i32_1, %c0_i32_2 : i32, i32, i32, i32
  }
  func.func @transform_8(%arg0: i32) -> (i32, i32) {
    %c0_i32 = arith.constant 0 : i32
    %c0_i32_0 = arith.constant 0 : i32
    %c0_i32_1 = arith.constant 0 : i32
    return %c0_i32, %c0_i32_0 : i32, i32
  }
  func.func @transform_9(%arg0: i32) -> (i32, i32, i32) {
    %c0_i32 = arith.constant 0 : i32
    %c0_i32_0 = arith.constant 0 : i32
    %c0_i32_1 = arith.constant 0 : i32
    %c0_i32_2 = arith.constant 0 : i32
    return %c0_i32, %c0_i32_0, %c0_i32_1 : i32, i32, i32
  }
  func.func @transform_10(%arg0: i32) -> (i32, i32) {
    %c0_i32 = arith.constant 0 : i32
    %c0_i32_0 = arith.constant 0 : i32
    %c0_i32_1 = arith.constant 0 : i32
    return %c0_i32, %c0_i32_0 : i32, i32
  }
  func.func @transform_11(%arg0: i32) -> (i32, i32) {
    %c0_i32 = arith.constant 0 : i32
    %c0_i32_0 = arith.constant 0 : i32
    %c0_i32_1 = arith.constant 0 : i32
    return %c0_i32, %c0_i32_0 : i32, i32
  }
  func.func @transform_12(%arg0: i32) -> (i32, i32, i32) {
    %c0_i32 = arith.constant 0 : i32
    %c0_i32_0 = arith.constant 0 : i32
    %c0_i32_1 = arith.constant 0 : i32
    return %arg0, %c0_i32, %c0_i32_0 : i32, i32, i32
  }
}

</mosaic_0001>

<bundles_post_ra>
// kernel: _lambda_.1
= control target key start
LH: loop header
LB: loop body
LE: loop exit
PB: predicated region body
PF: predicated region fallthrough
CT: control target
= control target key end

     0   :  { %17 = vsyncpa [#allocation3], 0  ;;  %s7013_s24 = smov [#allocation2]   ;;  %s9908_s0 = inlined_call_operand.vmem [shape: f32[1,16,128], index: 0, kind: input, shape index: {}]   ;;  %s9909_s1 = inlined_call_operand.vmem [shape: bf16[128,256], index: 1, kind: input, shape index: {}]   ;;  %s9910_s2 = inlined_call_operand.vmem [shape: bf16[2,64,32], index: 2, kind: input, shape index: {}]   ;;  %s9911_s3 = inlined_call_operand.vmem [shape: bf16[2,64,64], index: 3, kind: input, shape index: {}]   ;;  %s9912_s4 = inlined_call_operand.vmem [shape: bf16[128,128], index: 4, kind: input, shape index: {}]   ;;  %s9913_s5 = inlined_call_operand.vmem [shape: bf16[64,32], index: 5, kind: input, shape index: {}]   ;;  %s9914_s6 = inlined_call_operand.vmem [shape: bf16[2,2,96,32], index: 6, kind: input, shape index: {}]   ;;  %s9915_s7 = inlined_call_operand.vmem [shape: f32[2,4,32,1], index: 7, kind: input, shape index: {}]   ;;  %s9916_s8 = inlined_call_operand.vmem [shape: f32[128,128], index: 8, kind: input, shape index: {}]   ;;  %s9917_s9 = inlined_call_operand.vmem [shape: bf16[6,256,384], index: 9, kind: input, shape index: {}]   ;;  %s9918_s10 = inlined_call_operand.vmem [shape: bf16[40,96], index: 10, kind: input, shape index: {}]   ;;  %s9919_s11 = inlined_call_operand.vmem [shape: f32[2,4], index: 11, kind: input, shape index: {}]   ;;  %s9920_s12 = inlined_call_operand.vmem [shape: f32[1,40,384], index: 12, kind: output, shape index: {}]  }
   0x1   :  { %s45_s23 = sshll.u32 %s9919_s11, 4  ;;  %s46_s23 = int_to_ptr.vmem [resolvable:$true] %s45_s23 }
   0x2   :  { %48 = dma.vmem_to_smem %s46_s23, 32, %s7013_s24, [#allocation3]  }
   0x3   :  { %7011 = dma.done.wait [#allocation3], 32  }
   0x4   :  { %7012 = vsyncadd [#allocation3], 4294967264 }
   0x5   :  { %53 = sfence }
   0x6   :  { %v4737_v0 = vld [vmem:[%s9909_s1 + $0x70] sm:$0xf]  ;;  %v6586_v1 = vld [vmem:[%s9909_s1 + $0x74] sm:$0xf0]  ;;  %v6585_v2 = vld [vmem:[%s9909_s1 + $0x74] sm:$0xf] }
   0x7   :  { %v4738_v3 = vor.u32 %v6586_v1, %v4737_v0  ;;  %v4739_v4 = vld [vmem:[%s9909_s1 + $0x78] sm:$0xf0]  ;;  %v4729_v5 = vld [vmem:[%s9909_s1 + $0x60] sm:$0xf]  ;;  %v6584_v6 = vld [vmem:[%s9909_s1 + $0x64] sm:$0xf0] }
   0x8   :  { %v4742_v7 = vor.u32 %v6585_v2, %v4739_v4  ;;  %v6583_v8 = vld [vmem:[%s9909_s1 + $0x64] sm:$0xf]  ;;  %v4731_v9 = vld [vmem:[%s9909_s1 + $0x68] sm:$0xf0]  ;;  %v4730_v10 = vor.u32 %v6584_v6, %v4729_v5  ;;  %v4721_v12 = vld [vmem:[%s9909_s1 + $0x50] sm:$0xf] }
   0x9   :  { %154 = vmatpush.bf16.msra.mxu0 %v4738_v3  ;;  %v4734_v11 = vor.u32 %v6583_v8, %v4731_v9  ;;  %v6582_v13 = vld [vmem:[%s9909_s1 + $0x54] sm:$0xf0]  ;;  %v6581_v14 = vld [vmem:[%s9909_s1 + $0x54] sm:$0xf]  ;;  %v4723_v15 = vld [vmem:[%s9909_s1 + $0x58] sm:$0xf0] }
   0xa   :  { %168 = vmatpush.bf16.msra.mxu1 %v4742_v7  ;;  %v4722_v16 = vor.u32 %v6582_v13, %v4721_v12  ;;  %v4726_v17 = vor.u32 %v6581_v14, %v4723_v15  ;;  %v4713_v18 = vld [vmem:[%s9909_s1 + $0x40] sm:$0xf]  ;;  %v6580_v19 = vld [vmem:[%s9909_s1 + $0x44] sm:$0xf0]  ;;  %v6579_v20 = vld [vmem:[%s9909_s1 + $0x44] sm:$0xf] }
   0xb   :  { %v4715_v21 = vld [vmem:[%s9909_s1 + $0x48] sm:$0xf0]  ;;  %v4714_v22 = vor.u32 %v6580_v19, %v4713_v18  ;;  %v4705_v24 = vld [vmem:[%s9909_s1 + $0x30] sm:$0xf]  ;;  %v6578_v25 = vld [vmem:[%s9909_s1 + $0x34] sm:$0xf0] }
   0xc   :  { %v4718_v23 = vor.u32 %v6579_v20, %v4715_v21  ;;  %v6577_v26 = vld [vmem:[%s9909_s1 + $0x34] sm:$0xf]  ;;  %v4707_v27 = vld [vmem:[%s9909_s1 + $0x38] sm:$0xf0]  ;;  %v4706_v28 = vor.u32 %v6578_v25, %v4705_v24  ;;  %v4697_v30 = vld [vmem:[%s9909_s1 + $0x20] sm:$0xf] }
   0xd   :  { %155 = vmatpush.bf16.msra.mxu0 %v4730_v10  ;;  %v4710_v29 = vor.u32 %v6577_v26, %v4707_v27  ;;  %v6576_v31 = vld [vmem:[%s9909_s1 + $0x24] sm:$0xf0]  ;;  %v6575_v32 = vld [vmem:[%s9909_s1 + $0x24] sm:$0xf]  ;;  %v4699_v33 = vld [vmem:[%s9909_s1 + $0x28] sm:$0xf0] }
   0xe   :  { %169 = vmatpush.bf16.msra.mxu1 %v4734_v11  ;;  %v4698_v34 = vor.u32 %v6576_v31, %v4697_v30  ;;  %v4702_v35 = vor.u32 %v6575_v32, %v4699_v33  ;;  %v4689_v36 = vld [vmem:[%s9909_s1 + $0x10] sm:$0xf]  ;;  %v6574_v37 = vld [vmem:[%s9909_s1 + $0x14] sm:$0xf0]  ;;  %v6573_v38 = vld [vmem:[%s9909_s1 + $0x14] sm:$0xf] }
   0xf   :  { %v4691_v39 = vld [vmem:[%s9909_s1 + $0x18] sm:$0xf0]  ;;  %v4690_v40 = vor.u32 %v6574_v37, %v4689_v36  ;;  %v4681_v42 = vld [vmem:[%s9909_s1] sm:$0xf]  ;;  %v6572_v43 = vld [vmem:[%s9909_s1 + $0x4] sm:$0xf0] }
  0x10   :  { %v4694_v41 = vor.u32 %v6573_v38, %v4691_v39  ;;  %v6571_v44 = vld [vmem:[%s9909_s1 + $0x4] sm:$0xf]  ;;  %v4683_v45 = vld [vmem:[%s9909_s1 + $0x8] sm:$0xf0]  ;;  %v4682_v46 = vor.u32 %v6572_v43, %v4681_v42  ;;  %vm228_vm0 = vcmask 261120   ;;  %v6597_v59 = vld [vmem:[%s9910_s2 + $0x10] sm:$0xff] }
  0x11   :  { %156 = vmatpush.bf16.msra.mxu0 %v4722_v16  ;;  %v55_v47 = vld [vmem:[%s9908_s0] sm:$0xff]  ;;  %v56_v48 = vld [vmem:[%s9908_s0 + $0x8] sm:$0xff]  ;;  %v4686_v49 = vor.u32 %v6571_v44, %v4683_v45  ;;  %v6598_v60 = vld [vmem:[%s9910_s2 + $0x18] sm:$0xff]  ;;  %vm342_vm1 = vcmask 523264   ;;  %s7297_s26 = sld [smem:[#allocation2]]  ;;  %s7015_s14 = smov 2  }
  0x12   :  { %170 = vmatpush.bf16.msra.mxu1 %v4726_v17  ;;  %v57_v50 = vpack.c.bf16 %v56_v48, %v55_v47  ;;  %v6595_v57 = vld [vmem:[%s9910_s2] sm:$0xff]  ;;  %v6596_v58 = vld [vmem:[%s9910_s2 + $0x8] sm:$0xff]  ;;  %s7300_s27 = sld [smem:[#allocation2 + $0x2]]  ;;  %s7016_s15 = smov 4  }
  0x13   :  { %s4817_s28 = sld [smem:[#allocation2 + $0x3]]  ;;  %s7017_s16 = smov 8  }
  0x14   :  { %s7398_s23 = sld [smem:[#allocation2 + $0x80]]  ;;  %s7019_s1 = smov 113  }
  0x15   :  { %157 = vmatpush.bf16.msra.mxu0 %v4714_v22  ;;  %s7400_s24 = sld [smem:[#allocation2 + $0x82]]  ;;  %s7020_s17 = smov 127  }
  0x16   :  { %171 = vmatpush.bf16.msra.mxu1 %v4718_v23  ;;  %s4877_s25 = sld [smem:[#allocation2 + $0x83]]  ;;  %s7021_s18 = smov 15  }
  0x19   :  { %158 = vmatpush.bf16.msra.mxu0 %v4706_v28 }
  0x1a   :  { %172 = vmatpush.bf16.msra.mxu1 %v4710_v29 }
  0x1d   :  { %159 = vmatpush.bf16.msra.mxu0 %v4698_v34 }
  0x1e   :  { %173 = vmatpush.bf16.msra.mxu1 %v4702_v35 }
  0x21   :  { %160 = vmatpush.bf16.msra.mxu0 %v4690_v40 }
  0x22   :  { %174 = vmatpush.bf16.msra.mxu1 %v4694_v41 }
  0x25   :  { %161 = vmatpush.bf16.msra.mxu0 %v4682_v46 }
  0x26   :  { %175 = vmatpush.bf16.msra.mxu1 %v4686_v49  ;;  %v6599_v49 = vld [vmem:[%s9911_s3] sm:$0xff] }
  0x28   :  { %162 = vmatmul.bf16.vlgmr.msra.gmra.mxu0 %v57_v50 }
  0x29   :  { %176 = vmatmul.bf16.vlgmr.msra.gmra.mxu1 %v57_v50  ;;  %v6600_v50 = vld [vmem:[%s9911_s3 + $0x8] sm:$0xff] }
  0xa5   :  { %v7192_v51 = vpop.f32.mrf.mxu0 }
  0xa6   :  { %v7194_v52 = vpop.f32.mrf.mxu1 }
  0xad   :  { %v7200_v55 = vpop.f32.mrf.mxu0 }
  0xae   :  { %v7196_v53 = vpop.f32.mrf.mxu1  ;;  %v198_v56 = vpack.c.bf16 %v7200_v55, %v7192_v51 }
  0xaf   :  { %v199_v54 = vpack.c.bf16 %v7196_v53, %v7194_v52 }
  0xb1   :  { %247 = vmatpush.bf16.msra.mxu2 %v199_v54  ;;  %v6601_v54 = vld [vmem:[%s9911_s3 + $0x10] sm:$0xff] }
  0xb5   :  { %248 = vmatpush.bf16.msra.mxu2 %v198_v56  ;;  %v6602_v56 = vld [vmem:[%s9911_s3 + $0x18] sm:$0xff] }
  0xb8   :  { %4759 = vmatmul.msk.bf16.vlgmr.msra.gmra.mxu2 %vm228_vm0, %v6595_v57  ;;  %v6594_v57 = vld [vmem:[%s9912_s4 + $0x38] sm:$0xff] }
  0xb9   :  { %460 = vmatpush.bf16.msrb.mxu0 %v6594_v57 }
  0xc8   :  { %4760 = vmatmul.msk.bf16.gmra.mxu2 %vm228_vm0, %v6596_v58  ;;  %v6593_v58 = vld [vmem:[%s9912_s4 + $0x30] sm:$0xff] }
  0xc9   :  { %461 = vmatpush.bf16.msrb.mxu0 %v6593_v58 }
  0xd8   :  { %4761 = vmatmul.msk.bf16.gmra.mxu2 %vm228_vm0, %v6597_v59  ;;  %v6592_v59 = vld [vmem:[%s9912_s4 + $0x28] sm:$0xff] }
  0xd9   :  { %462 = vmatpush.bf16.msrb.mxu0 %v6592_v59 }
  0xe8   :  { %4762 = vmatmul.msk.bf16.gmra.mxu2 %vm228_vm0, %v6598_v60  ;;  %v6591_v60 = vld [vmem:[%s9912_s4 + $0x20] sm:$0xff] }
  0xe9   :  { %463 = vmatpush.bf16.msrb.mxu0 %v6591_v60 }
 0x13b   :  { %v250_v61 = vpop.f32.mrf.mxu2 }
 0x13c   :  { %v270_v7 = vmul.f32 %v250_v61, %v250_v61 }
 0x143   :  { %v252_v62 = vpop.f32.mrf.mxu2 }
 0x144   :  { %v271_v4 = vmul.f32 %v252_v62, %v252_v62 }
 0x14b   :  { %v255_v63 = vpop.f32.mrf.mxu2 }
 0x14c   :  { %v272_v8 = vmul.f32 %v255_v63, %v255_v63 }
 0x153   :  { %v257_v0 = vpop.f32.mrf.mxu2 }
 0x154   :  { %v273_v17 = vmul.f32 %v257_v0, %v257_v0 }
 0x15b   :  { %v260_v1 = vpop.f32.mrf.mxu2 }
 0x15c   :  { %v274_v5 = vmul.f32 %v260_v1, %v260_v1 }
 0x15e   :  { %v278_v11 = vadd.f32 %v274_v5, %v270_v7 }
 0x160   :  { %v282_v15 = vadd.f32 1e-12, %v278_v11 }
 0x163   :  { %v262_v2 = vpop.f32.mrf.mxu2 }
 0x164   :  { %v275_v3 = vmul.f32 %v262_v2, %v262_v2 }
 0x166   :  { %v279_v9 = vadd.f32 %v275_v3, %v271_v4 }
 0x168   :  { %v283_v13 = vadd.f32 1e-12, %v279_v9 }
 0x16b   :  { %v265_v6 = vpop.f32.mrf.mxu2 }
 0x16c   :  { %v276_v10 = vmul.f32 %v265_v6, %v265_v6 }
 0x16e   :  { %v280_v12 = vadd.f32 %v276_v10, %v272_v8 }
 0x170   :  { %v284_v14 = vadd.f32 1e-12, %v280_v12 }
 0x172   :  { %6957 = vlog2.f32 %v284_v14 }
 0x173   :  { %v267_v16 = vpop.f32.mrf.mxu2  ;;  %6959 = vlog2.f32 %v283_v13 }
 0x174   :  { %v277_v18 = vmul.f32 %v267_v16, %v267_v16  ;;  %6961 = vlog2.f32 %v282_v15 }
 0x176   :  { %v281_v19 = vadd.f32 %v277_v18, %v273_v17 }
 0x178   :  { %v6958_v20 = vpop.eup %6957  ;;  %v285_v21 = vadd.f32 1e-12, %v281_v19 }
 0x179   :  { %v6960_v22 = vpop.eup %6959  ;;  %v291_v23 = vmul.f32 0.6931472, %v6958_v20 }
 0x17a   :  { %6963 = vlog2.f32 %v285_v21  ;;  %v6962_v24 = vpop.eup %6961  ;;  %v289_v25 = vmul.f32 0.6931472, %v6960_v22 }
 0x17b   :  { %v287_v26 = vmul.f32 0.6931472, %v6962_v24  ;;  %v296_v27 = vadd.f32 1.0, %v291_v23 }
 0x17c   :  { %v295_v29 = vadd.f32 1.0, %v289_v25 }
 0x17d   :  { %v294_v31 = vadd.f32 1.0, %v287_v26  ;;  %v304_v33 = vmul.f32 %v296_v27, %v265_v6  ;;  %v300_v44 = vmul.f32 %v296_v27, %v255_v63  ;;  %v6589_v63 = vld [vmem:[%s9912_s4 + $0x10] sm:$0xff] }
 0x17e   :  { %v303_v34 = vmul.f32 %v295_v29, %v262_v2  ;;  %v299_v46 = vmul.f32 %v295_v29, %v252_v62  ;;  %v6587_v2 = vld [vmem:[%s9912_s4] sm:$0xff] }
 0x17f   :  { %v302_v36 = vmul.f32 %v294_v31, %v260_v1  ;;  %v308_v37 = vsub.f32 0.0, %v304_v33  ;;  %v298_v47 = vmul.f32 %v294_v31, %v250_v61  ;;  %v6590_v61 = vld [vmem:[%s9912_s4 + $0x18] sm:$0xff] }
 0x180   :  { %v6964_v28 = vpop.eup %6963  ;;  %v307_v39 = vsub.f32 0.0, %v303_v34  ;;  %464 = vmatpush.bf16.msrb.mxu0 %v6590_v61 }
 0x181   :  { %v293_v30 = vmul.f32 0.6931472, %v6964_v28  ;;  %v306_v41 = vsub.f32 0.0, %v302_v36  ;;  %v310_v48 = vpack.c.bf16 %v299_v46, %v298_v47 }
 0x183   :  { %v297_v32 = vadd.f32 1.0, %v293_v30  ;;  %v312_v42 = vpack.c.bf16 %v307_v39, %v306_v41 }
 0x184   :  { %465 = vmatpush.bf16.msrb.mxu0 %v6589_v63 }
 0x185   :  { %v305_v35 = vmul.f32 %v297_v32, %v267_v16  ;;  %v301_v43 = vmul.f32 %v297_v32, %v257_v0  ;;  %v6588_v0 = vld [vmem:[%s9912_s4 + $0x8] sm:$0xff]  ;;  %s4815_s4 = sld [smem:[#allocation2 + $0x1]] }
 0x187   :  { %v309_v38 = vsub.f32 0.0, %v305_v35  ;;  %v311_v45 = vpack.c.bf16 %v301_v43, %v300_v44 }
 0x188   :  { %466 = vmatpush.bf16.msrb.mxu0 %v6588_v0 }
 0x189   :  { %v313_v40 = vpack.c.bf16 %v309_v38, %v308_v37 }
 0x18b   :  { %359 = vmatpush.bf16.msra.mxu3 %v313_v40 }
 0x18c   :  { %467 = vmatpush.bf16.msrb.mxu0 %v6587_v2 }
 0x18f   :  { %360 = vmatpush.bf16.msra.mxu3 %v312_v42 }
 0x193   :  { %361 = vmatpush.bf16.msra.mxu3 %v311_v45 }
 0x197   :  { %362 = vmatpush.bf16.msra.mxu3 %v310_v48 }
 0x19a   :  { %4779 = vmatmul.msk.bf16.vlgmr.msra.gmra.mxu3 %vm342_vm1, %v6599_v49 }
 0x19b   :  { %839 = vmatpush.bf16.msrb.mxu3 %v6594_v57 }
 0x19f   :  { %840 = vmatpush.bf16.msrb.mxu3 %v6593_v58 }
 0x1a3   :  { %841 = vmatpush.bf16.msrb.mxu3 %v6592_v59 }
 0x1a7   :  { %842 = vmatpush.bf16.msrb.mxu3 %v6591_v60 }
 0x1aa   :  { %4780 = vmatmul.msk.bf16.gmra.mxu3 %vm342_vm1, %v6600_v50 }
 0x1ab   :  { %843 = vmatpush.bf16.msrb.mxu3 %v6590_v61 }
 0x1af   :  { %844 = vmatpush.bf16.msrb.mxu3 %v6589_v63 }
 0x1b3   :  { %845 = vmatpush.bf16.msrb.mxu3 %v6588_v0 }
 0x1b7   :  { %846 = vmatpush.bf16.msrb.mxu3 %v6587_v2 }
 0x1ba   :  { %4781 = vmatmul.msk.bf16.gmra.mxu3 %vm342_vm1, %v6601_v54 }
 0x1ca   :  { %4782 = vmatmul.msk.bf16.gmra.mxu3 %vm342_vm1, %v6602_v56 }
 0x21d   :  { %v364_v62 = vpop.f32.mrf.mxu3 }
 0x21e   :  { %v384_v8 = vmul.f32 %v364_v62, %v7192_v51  ;;  %v400_v26 = vmul.f32 %v364_v62, %v7194_v52 }
 0x225   :  { %v366_v1 = vpop.f32.mrf.mxu3 }
 0x226   :  { %v385_v9 = vmul.f32 %v366_v1, %v7200_v55  ;;  %v401_v24 = vmul.f32 %v366_v1, %v7196_v53 }
 0x22d   :  { %v369_v3 = vpop.f32.mrf.mxu3 }
 0x22e   :  { %v386_v17 = vmul.f32 %v369_v3, %v7192_v51  ;;  %v402_v33 = vmul.f32 %v369_v3, %v7194_v52 }
 0x235   :  { %v371_v4 = vpop.f32.mrf.mxu3 }
 0x236   :  { %v387_v18 = vmul.f32 %v371_v4, %v7200_v55  ;;  %v403_v31 = vmul.f32 %v371_v4, %v7196_v53 }
 0x23d   :  { %v374_v5 = vpop.f32.mrf.mxu3 }
 0x23e   :  { %v388_v6 = vmul.f32 %v374_v5, %v7194_v52  ;;  %v396_v25 = vmul.f32 %v374_v5, %v7192_v51 }
 0x240   :  { %v392_v11 = vsub.f32 %v384_v8, %v388_v6  ;;  %v404_v28 = vadd.f32 %v400_v26, %v396_v25 }
 0x245   :  { %v376_v7 = vpop.f32.mrf.mxu3 }
 0x246   :  { %v389_v10 = vmul.f32 %v376_v7, %v7196_v53  ;;  %v397_v23 = vmul.f32 %v376_v7, %v7200_v55 }
 0x248   :  { %v393_v12 = vsub.f32 %v385_v9, %v389_v10  ;;  %v405_v27 = vadd.f32 %v401_v24, %v397_v23 }
 0x24a   :  { %v408_v13 = vpack.c.bf16 %v393_v12, %v392_v11  ;;  %v410_v29 = vpack.c.bf16 %v405_v27, %v404_v28 }
 0x24c   :  { %468 = vmatmul.bf16.vlgmr.msrb.gmra.mxu0 %v408_v13 }
 0x24d   :  { %v379_v14 = vpop.f32.mrf.mxu3 }
 0x24e   :  { %v390_v15 = vmul.f32 %v379_v14, %v7194_v52  ;;  %v398_v32 = vmul.f32 %v379_v14, %v7192_v51 }
 0x250   :  { %v394_v20 = vsub.f32 %v386_v17, %v390_v15  ;;  %v406_v35 = vadd.f32 %v402_v33, %v398_v32 }
 0x255   :  { %v381_v16 = vpop.f32.mrf.mxu3 }
 0x256   :  { %v391_v19 = vmul.f32 %v381_v16, %v7196_v53  ;;  %v399_v30 = vmul.f32 %v381_v16, %v7200_v55 }
 0x258   :  { %v395_v21 = vsub.f32 %v387_v18, %v391_v19  ;;  %v407_v34 = vadd.f32 %v403_v31, %v399_v30 }
 0x25a   :  { %v409_v22 = vpack.c.bf16 %v395_v21, %v394_v20  ;;  %v411_v36 = vpack.c.bf16 %v407_v34, %v406_v35 }
 0x25c   :  { %473 = vmatmul.bf16.gmra.mxu0 %v409_v22 }
 0x26c   :  { %478 = vmatmul.bf16.gmra.mxu0 %v410_v29 }
 0x27c   :  { %483 = vmatmul.bf16.gmra.mxu0 %v411_v36 }
 0x2c9   :  { %v469_v37 = vpop.f32.mrf.mxu0 }
 0x2ca   :  { %v489_v42 = vmul.f32 %v469_v37, %v469_v37 }
 0x2d1   :  { %v471_v38 = vpop.f32.mrf.mxu0 }
 0x2d2   :  { %v490_v46 = vmul.f32 %v471_v38, %v471_v38 }
 0x2d9   :  { %v7276_v39 = vpop.f32.mrf.mxu0 }
 0x2da   :  { %v491_v57 = vmul.f32 %v7276_v39, %v7276_v39 }
 0x2e1   :  { %v7278_v40 = vpop.f32.mrf.mxu0 }
 0x2e2   :  { %v492_v3 = vmul.f32 %v7278_v40, %v7278_v40 }
 0x2e9   :  { %v479_v41 = vpop.f32.mrf.mxu0 }
 0x2ea   :  { %v493_v43 = vmul.f32 %v479_v41, %v479_v41  ;;  %v553_v13 = vsub.f32 0.0, %v479_v41 }
 0x2ec   :  { %v497_v44 = vadd.f32 %v493_v43, %v489_v42 }
 0x2ee   :  { %6965 = vrsqrt.f32 %v497_v44  ;;  %vm507_vm3 = vweird.f32 %v497_v44  ;;  %vm541_vm9 = vcmp.eq.f32.partialorder %v497_v44, 0.0 }
 0x2f1   :  { %v481_v45 = vpop.f32.mrf.mxu0 }
 0x2f2   :  { %v494_v47 = vmul.f32 %v481_v45, %v481_v45  ;;  %v554_v20 = vsub.f32 0.0, %v481_v45 }
 0x2f4   :  { %v6966_v48 = vpop.eup %6965  ;;  %v7280_v49 = vadd.f32 %v494_v47, %v490_v46  ;;  %v596_v47 = vstv %s4815_s4 }
 0x2f5   :  { %v502_v50 = vmul.f32 %v6966_v48, %v497_v44  ;;  %vm508_vm2 = vweird.f32 %v6966_v48 }
 0x2f6   :  { %6967 = vrsqrt.f32 %v7280_v49  ;;  %vm509_vm4 = vmor %vm507_vm3, %vm508_vm2  ;;  %vm517_vm6 = vweird.f32 %v7280_v49  ;;  %vm542_vm12 = vcmp.eq.f32.partialorder %v7280_v49, 0.0 }
 0x2f7   :  { %v503_v54 = vmul.f32 %v6966_v48, %v502_v50 }
 0x2f9   :  { %v484_v56 = vpop.f32.mrf.mxu0  ;;  %v504_v58 = vmul.f32 0.5, %v503_v54 }
 0x2fa   :  { %v495_v59 = vmul.f32 %v484_v56, %v484_v56  ;;  %v555_v27 = vsub.f32 0.0, %v484_v56 }
 0x2fb   :  { %v505_v63 = vsub.f32 1.5, %v504_v58  ;;  %v593_v58 = vstv %s7297_s26 }
 0x2fc   :  { %v6968_v60 = vpop.eup %6967  ;;  %v499_v61 = vadd.f32 %v495_v59, %v491_v57  ;;  %v601_v59 = vstv %s7300_s27 }
 0x2fd   :  { %v512_v62 = vmul.f32 %v6968_v60, %v7280_v49  ;;  %v506_v4 = vmul.f32 %v6966_v48, %v505_v63  ;;  %vm518_vm5 = vweird.f32 %v6968_v60 }
 0x2fe   :  { %6969 = vrsqrt.f32 %v499_v61  ;;  %vm519_vm7 = vmor %vm517_vm6, %vm518_vm5  ;;  %vm527_vm10 = vweird.f32 %v499_v61  ;;  %vm543_vm13 = vcmp.eq.f32.partialorder %v499_v61, 0.0 }
 0x2ff   :  { %v513_v0 = vmul.f32 %v6968_v60, %v512_v62  ;;  %v510_v10 = vsel %vm509_vm4, %v6966_v48, %v506_v4 }
 0x300   :  { %v545_v14 = vmul.f32 %v510_v10, %v469_v37  ;;  %v557_v16 = vmul.f32 %v553_v13, %v510_v10 }
 0x301   :  { %v514_v1 = vmul.f32 0.5, %v513_v0  ;;  %v7286_v2 = vpop.f32.mrf.mxu0 }
 0x302   :  { %v496_v5 = vmul.f32 %v7286_v2, %v7286_v2  ;;  %v549_v21 = vsel %vm541_vm9, 1.0, %v545_v14  ;;  %v561_v24 = vsel %vm541_vm9, 0.0, %v557_v16  ;;  %v556_v54 = vsub.f32 0.0, %v7286_v2 }
 0x303   :  { %v515_v7 = vsub.f32 1.5, %v514_v1  ;;  %v565_v30 = vmul.f32 %v549_v21, %v7192_v51  ;;  %v569_v33 = vmul.f32 %v561_v24, %v7194_v52  ;;  %v577_v34 = vmul.f32 %v561_v24, %v7192_v51 }
 0x304   :  { %v6970_v6 = vpop.eup %6969  ;;  %v7292_v8 = vadd.f32 %v496_v5, %v492_v3  ;;  %v581_v35 = vmul.f32 %v549_v21, %v7194_v52 }
 0x305   :  { %v522_v9 = vmul.f32 %v6970_v6, %v499_v61  ;;  %v516_v11 = vmul.f32 %v6968_v60, %v515_v7  ;;  %vm528_vm8 = vweird.f32 %v6970_v6  ;;  %v573_v57 = vsub.f32 %v565_v30, %v569_v33 }
 0x306   :  { %6971 = vrsqrt.f32 %v7292_v8  ;;  %vm529_vm11 = vmor %vm527_vm10, %vm528_vm8  ;;  %vm537_vm15 = vweird.f32 %v7292_v8  ;;  %v585_v48 = vadd.f32 %v581_v35, %v577_v34  ;;  %vm544_vm3 = vcmp.eq.f32.partialorder %v7292_v8, 0.0 }
 0x307   :  { %v523_v12 = vmul.f32 %v6970_v6, %v522_v9  ;;  %v520_v17 = vsel %vm519_vm7, %v6968_v60, %v516_v11  ;;  %v617_v16 = vmul.f32 %v601_v59, %v573_v57 }
 0x308   :  { %v546_v25 = vmul.f32 %v520_v17, %v471_v38  ;;  %v558_v26 = vmul.f32 %v554_v20, %v520_v17  ;;  %v602_v30 = vmul.f32 %v601_v59, %v585_v48 }
 0x309   :  { %v524_v15 = vmul.f32 0.5, %v523_v12 }
 0x30a   :  { %v550_v37 = vsel %vm542_vm12, 1.0, %v546_v25  ;;  %v562_v38 = vsel %vm542_vm12, 0.0, %v558_v26 }
 0x30b   :  { %v525_v18 = vsub.f32 1.5, %v524_v15  ;;  %v578_v49 = vmul.f32 %v562_v38, %v7200_v55  ;;  %v582_v50 = vmul.f32 %v550_v37, %v7196_v53  ;;  %v566_v60 = vmul.f32 %v550_v37, %v7200_v55 }
 0x30c   :  { %v6972_v19 = vpop.eup %6971  ;;  %v570_v61 = vmul.f32 %v562_v38, %v7196_v53  ;;  %v604_v15 = vstv %s4817_s28 }
 0x30d   :  { %v526_v22 = vmul.f32 %v6970_v6, %v525_v18  ;;  %v532_v23 = vmul.f32 %v6972_v19, %v7292_v8  ;;  %vm538_vm14 = vweird.f32 %v6972_v19  ;;  %v586_v2 = vadd.f32 %v582_v50, %v578_v49 }
 0x30e   :  { %vm539_vm2 = vmor %vm537_vm15, %vm538_vm14  ;;  %v574_v11 = vsub.f32 %v566_v60, %v570_v61 }
 0x30f   :  { %v530_v28 = vsel %vm529_vm11, %v6970_v6, %v526_v22  ;;  %v533_v29 = vmul.f32 %v6972_v19, %v532_v23  ;;  %v611_v6 = vmul.f32 %v593_v58, %v585_v48  ;;  %v612_v17 = vmul.f32 %v593_v58, %v586_v2 }
 0x310   :  { %v547_v31 = vmul.f32 %v530_v28, %v7276_v39  ;;  %v559_v32 = vmul.f32 %v555_v27, %v530_v28  ;;  %v618_v21 = vmul.f32 %v601_v59, %v574_v11  ;;  %v595_v22 = vmul.f32 %v593_v58, %v574_v11 }
 0x311   :  { %v534_v36 = vmul.f32 0.5, %v533_v29  ;;  %v603_v23 = vmul.f32 %v601_v59, %v586_v2  ;;  %v594_v29 = vmul.f32 %v593_v58, %v573_v57 }
 0x312   :  { %v551_v41 = vsel %vm543_vm13, 1.0, %v547_v31  ;;  %v563_v42 = vsel %vm543_vm13, 0.0, %v559_v32 }
 0x313   :  { %v579_v43 = vmul.f32 %v563_v42, %v7192_v51  ;;  %v583_v44 = vmul.f32 %v551_v41, %v7194_v52  ;;  %v535_v45 = vsub.f32 1.5, %v534_v36  ;;  %v571_v0 = vmul.f32 %v563_v42, %v7194_v52 }
 0x314   :  { %v567_v1 = vmul.f32 %v551_v41, %v7192_v51 }
 0x315   :  { %v587_v39 = vadd.f32 %v583_v44, %v579_v43  ;;  %v536_v46 = vmul.f32 %v6972_v19, %v535_v45  ;;  %v6603_v45 = vld [vmem:[%s9910_s2 + $0x20] sm:$0xff] }
 0x316   :  { %v575_v13 = vsub.f32 %v567_v1, %v571_v0 }
 0x317   :  { %v540_v56 = vsel %vm539_vm2, %v6972_v19, %v536_v46  ;;  %v613_v3 = vmul.f32 %v596_v47, %v587_v39  ;;  %v605_v27 = vmul.f32 %v604_v15, %v587_v39  ;;  %v6604_v39 = vld [vmem:[%s9910_s2 + $0x28] sm:$0xff]  ;;  %v6605_v46 = vld [vmem:[%s9910_s2 + $0x30] sm:$0xff] }
 0x318   :  { %v548_v62 = vmul.f32 %v540_v56, %v7278_v40  ;;  %v560_v63 = vmul.f32 %v556_v54, %v540_v56  ;;  %v597_v26 = vmul.f32 %v596_v47, %v575_v13  ;;  %v621_v28 = vmul.f32 %v604_v15, %v575_v13 }
 0x319   :  { %v615_v8 = vadd.f32 %v613_v3, %v611_v6  ;;  %v607_v38 = vadd.f32 %v605_v27, %v602_v30 }
 0x31a   :  { %v552_v4 = vsel %vm544_vm3, 1.0, %v548_v62  ;;  %v564_v5 = vsel %vm544_vm3, 0.0, %v560_v63  ;;  %v599_v37 = vadd.f32 %v597_v26, %v594_v29 }
 0x31b   :  { %v568_v7 = vmul.f32 %v552_v4, %v7200_v55  ;;  %v572_v9 = vmul.f32 %v564_v5, %v7196_v53  ;;  %v580_v10 = vmul.f32 %v564_v5, %v7200_v55  ;;  %v584_v40 = vmul.f32 %v552_v4, %v7196_v53 }
 0x31c   :  { %v619_v25 = vadd.f32 %v617_v16, %v615_v8  ;;  %v609_v43 = vsub.f32 %v599_v37, %v607_v38 }
 0x31d   :  { %v588_v12 = vadd.f32 %v584_v40, %v580_v10  ;;  %v576_v14 = vsub.f32 %v568_v7, %v572_v9 }
 0x31e   :  { %v623_v35 = vadd.f32 %v621_v28, %v619_v25 }
 0x31f   :  { %v614_v18 = vmul.f32 %v596_v47, %v588_v12  ;;  %v598_v19 = vmul.f32 %v596_v47, %v576_v14  ;;  %v606_v20 = vmul.f32 %v604_v15, %v588_v12  ;;  %v622_v32 = vmul.f32 %v604_v15, %v576_v14  ;;  %v6606_v47 = vld [vmem:[%s9910_s2 + $0x38] sm:$0xff] }
 0x321   :  { %v616_v24 = vadd.f32 %v614_v18, %v612_v17  ;;  %v600_v33 = vadd.f32 %v598_v19, %v595_v22  ;;  %v608_v34 = vadd.f32 %v606_v20, %v603_v23 }
 0x323   :  { %v620_v31 = vadd.f32 %v618_v21, %v616_v24  ;;  %v610_v42 = vsub.f32 %v600_v33, %v608_v34 }
 0x325   :  { %v624_v36 = vadd.f32 %v622_v32, %v620_v31  ;;  %v625_v44 = vpack.c.bf16 %v610_v42, %v609_v43  ;;  %v6608_v42 = vld [vmem:[%s9911_s3 + $0x28] sm:$0xff]  ;;  %v6609_v43 = vld [vmem:[%s9911_s3 + $0x30] sm:$0xff] }
 0x327   :  { %v626_v41 = vpack.c.bf16 %v624_v36, %v623_v35 }
 0x329   :  { %674 = vmatpush.bf16.msrb.mxu1 %v626_v41  ;;  %v6607_v41 = vld [vmem:[%s9911_s3 + $0x20] sm:$0xff] }
 0x32d   :  { %675 = vmatpush.bf16.msrb.mxu1 %v625_v44  ;;  %v6610_v44 = vld [vmem:[%s9911_s3 + $0x38] sm:$0xff]  ;;  %s4875_s3 = sld [smem:[#allocation2 + $0x81]] }
 0x330   :  { %4842 = vmatmul.msk.bf16.vlgmr.msrb.gmra.mxu1 %vm228_vm0, %v6603_v45 }
 0x340   :  { %4843 = vmatmul.msk.bf16.gmra.mxu1 %vm228_vm0, %v6604_v39 }
 0x350   :  { %4844 = vmatmul.msk.bf16.gmra.mxu1 %vm228_vm0, %v6605_v46 }
 0x360   :  { %4845 = vmatmul.msk.bf16.gmra.mxu1 %vm228_vm0, %v6606_v47 }
 0x3ad   :  { %v677_v48 = vpop.f32.mrf.mxu1 }
 0x3ae   :  { %v697_v62 = vmul.f32 %v677_v48, %v677_v48 }
 0x3b5   :  { %v679_v49 = vpop.f32.mrf.mxu1 }
 0x3b6   :  { %v698_v59 = vmul.f32 %v679_v49, %v679_v49 }
 0x3bd   :  { %v682_v50 = vpop.f32.mrf.mxu1 }
 0x3be   :  { %v699_v63 = vmul.f32 %v682_v50, %v682_v50 }
 0x3c5   :  { %v684_v54 = vpop.f32.mrf.mxu1 }
 0x3c6   :  { %v700_v9 = vmul.f32 %v684_v54, %v684_v54 }
 0x3cd   :  { %v687_v56 = vpop.f32.mrf.mxu1 }
 0x3ce   :  { %v701_v60 = vmul.f32 %v687_v56, %v687_v56 }
 0x3d0   :  { %v705_v3 = vadd.f32 %v701_v60, %v697_v62 }
 0x3d2   :  { %v709_v6 = vadd.f32 1e-12, %v705_v3 }
 0x3d5   :  { %v689_v57 = vpop.f32.mrf.mxu1 }
 0x3d6   :  { %v702_v58 = vmul.f32 %v689_v57, %v689_v57 }
 0x3d8   :  { %v706_v0 = vadd.f32 %v702_v58, %v698_v59 }
 0x3da   :  { %v710_v4 = vadd.f32 1e-12, %v706_v0 }
 0x3dd   :  { %v692_v61 = vpop.f32.mrf.mxu1 }
 0x3de   :  { %v703_v1 = vmul.f32 %v692_v61, %v692_v61 }
 0x3e0   :  { %v707_v2 = vadd.f32 %v703_v1, %v699_v63 }
 0x3e2   :  { %v711_v5 = vadd.f32 1e-12, %v707_v2 }
 0x3e4   :  { %6973 = vlog2.f32 %v711_v5 }
 0x3e5   :  { %v694_v7 = vpop.f32.mrf.mxu1  ;;  %6975 = vlog2.f32 %v710_v4 }
 0x3e6   :  { %v704_v10 = vmul.f32 %v694_v7, %v694_v7  ;;  %6977 = vlog2.f32 %v709_v6 }
 0x3e8   :  { %v708_v40 = vadd.f32 %v704_v10, %v700_v9 }
 0x3ea   :  { %v6974_v11 = vpop.eup %6973  ;;  %v712_v12 = vadd.f32 1e-12, %v708_v40 }
 0x3eb   :  { %v6976_v13 = vpop.eup %6975  ;;  %v718_v14 = vmul.f32 0.6931472, %v6974_v11 }
 0x3ec   :  { %6979 = vlog2.f32 %v712_v12  ;;  %v6978_v8 = vpop.eup %6977  ;;  %v716_v15 = vmul.f32 0.6931472, %v6976_v13 }
 0x3ed   :  { %v714_v16 = vmul.f32 0.6931472, %v6978_v8  ;;  %v723_v17 = vadd.f32 1.0, %v718_v14 }
 0x3ee   :  { %v722_v19 = vadd.f32 1.0, %v716_v15 }
 0x3ef   :  { %v721_v21 = vadd.f32 1.0, %v714_v16  ;;  %v731_v22 = vmul.f32 %v723_v17, %v692_v61  ;;  %v727_v34 = vmul.f32 %v723_v17, %v682_v50 }
 0x3f0   :  { %v730_v24 = vmul.f32 %v722_v19, %v689_v57  ;;  %v726_v36 = vmul.f32 %v722_v19, %v679_v49 }
 0x3f1   :  { %v729_v26 = vmul.f32 %v721_v21, %v687_v56  ;;  %v735_v27 = vsub.f32 0.0, %v731_v22  ;;  %v725_v37 = vmul.f32 %v721_v21, %v677_v48 }
 0x3f2   :  { %v6980_v18 = vpop.eup %6979  ;;  %v734_v30 = vsub.f32 0.0, %v730_v24 }
 0x3f3   :  { %v720_v20 = vmul.f32 0.6931472, %v6980_v18  ;;  %v733_v31 = vsub.f32 0.0, %v729_v26  ;;  %v737_v38 = vpack.c.bf16 %v726_v36, %v725_v37 }
 0x3f5   :  { %v724_v23 = vadd.f32 1.0, %v720_v20  ;;  %v739_v32 = vpack.c.bf16 %v734_v30, %v733_v31 }
 0x3f7   :  { %v732_v25 = vmul.f32 %v724_v23, %v694_v7  ;;  %v728_v33 = vmul.f32 %v724_v23, %v684_v54 }
 0x3f9   :  { %v736_v28 = vsub.f32 0.0, %v732_v25  ;;  %v738_v35 = vpack.c.bf16 %v728_v33, %v727_v34 }
 0x3fb   :  { %v740_v29 = vpack.c.bf16 %v736_v28, %v735_v27 }
 0x3fd   :  { %786 = vmatpush.bf16.msrb.mxu2 %v740_v29 }
 0x401   :  { %787 = vmatpush.bf16.msrb.mxu2 %v739_v32 }
 0x405   :  { %788 = vmatpush.bf16.msrb.mxu2 %v738_v35 }
 0x409   :  { %789 = vmatpush.bf16.msrb.mxu2 %v737_v38 }
 0x40c   :  { %4870 = vmatmul.msk.bf16.vlgmr.msrb.gmra.mxu2 %vm342_vm1, %v6607_v41 }
 0x41c   :  { %4871 = vmatmul.msk.bf16.gmra.mxu2 %vm342_vm1, %v6608_v42 }
 0x42c   :  { %4872 = vmatmul.msk.bf16.gmra.mxu2 %vm342_vm1, %v6609_v43 }
 0x43c   :  { %4873 = vmatmul.msk.bf16.gmra.mxu2 %vm342_vm1, %v6610_v44 }
 0x48f   :  { %v791_v45 = vpop.f32.mrf.mxu2 }
 0x490   :  { %v811_v54 = vmul.f32 %v791_v45, %v7192_v51  ;;  %v827_v10 = vmul.f32 %v791_v45, %v7194_v52 }
 0x497   :  { %v793_v39 = vpop.f32.mrf.mxu2 }
 0x498   :  { %v812_v56 = vmul.f32 %v793_v39, %v7200_v55  ;;  %v828_v7 = vmul.f32 %v793_v39, %v7196_v53 }
 0x49f   :  { %v796_v46 = vpop.f32.mrf.mxu2 }
 0x4a0   :  { %v813_v0 = vmul.f32 %v796_v46, %v7192_v51  ;;  %v829_v15 = vmul.f32 %v796_v46, %v7194_v52 }
 0x4a7   :  { %v798_v47 = vpop.f32.mrf.mxu2 }
 0x4a8   :  { %v814_v1 = vmul.f32 %v798_v47, %v7200_v55  ;;  %v830_v14 = vmul.f32 %v798_v47, %v7196_v53 }
 0x4af   :  { %v801_v48 = vpop.f32.mrf.mxu2 }
 0x4b0   :  { %v815_v49 = vmul.f32 %v801_v48, %v7194_v52  ;;  %v823_v9 = vmul.f32 %v801_v48, %v7192_v51 }
 0x4b2   :  { %v819_v58 = vsub.f32 %v811_v54, %v815_v49  ;;  %v831_v11 = vadd.f32 %v827_v10, %v823_v9 }
 0x4b7   :  { %v803_v50 = vpop.f32.mrf.mxu2 }
 0x4b8   :  { %v816_v57 = vmul.f32 %v803_v50, %v7196_v53  ;;  %v824_v6 = vmul.f32 %v803_v50, %v7200_v55 }
 0x4ba   :  { %v820_v59 = vsub.f32 %v812_v56, %v816_v57  ;;  %v832_v40 = vadd.f32 %v828_v7, %v824_v6 }
 0x4bc   :  { %v835_v60 = vpack.c.bf16 %v820_v59, %v819_v58  ;;  %v837_v12 = vpack.c.bf16 %v832_v40, %v831_v11 }
 0x4be   :  { %847 = vmatmul.bf16.vlgmr.msrb.gmra.mxu3 %v835_v60 }
 0x4bf   :  { %v806_v61 = vpop.f32.mrf.mxu2 }
 0x4c0   :  { %v817_v62 = vmul.f32 %v806_v61, %v7194_v52  ;;  %v825_v8 = vmul.f32 %v806_v61, %v7192_v51 }
 0x4c2   :  { %v821_v2 = vsub.f32 %v813_v0, %v817_v62  ;;  %v833_v17 = vadd.f32 %v829_v15, %v825_v8 }
 0x4c7   :  { %v808_v63 = vpop.f32.mrf.mxu2 }
 0x4c8   :  { %v818_v3 = vmul.f32 %v808_v63, %v7196_v53  ;;  %v826_v13 = vmul.f32 %v808_v63, %v7200_v55 }
 0x4ca   :  { %v822_v4 = vsub.f32 %v814_v1, %v818_v3  ;;  %v834_v16 = vadd.f32 %v830_v14, %v826_v13 }
 0x4cc   :  { %v836_v5 = vpack.c.bf16 %v822_v4, %v821_v2  ;;  %v838_v18 = vpack.c.bf16 %v834_v16, %v833_v17 }
 0x4ce   :  { %852 = vmatmul.bf16.gmra.mxu3 %v836_v5 }
 0x4de   :  { %857 = vmatmul.bf16.gmra.mxu3 %v837_v12 }
 0x4ee   :  { %862 = vmatmul.bf16.gmra.mxu3 %v838_v18 }
 0x541   :  { %v848_v19 = vpop.f32.mrf.mxu3 }
 0x542   :  { %v868_v24 = vmul.f32 %v848_v19, %v848_v19 }
 0x549   :  { %v7373_v20 = vpop.f32.mrf.mxu3 }
 0x54a   :  { %v869_v28 = vmul.f32 %v7373_v20, %v7373_v20 }
 0x551   :  { %v7375_v21 = vpop.f32.mrf.mxu3 }
 0x552   :  { %v870_v35 = vmul.f32 %v7375_v21, %v7375_v21 }
 0x559   :  { %v7377_v22 = vpop.f32.mrf.mxu3 }
 0x55a   :  { %v871_v46 = vmul.f32 %v7377_v22, %v7377_v22 }
 0x561   :  { %v858_v23 = vpop.f32.mrf.mxu3 }
 0x562   :  { %v872_v25 = vmul.f32 %v858_v23, %v858_v23  ;;  %v932_v59 = vsub.f32 0.0, %v858_v23 }
 0x564   :  { %v876_v26 = vadd.f32 %v872_v25, %v868_v24 }
 0x566   :  { %6981 = vrsqrt.f32 %v876_v26  ;;  %vm886_vm4 = vweird.f32 %v876_v26  ;;  %vm920_vm11 = vcmp.eq.f32.partialorder %v876_v26, 0.0 }
 0x569   :  { %v860_v27 = vpop.f32.mrf.mxu3 }
 0x56a   :  { %v873_v29 = vmul.f32 %v860_v27, %v860_v27  ;;  %v933_v5 = vsub.f32 0.0, %v860_v27 }
 0x56c   :  { %v6982_v30 = vpop.eup %6981  ;;  %v7381_v31 = vadd.f32 %v873_v29, %v869_v28  ;;  %v975_v28 = vstv %s4875_s3 }
 0x56d   :  { %v881_v32 = vmul.f32 %v6982_v30, %v876_v26  ;;  %vm887_vm1 = vweird.f32 %v6982_v30 }
 0x56e   :  { %6983 = vrsqrt.f32 %v7381_v31  ;;  %vm888_vm5 = vmor %vm886_vm4, %vm887_vm1  ;;  %vm896_vm7 = vweird.f32 %v7381_v31  ;;  %vm921_vm13 = vcmp.eq.f32.partialorder %v7381_v31, 0.0 }
 0x56f   :  { %v882_v33 = vmul.f32 %v6982_v30, %v881_v32 }
 0x571   :  { %v863_v34 = vpop.f32.mrf.mxu3  ;;  %v883_v38 = vmul.f32 0.5, %v882_v33 }
 0x572   :  { %v874_v36 = vmul.f32 %v863_v34, %v863_v34  ;;  %v934_v6 = vsub.f32 0.0, %v863_v34 }
 0x573   :  { %v884_v44 = vsub.f32 1.5, %v883_v38 }
 0x574   :  { %v6984_v37 = vpop.eup %6983  ;;  %v878_v41 = vadd.f32 %v874_v36, %v870_v35  ;;  %v972_v35 = vstv %s7398_s23  ;;  %v980_v36 = vstv %s7400_s24 }
 0x575   :  { %v891_v42 = vmul.f32 %v6984_v37, %v7381_v31  ;;  %v885_v49 = vmul.f32 %v6982_v30, %v884_v44  ;;  %vm897_vm6 = vweird.f32 %v6984_v37 }
 0x576   :  { %6985 = vrsqrt.f32 %v878_v41  ;;  %vm898_vm9 = vmor %vm896_vm7, %vm897_vm6  ;;  %vm906_vm10 = vweird.f32 %v878_v41  ;;  %vm922_vm14 = vcmp.eq.f32.partialorder %v878_v41, 0.0 }
 0x577   :  { %v892_v43 = vmul.f32 %v6984_v37, %v891_v42  ;;  %v889_v58 = vsel %vm888_vm5, %v6982_v30, %v885_v49 }
 0x578   :  { %v924_v62 = vmul.f32 %v889_v58, %v848_v19  ;;  %v936_v63 = vmul.f32 %v932_v59, %v889_v58 }
 0x579   :  { %v893_v45 = vmul.f32 0.5, %v892_v43  ;;  %v7387_v39 = vpop.f32.mrf.mxu3 }
 0x57a   :  { %v875_v47 = vmul.f32 %v7387_v39, %v7387_v39  ;;  %v928_v7 = vsel %vm920_vm11, 1.0, %v924_v62  ;;  %v940_v9 = vsel %vm920_vm11, 0.0, %v936_v63  ;;  %v935_v33 = vsub.f32 0.0, %v7387_v39 }
 0x57b   :  { %v894_v54 = vsub.f32 1.5, %v893_v45  ;;  %v944_v15 = vmul.f32 %v928_v7, %v7192_v51  ;;  %v948_v16 = vmul.f32 %v940_v9, %v7194_v52  ;;  %v956_v19 = vmul.f32 %v940_v9, %v7192_v51 }
 0x57c   :  { %v6986_v48 = vpop.eup %6985  ;;  %v7393_v50 = vadd.f32 %v875_v47, %v871_v46  ;;  %v960_v23 = vmul.f32 %v928_v7, %v7194_v52  ;;  %v983_v62 = vstv %s4877_s25 }
 0x57d   :  { %v901_v56 = vmul.f32 %v6986_v48, %v878_v41  ;;  %v895_v60 = vmul.f32 %v6984_v37, %v894_v54  ;;  %vm907_vm8 = vweird.f32 %v6986_v48  ;;  %v952_v34 = vsub.f32 %v944_v15, %v948_v16 }
 0x57e   :  { %6987 = vrsqrt.f32 %v7393_v50  ;;  %vm908_vm12 = vmor %vm906_vm10, %vm907_vm8  ;;  %vm916_vm2 = vweird.f32 %v7393_v50  ;;  %v964_v30 = vadd.f32 %v960_v23, %v956_v19  ;;  %vm923_vm1 = vcmp.eq.f32.partialorder %v7393_v50, 0.0 }
 0x57f   :  { %v902_v57 = vmul.f32 %v6986_v48, %v901_v56  ;;  %v899_v3 = vsel %vm898_vm9, %v6984_v37, %v895_v60 }
 0x580   :  { %v925_v11 = vmul.f32 %v899_v3, %v7373_v20  ;;  %v937_v12 = vmul.f32 %v933_v5, %v899_v3  ;;  %v990_v47 = vmul.f32 %v972_v35, %v964_v30 }
 0x581   :  { %v903_v61 = vmul.f32 0.5, %v902_v57 }
 0x582   :  { %v941_v25 = vsel %vm921_vm13, 0.0, %v937_v12 }
 0x583   :  { %v904_v0 = vsub.f32 1.5, %v903_v61  ;;  %v957_v31 = vmul.f32 %v941_v25, %v7200_v55  ;;  %v949_v41 = vmul.f32 %v941_v25, %v7196_v53  ;;  %v996_v61 = vmul.f32 %v980_v36, %v952_v34  ;;  %v6614_v25 = vld [vmem:[%s9913_s5 + $0x18] sm:$0xff] }
 0x584   :  { %v6988_v1 = vpop.eup %6987 }
 0x585   :  { %v905_v2 = vmul.f32 %v6986_v48, %v904_v0  ;;  %v911_v4 = vmul.f32 %v6988_v1, %v7393_v50  ;;  %vm917_vm15 = vweird.f32 %v6988_v1 }
 0x586   :  { %vm918_vm3 = vmor %vm916_vm2, %vm917_vm15 }
 0x587   :  { %v909_v10 = vsel %vm908_vm12, %v6986_v48, %v905_v2  ;;  %v912_v40 = vmul.f32 %v6988_v1, %v911_v4 }
 0x588   :  { %v926_v13 = vmul.f32 %v909_v10, %v7375_v21  ;;  %v938_v14 = vmul.f32 %v934_v6, %v909_v10  ;;  %v929_v21 = vsel %vm921_vm13, 1.0, %v925_v11  ;;  %v981_v10 = vmul.f32 %v980_v36, %v964_v30 }
 0x589   :  { %v913_v8 = vmul.f32 0.5, %v912_v40  ;;  %v961_v32 = vmul.f32 %v929_v21, %v7196_v53  ;;  %v945_v38 = vmul.f32 %v929_v21, %v7200_v55  ;;  %v6613_v21 = vld [vmem:[%s9913_s5 + $0x10] sm:$0xff] }
 0x58a   :  { %v930_v17 = vsel %vm922_vm14, 1.0, %v926_v13  ;;  %v942_v18 = vsel %vm922_vm14, 0.0, %v938_v14 }
 0x58b   :  { %v958_v20 = vmul.f32 %v942_v18, %v7192_v51  ;;  %v962_v24 = vmul.f32 %v930_v17, %v7194_v52  ;;  %v914_v26 = vsub.f32 1.5, %v913_v8  ;;  %v946_v44 = vmul.f32 %v930_v17, %v7192_v51 }
 0x58c   :  { %v950_v45 = vmul.f32 %v942_v18, %v7194_v52  ;;  %v965_v39 = vadd.f32 %v961_v32, %v957_v31  ;;  %v953_v58 = vsub.f32 %v945_v38, %v949_v41 }
 0x58d   :  { %v966_v27 = vadd.f32 %v962_v24, %v958_v20  ;;  %v915_v29 = vmul.f32 %v6988_v1, %v914_v26  ;;  %v6611_v20 = vld [vmem:[%s9913_s5] sm:$0xff]  ;;  %v6612_v24 = vld [vmem:[%s9913_s5 + $0x8] sm:$0xff]  ;;  %s7014_s5 = smov 1  }
 0x58e   :  { %v954_v59 = vsub.f32 %v946_v44, %v950_v45  ;;  %v991_v50 = vmul.f32 %v972_v35, %v965_v39  ;;  %v997_v3 = vmul.f32 %v980_v36, %v953_v58  ;;  %v974_v2 = vmul.f32 %v972_v35, %v953_v58 }
 0x58f   :  { %v919_v37 = vsel %vm918_vm3, %v6988_v1, %v915_v29  ;;  %v992_v46 = vmul.f32 %v975_v28, %v966_v27  ;;  %v982_v4 = vmul.f32 %v980_v36, %v965_v39 }
 0x590   :  { %v927_v42 = vmul.f32 %v919_v37, %v7377_v22  ;;  %v939_v43 = vmul.f32 %v935_v33, %v919_v37  ;;  %v976_v7 = vmul.f32 %v975_v28, %v954_v59  ;;  %v1000_v9 = vmul.f32 %v983_v62, %v954_v59 }
 0x591   :  { %v994_v51 = vadd.f32 %v992_v46, %v990_v47 }
 0x592   :  { %v931_v48 = vsel %vm923_vm1, 1.0, %v927_v42  ;;  %v943_v49 = vsel %vm923_vm1, 0.0, %v939_v43 }
 0x593   :  { %v947_v54 = vmul.f32 %v931_v48, %v7200_v55  ;;  %v951_v56 = vmul.f32 %v943_v49, %v7196_v53  ;;  %v959_v57 = vmul.f32 %v943_v49, %v7200_v55  ;;  %v963_v22 = vmul.f32 %v931_v48, %v7196_v53 }
 0x594   :  { %v998_v6 = vadd.f32 %v996_v61, %v994_v51  ;;  %v984_v55 = vmul.f32 %v983_v62, %v966_v27  ;;  %v973_v53 = vmul.f32 %v972_v35, %v952_v34 }
 0x595   :  { %v955_v60 = vsub.f32 %v947_v54, %v951_v56  ;;  %v967_v52 = vadd.f32 %v963_v22, %v959_v57 }
 0x596   :  { %v1002_v14 = vadd.f32 %v1000_v9, %v998_v6  ;;  %v978_v15 = vadd.f32 %v976_v7, %v973_v53  ;;  %v986_v16 = vadd.f32 %v984_v55, %v981_v10 }
 0x597   :  { %v993_v63 = vmul.f32 %v975_v28, %v967_v52  ;;  %v977_v0 = vmul.f32 %v975_v28, %v955_v60  ;;  %v985_v1 = vmul.f32 %v983_v62, %v967_v52  ;;  %v1001_v11 = vmul.f32 %v983_v62, %v955_v60 }
 0x598   :  { %v988_v19 = vsub.f32 %v978_v15, %v986_v16 }
 0x599   :  { %v995_v5 = vadd.f32 %v993_v63, %v991_v50  ;;  %v979_v12 = vadd.f32 %v977_v0, %v974_v2  ;;  %v987_v13 = vadd.f32 %v985_v1, %v982_v4 }
 0x59b   :  { %v999_v40 = vadd.f32 %v997_v3, %v995_v5  ;;  %v989_v18 = vsub.f32 %v979_v12, %v987_v13 }
 0x59d   :  { %v1003_v8 = vadd.f32 %v1001_v11, %v999_v40  ;;  %v1004_v23 = vpack.c.bf16 %v989_v18, %v988_v19 }
 0x59f   :  { %v1005_v17 = vpack.c.bf16 %v1003_v8, %v1002_v14 }
 0x5a1   :  { %1052 = vmatpush.bf16.msra.mxu1 %v1005_v17 }
 0x5a5   :  { %1053 = vmatpush.bf16.msra.mxu1 %v1004_v23 }
 0x5a8   :  { %4894 = vmatmul.msk.bf16.vlgmr.msra.gmra.mxu1 %vm228_vm0, %v6611_v20 }
 0x5b8   :  { %4895 = vmatmul.msk.bf16.gmra.mxu1 %vm228_vm0, %v6612_v24 }
 0x5c8   :  { %4896 = vmatmul.msk.bf16.gmra.mxu1 %vm228_vm0, %v6613_v21 }
 0x5d8   :  { %4897 = vmatmul.msk.bf16.gmra.mxu1 %vm228_vm0, %v6614_v25 }
 0x625   :  { %v1055_v26 = vpop.f32.mrf.mxu1 }
 0x626   :  { %v1075_v36 = vmul.f32 %v1055_v26, %v1055_v26 }
 0x62d   :  { %v1057_v27 = vpop.f32.mrf.mxu1 }
 0x62e   :  { %v1076_v32 = vmul.f32 %v1057_v27, %v1057_v27 }
 0x635   :  { %v1060_v28 = vpop.f32.mrf.mxu1 }
 0x636   :  { %v1077_v41 = vmul.f32 %v1060_v28, %v1060_v28 }
 0x63d   :  { %v1062_v29 = vpop.f32.mrf.mxu1 }
 0x63e   :  { %v1078_v48 = vmul.f32 %v1062_v29, %v1062_v29 }
 0x645   :  { %v1065_v30 = vpop.f32.mrf.mxu1 }
 0x646   :  { %v1079_v35 = vmul.f32 %v1065_v30, %v1065_v30 }
 0x648   :  { %v7443_v37 = vadd.f32 %v1079_v35, %v1075_v36 }
 0x64a   :  { %vm1094_vm10 = vcmp.eq.f32.partialorder %v7443_v37, inf  ;;  %v1097_v19 = vand.u32 2147483648, %v7443_v37  ;;  %vm1096_vm11 = vcmp.eq.f32.partialorder %v7443_v37, 0.0 }
 0x64d   :  { %v1067_v31 = vpop.f32.mrf.mxu1 }
 0x64e   :  { %v1080_v33 = vmul.f32 %v1067_v31, %v1067_v31 }
 0x650   :  { %v1084_v34 = vadd.f32 %v1080_v33, %v1076_v32 }
 0x652   :  { %6989 = vrsqrt.f32 %v1084_v34  ;;  %vm1106_vm4 = vcmp.eq.f32.partialorder %v1084_v34, inf  ;;  %v1109_v61 = vand.u32 2147483648, %v1084_v34  ;;  %vm1108_vm5 = vcmp.eq.f32.partialorder %v1084_v34, 0.0 }
 0x653   :  { %6991 = vrsqrt.f32 %v7443_v37 }
 0x655   :  { %v1070_v38 = vpop.f32.mrf.mxu1 }
 0x656   :  { %v1081_v42 = vmul.f32 %v1070_v38, %v1070_v38 }
 0x658   :  { %v6990_v43 = vpop.eup %6989  ;;  %v1085_v44 = vadd.f32 %v1081_v42, %v1077_v41 }
 0x659   :  { %v1100_v45 = vmul.f32 %v6990_v43, %v1084_v34  ;;  %v6992_v54 = vpop.eup %6991 }
 0x65a   :  { %6993 = vrsqrt.f32 %v1085_v44  ;;  %v1088_v52 = vmul.f32 %v6992_v54, %v7443_v37  ;;  %vm1118_vm6 = vcmp.eq.f32.partialorder %v1085_v44, inf  ;;  %v1121_v55 = vand.u32 2147483648, %v1085_v44 }
 0x65b   :  { %v1101_v46 = vmul.f32 %v6990_v43, %v1100_v45  ;;  %vm1120_vm7 = vcmp.eq.f32.partialorder %v1085_v44, 0.0  ;;  %v1197_v45 = vld [vmem:[%s9916_s8 + $0x70] sm:$0xff] }
 0x65c   :  { %v1089_v1 = vmul.f32 %v6992_v54, %v1088_v52  ;;  %v1185_v52 = vld [vmem:[%s9916_s8 + $0x10] sm:$0xff] }
 0x65d   :  { %v1072_v47 = vpop.f32.mrf.mxu1  ;;  %v1102_v39 = vmul.f32 0.5, %v1101_v46  ;;  %v1196_v46 = vld [vmem:[%s9916_s8 + $0x68] sm:$0xff] }
 0x65e   :  { %v1082_v49 = vmul.f32 %v1072_v47, %v1072_v47  ;;  %v1090_v7 = vmul.f32 0.5, %v1089_v1  ;;  %v1195_v47 = vld [vmem:[%s9916_s8 + $0x60] sm:$0xff] }
 0x65f   :  { %v1103_v56 = vsub.f32 1.5, %v1102_v39  ;;  %v1194_v39 = vld [vmem:[%s9916_s8 + $0x58] sm:$0xff] }
 0x660   :  { %v6994_v57 = vpop.eup %6993  ;;  %v1086_v22 = vadd.f32 %v1082_v49, %v1078_v48  ;;  %v1091_v11 = vsub.f32 1.5, %v1090_v7  ;;  %v1193_v48 = vld [vmem:[%s9916_s8 + $0x50] sm:$0xff]  ;;  %v1192_v49 = vld [vmem:[%s9916_s8 + $0x48] sm:$0xff] }
 0x661   :  { %v1104_v58 = vmul.f32 %v6990_v43, %v1103_v56  ;;  %v1112_v59 = vmul.f32 %v6994_v57, %v1085_v44 }
 0x662   :  { %6995 = vrsqrt.f32 %v1086_v22  ;;  %v1092_v14 = vmul.f32 %v6992_v54, %v1091_v11  ;;  %vm1130_vm8 = vcmp.eq.f32.partialorder %v1086_v22, inf  ;;  %v1133_v8 = vand.u32 2147483648, %v1086_v22  ;;  %v1191_v54 = vld [vmem:[%s9916_s8 + $0x40] sm:$0xff] }
 0x663   :  { %v1105_v51 = vmul.f32 %v1104_v58, %v1084_v34  ;;  %v1113_v60 = vmul.f32 %v6994_v57, %v1112_v59  ;;  %vm1132_vm9 = vcmp.eq.f32.partialorder %v1086_v22, 0.0  ;;  %v1189_v58 = vld [vmem:[%s9916_s8 + $0x30] sm:$0xff]  ;;  %v1188_v59 = vld [vmem:[%s9916_s8 + $0x28] sm:$0xff] }
 0x664   :  { %v1093_v17 = vmul.f32 %v1092_v14, %v7443_v37 }
 0x665   :  { %v1107_v62 = vsel %vm1106_vm4, %v1084_v34, %v1105_v51  ;;  %v1114_v50 = vmul.f32 0.5, %v1113_v60  ;;  %v1187_v51 = vld [vmem:[%s9916_s8 + $0x20] sm:$0xff]  ;;  %v1186_v60 = vld [vmem:[%s9916_s8 + $0x18] sm:$0xff] }
 0x666   :  { %v7447_v63 = vsel %vm1108_vm5, %v1109_v61, %v1107_v62  ;;  %v1095_v18 = vsel %vm1094_vm10, %v7443_v37, %v1093_v17  ;;  %v1184_v61 = vld [vmem:[%s9916_s8 + $0x8] sm:$0xff] }
 0x667   :  { %1137 = vrot.lane.b32.xlu0 %v7447_v63, %s7014_s5  ;;  %v1115_v0 = vsub.f32 1.5, %v1114_v50  ;;  %v7464_v23 = vsel %vm1096_vm11, %v1097_v19, %v1095_v18 }
 0x668   :  { %v6996_v3 = vpop.eup %6995 }
 0x669   :  { %v1116_v2 = vmul.f32 %v6994_v57, %v1115_v0  ;;  %v1124_v4 = vmul.f32 %v6996_v3, %v1086_v22  ;;  %v1183_v0 = vld [vmem:[%s9916_s8] sm:$0xff] }
 0x66b   :  { %v1117_v5 = vmul.f32 %v1116_v2, %v1085_v44  ;;  %v1125_v6 = vmul.f32 %v6996_v3, %v1124_v4 }
 0x66d   :  { %v1119_v9 = vsel %vm1118_vm6, %v1085_v44, %v1117_v5  ;;  %v1126_v53 = vmul.f32 0.5, %v1125_v6  ;;  %v1198_v44 = vld [vmem:[%s9916_s8 + $0x78] sm:$0xff] }
 0x66e   :  { %v7451_v10 = vsel %vm1120_vm7, %v1121_v55, %v1119_v9  ;;  %6929 = vmatpush.msra.mxu2 %v1198_v44  ;;  %1199 = vmatpush.msra.mxu0 %v1198_v44 }
 0x66f   :  { %1139 = vrot.lane.b32.xlu0 %v7451_v10, %s7014_s5  ;;  %v1127_v40 = vsub.f32 1.5, %v1126_v53 }
 0x670   :  { %6930 = vmatpush.msra.mxu2 %v1197_v45  ;;  %1200 = vmatpush.msra.mxu0 %v1197_v45 }
 0x671   :  { %v1128_v12 = vmul.f32 %v6996_v3, %v1127_v40 }
 0x672   :  { %6931 = vmatpush.msra.mxu2 %v1196_v46  ;;  %1201 = vmatpush.msra.mxu0 %v1196_v46 }
 0x673   :  { %v1129_v13 = vmul.f32 %v1128_v12, %v1086_v22 }
 0x674   :  { %6932 = vmatpush.msra.mxu2 %v1195_v47  ;;  %1202 = vmatpush.msra.mxu0 %v1195_v47 }
 0x675   :  { %v1131_v15 = vsel %vm1130_vm8, %v1086_v22, %v1129_v13  ;;  %v1190_v22 = vld [vmem:[%s9916_s8 + $0x38] sm:$0xff] }
 0x676   :  { %v7455_v16 = vsel %vm1132_vm9, %v1133_v8, %v1131_v15  ;;  %6933 = vmatpush.msra.mxu2 %v1194_v39  ;;  %1203 = vmatpush.msra.mxu0 %v1194_v39 }
 0x677   :  { %1141 = vrot.lane.b32.xlu1 %v7455_v16, %s7014_s5 }
 0x678   :  { %6934 = vmatpush.msra.mxu2 %v1193_v48  ;;  %1204 = vmatpush.msra.mxu0 %v1193_v48 }
 0x67a   :  { %6935 = vmatpush.msra.mxu2 %v1192_v49  ;;  %1205 = vmatpush.msra.mxu0 %v1192_v49  ;;  %v1285_v49 = vld [vmem:[%s9915_s7 + $0x8] sm:$0xff] }
 0x67c   :  { %6936 = vmatpush.msra.mxu2 %v1191_v54  ;;  %1206 = vmatpush.msra.mxu0 %v1191_v54 }
 0x67e   :  { %6937 = vmatpush.msra.mxu2 %v1190_v22  ;;  %1207 = vmatpush.msra.mxu0 %v1190_v22  ;;  %v1284_v22 = vld [vmem:[%s9915_s7] sm:$0xff] }
 0x67f   :  { %1135 = vrot.lane.b32.xlu1 %v7464_v23, %s7014_s5 }
 0x680   :  { %6938 = vmatpush.msra.mxu2 %v1189_v58  ;;  %1208 = vmatpush.msra.mxu0 %v1189_v58  ;;  %v4910_v58 = vld [vmem:[%s9915_s7 + $0x20] sm:$0xff] }
 0x682   :  { %6939 = vmatpush.msra.mxu2 %v1188_v59  ;;  %1209 = vmatpush.msra.mxu0 %v1188_v59  ;;  %v4917_v59 = vld [vmem:[%s9915_s7 + $0x58] sm:$0xff] }
 0x684   :  { %6940 = vmatpush.msra.mxu2 %v1187_v51  ;;  %1210 = vmatpush.msra.mxu0 %v1187_v51  ;;  %v4916_v51 = vld [vmem:[%s9915_s7 + $0x50] sm:$0xff] }
 0x686   :  { %6941 = vmatpush.msra.mxu2 %v1186_v60  ;;  %1211 = vmatpush.msra.mxu0 %v1186_v60  ;;  %v4920_v60 = vld [vmem:[%s9915_s7 + $0x70] sm:$0xff] }
 0x688   :  { %6942 = vmatpush.msra.mxu2 %v1185_v52  ;;  %1212 = vmatpush.msra.mxu0 %v1185_v52 }
 0x68a   :  { %6943 = vmatpush.msra.mxu2 %v1184_v61  ;;  %1213 = vmatpush.msra.mxu0 %v1184_v61 }
 0x68c   :  { %6944 = vmatpush.msra.mxu2 %v1183_v0  ;;  %1214 = vmatpush.msra.mxu0 %v1183_v0 }
 0x6d9   :  { %v1138_v20 = vpop.permute.xlu0 %1137 }
 0x6da   :  { %v1144_v24 = vmax.f32 %v7447_v63, %v1138_v20 }
 0x6dc   :  { %1149 = vrot.lane.b32.xlu2 %v1144_v24, %s7015_s14 }
 0x6e1   :  { %v1140_v21 = vpop.permute.xlu0 %1139 }
 0x6e2   :  { %v1145_v25 = vmax.f32 %v7451_v10, %v1140_v21 }
 0x6e4   :  { %1151 = vrot.lane.b32.xlu2 %v1145_v25, %s7015_s14 }
 0x6e9   :  { %v1142_v26 = vpop.permute.xlu1 %1141 }
 0x6ea   :  { %v1146_v27 = vmax.f32 %v7455_v16, %v1142_v26 }
 0x6ec   :  { %1153 = vrot.lane.b32.xlu0 %v1146_v27, %s7015_s14 }
 0x6f1   :  { %v1136_v28 = vpop.permute.xlu1 %1135 }
 0x6f2   :  { %v1143_v29 = vmax.f32 %v7464_v23, %v1136_v28 }
 0x6f4   :  { %1147 = vrot.lane.b32.xlu1 %v1143_v29, %s7015_s14 }
 0x736   :  { %v1150_v30 = vpop.permute.xlu2 %1149 }
 0x737   :  { %v1156_v31 = vmax.f32 %v1144_v24, %v1150_v30 }
 0x739   :  { %1161 = vrot.lane.b32.xlu2 %v1156_v31, %s7016_s15 }
 0x73e   :  { %v1152_v32 = vpop.permute.xlu2 %1151 }
 0x73f   :  { %v1157_v33 = vmax.f32 %v1145_v25, %v1152_v32  ;;  %v6620_v32 = vld [vmem:[%s9914_s6 + $0x28] sm:$0xff] }
 0x741   :  { %1163 = vrot.lane.b32.xlu0 %v1157_v33, %s7016_s15 }
 0x75e   :  { %v1154_v34 = vpop.permute.xlu0 %1153 }
 0x75f   :  { %v1158_v35 = vmax.f32 %v1146_v27, %v1154_v34  ;;  %v1286_v34 = vld [vmem:[%s9915_s7 + $0x10] sm:$0xff] }
 0x761   :  { %1165 = vrot.lane.b32.xlu1 %v1158_v35, %s7016_s15 }
 0x766   :  { %v1148_v36 = vpop.permute.xlu1 %1147 }
 0x767   :  { %v1155_v37 = vmax.f32 %v1143_v29, %v1148_v36 }
 0x769   :  { %1159 = vrot.lane.b32.xlu2 %v1155_v37, %s7016_s15 }
 0x793   :  { %v1162_v38 = vpop.permute.xlu2 %1161 }
 0x794   :  { %v1168_v41 = vmax.f32 %v1156_v31, %v1162_v38  ;;  %v6619_v31 = vld [vmem:[%s9914_s6 + $0x20] sm:$0xff] }
 0x796   :  { %1173 = vrot.lane.b32.xlu0 %v1168_v41, %s7017_s16 }
 0x7b3   :  { %v1164_v42 = vpop.permute.xlu0 %1163 }
 0x7b4   :  { %v1169_v43 = vmax.f32 %v1157_v33, %v1164_v42  ;;  %v7018_v33 = vmov 0  }
 0x7b5   :  { %6955 = vset.pattern.permute.xlu2 %v7018_v33  ;;  %6954 = vset.pattern.permute.xlu1 %v7018_v33 }
 0x7b6   :  { %1175 = vrot.lane.b32.xlu1 %v1169_v43, %s7017_s16  ;;  %6956 = vset.pattern.permute.xlu0 %v7018_v33 }
 0x7be   :  { %1452 = vperm.xlu1 %6954, %v1286_v34  }
 0x7c3   :  { %v1160_v56 = vpop.permute.xlu2 %1159 }
 0x7c4   :  { %v1167_v57 = vmax.f32 %v1155_v37, %v1160_v56  ;;  %v4912_v37 = vld [vmem:[%s9915_s7 + $0x30] sm:$0xff]  ;;  %v4911_v56 = vld [vmem:[%s9915_s7 + $0x28] sm:$0xff] }
 0x7c6   :  { %1171 = vrot.lane.b32.xlu0 %v1167_v57, %s7017_s16  ;;  %1476 = vperm.xlu1 %6954, %v4912_v37  }
 0x7d3   :  { %v1166_v62 = vpop.permute.xlu1 %1165 }
 0x7d4   :  { %v1170_v50 = vmax.f32 %v1158_v35, %v1166_v62  ;;  %v1287_v35 = vld [vmem:[%s9915_s7 + $0x18] sm:$0xff] }
 0x7d6   :  { %1177 = vrot.lane.b32.xlu2 %v1170_v50, %s7017_s16 }
 0x7de   :  { %1457 = vperm.xlu2 %6955, %v1287_v35  }
 0x808   :  { %v1174_v1 = vpop.permute.xlu0 %1173 }
 0x809   :  { %v1180_v3 = vmax.f32 %v1168_v41, %v1174_v1 }
 0x80b   :  { %1218 = vmatmul.f32.vlgmr.msra.gmra.mxu2 %v1180_v3 }
 0x828   :  { %v1176_v2 = vpop.permute.xlu1 %1175 }
 0x829   :  { %v1181_v4 = vmax.f32 %v1169_v43, %v1176_v2 }
 0x82b   :  { %1221 = vmatmul.f32.gmra.mxu2 %v1181_v4 }
 0x830   :  { %v1178_v5 = vpop.permute.xlu2 %1177  ;;  %v1453_v52 = vpop.permute.xlu1 %1452 }
 0x831   :  { %v1182_v6 = vmax.f32 %v1170_v50, %v1178_v5 }
 0x833   :  { %1224 = vmatmul.f32.gmra.mxu2 %v1182_v6 }
 0x838   :  { %v1172_v7 = vpop.permute.xlu0 %1171  ;;  %v1458_v61 = vpop.permute.xlu2 %1457 }
 0x839   :  { %v1179_v55 = vmax.f32 %v1167_v57, %v1172_v7  ;;  %v4913_v57 = vld [vmem:[%s9915_s7 + $0x38] sm:$0xff]  ;;  %v1477_v62 = vpop.permute.xlu1 %1476 }
 0x83b   :  { %1215 = vmatmul.f32.vlgmr.msra.gmra.mxu0 %v1179_v55  ;;  %v1243_v55 = vlaneseq }
 0x88e   :  { %v1219_v9 = vpop.f32.mrf.mxu2 }
 0x8ae   :  { %v1222_v53 = vpop.f32.mrf.mxu2 }
 0x8b6   :  { %v1225_v40 = vpop.f32.mrf.mxu2 }
 0x8b7   :  { %v1229_v12 = vmax.f32 %v1222_v53, %v1225_v40  ;;  %v1244_v53 = vand.u32 127, %v1243_v55 }
 0x8b8   :  { %v1216_v11 = vpop.f32.mrf.mxu0 }
 0x8b9   :  { %v1228_v13 = vmax.f32 %v1216_v11, %v1219_v9 }
 0x8bb   :  { %v1230_v14 = vmax.f32 %v1228_v13, %v1229_v12  ;;  %v1249_v12 = vand.u32 15, %v1244_v53 }
 0x8bd   :  { %v1231_v8 = vrot.slane %v1230_v14, 4  ;;  %vm7621_vm12 = vcmp.eq.s32.totalorder %v1249_v12, 0  ;;  %vm7627_vm13 = vcmp.eq.s32.totalorder %v1249_v12, 15 }
 0x8bf   :  { %v1232_v15 = vmax.f32 %v1230_v14, %v1231_v8  ;;  %v6727_v14 = vld [vmem:[%s9917_s9 + $0x2c0] sm:$0xf0] }
 0x8c1   :  { %v1233_v17 = vrot.slane %v1232_v15, 2 }
 0x8c3   :  { %v1234_v18 = vmax.f32 %v1232_v15, %v1233_v17  ;;  %v5396_v15 = vld [vmem:[%s9917_s9 + $0x1e8] sm:$0xf] }
 0x8c5   :  { %v1235_v19 = vrot.slane %v1234_v18, 1 }
 0x8c7   :  { %v1236_v20 = vmax.f32 %v1234_v18, %v1235_v19 }
 0x8c9   :  { %v1237_v24 = vmax.f32 %v1236_v20, 1e-30 }
 0x8cb   :  { %6997 = vrcp.f32 %v1237_v24 }
 0x8d1   :  { %v6998_v21 = vpop.eup %6997 }
 0x8d2   :  { %v7525_v25 = vmul.f32 %v6998_v21, %v7451_v10  ;;  %v7528_v26 = vmul.f32 %v6998_v21, %v7455_v16  ;;  %v7533_v28 = vmul.f32 %v6998_v21, %v7464_v23  ;;  %v7536_v29 = vmul.f32 %v6998_v21, %v7447_v63  ;;  %v6615_v10 = vld [vmem:[%s9914_s6] sm:$0xff]  ;;  %v6616_v16 = vld [vmem:[%s9914_s6 + $0x8] sm:$0xff]  ;;  %v6617_v63 = vld [vmem:[%s9914_s6 + $0x10] sm:$0xff] }
 0x8d3   :  { %v6618_v23 = vld [vmem:[%s9914_s6 + $0x18] sm:$0xff] }
 0x8d4   :  { %v1304_v27 = vpack.c.bf16 %v7528_v26, %v7525_v25  ;;  %v1303_v30 = vpack.c.bf16 %v7536_v29, %v7533_v28 }
 0x8d6   :  { %1359 = vmatpush.bf16.msrb.mxu2 %v1304_v27 }
 0x8da   :  { %1360 = vmatpush.bf16.msrb.mxu2 %v1303_v30 }
 0x8dd   :  { %4946 = vmatmul.msk.bf16.vlgmr.msrb.gmra.mxu2 %vm228_vm0, %v6615_v10 }
 0x8ed   :  { %4947 = vmatmul.msk.bf16.gmra.mxu2 %vm228_vm0, %v6616_v16 }
 0x8fd   :  { %4948 = vmatmul.msk.bf16.gmra.mxu2 %vm228_vm0, %v6617_v63 }
 0x90d   :  { %4949 = vmatmul.msk.bf16.gmra.mxu2 %vm228_vm0, %v6618_v23 }
 0x91d   :  { %4950 = vmatmul.msk.bf16.gmra.mxu2 %vm228_vm0, %v6619_v31 }
 0x92d   :  { %4951 = vmatmul.msk.bf16.gmra.mxu2 %vm228_vm0, %v6620_v32 }
 0x960   :  { %v7570_v36 = vpop.f32.mrf.mxu2 }
 0x968   :  { %v7575_v38 = vpop.f32.mrf.mxu2 }
 0x970   :  { %v7577_v41 = vpop.f32.mrf.mxu2 }
 0x978   :  { %v7579_v42 = vpop.f32.mrf.mxu2 }
 0x980   :  { %v1372_v43 = vpop.f32.mrf.mxu2 }
 0x981   :  { %1400 = vrot.lane.b32.xlu2 %v1372_v43, %s7014_s5  ;;  %1392 = vrot.lane.b32.xlu0 %v1372_v43, %s7019_s1 }
 0x988   :  { %v1374_v44 = vpop.f32.mrf.mxu2 }
 0x989   :  { %1402 = vrot.lane.b32.xlu0 %v1374_v44, %s7014_s5  ;;  %1394 = vrot.lane.b32.xlu1 %v1374_v44, %s7019_s1 }
 0x990   :  { %v1377_v45 = vpop.f32.mrf.mxu2 }
 0x991   :  { %1404 = vrot.lane.b32.xlu0 %v1377_v45, %s7014_s5  ;;  %1396 = vrot.lane.b32.xlu1 %v1377_v45, %s7019_s1 }
 0x998   :  { %v1379_v46 = vpop.f32.mrf.mxu2 }
 0x999   :  { %1406 = vrot.lane.b32.xlu1 %v1379_v46, %s7014_s5  ;;  %1398 = vrot.lane.b32.xlu2 %v1379_v46, %s7019_s1 }
 0x9a0   :  { %v1382_v47 = vpop.f32.mrf.mxu2 }
 0x9a1   :  { %1424 = vrot.lane.b32.xlu2 %v1382_v47, %s7020_s17  ;;  %1416 = vrot.lane.b32.xlu0 %v1382_v47, %s7021_s18 }
 0x9a8   :  { %v1384_v39 = vpop.f32.mrf.mxu2 }
 0x9a9   :  { %1426 = vrot.lane.b32.xlu0 %v1384_v39, %s7020_s17  ;;  %1418 = vrot.lane.b32.xlu1 %v1384_v39, %s7021_s18 }
 0x9b0   :  { %v1387_v48 = vpop.f32.mrf.mxu2 }
 0x9b1   :  { %1428 = vrot.lane.b32.xlu1 %v1387_v48, %s7020_s17  ;;  %1420 = vrot.lane.b32.xlu2 %v1387_v48, %s7021_s18 }
 0x9b8   :  { %v1389_v54 = vpop.f32.mrf.mxu2 }
 0x9b9   :  { %1447 = vperm.xlu1 %6954, %v1285_v49   ;;  %1430 = vrot.lane.b32.xlu2 %v1389_v54, %s7020_s17 }
 0x9ba   :  { %1422 = vrot.lane.b32.xlu0 %v1389_v54, %s7021_s18 }
 0x9c1   :  { %1471 = vperm.xlu1 %6954, %v4911_v56   ;;  %1481 = vperm.xlu2 %6955, %v4913_v57  }
 0x9c2   :  { %1442 = vperm.xlu0 %6956, %v1284_v22  }
 0x9c9   :  { %1466 = vperm.xlu2 %6955, %v4910_v58  }
 0x9ca   :  { %1646 = vperm.xlu0 %6956, %v4917_v59  }
 0x9d1   :  { %1641 = vperm.xlu2 %6955, %v4916_v51  }
 0x9d9   :  { %1665 = vperm.xlu2 %6955, %v4920_v60  }
 0x9db   :  { %v1401_v50 = vpop.permute.xlu2 %1400 }
 0x9f3   :  { %v1393_v0 = vpop.permute.xlu0 %1392  ;;  %v1399_v3 = vpop.permute.xlu2 %1398 }
 0x9f4   :  { %v1408_v32 = vsel %vm7621_vm12, %v1393_v0, %v1401_v50  ;;  %v6625_v50 = vld [vmem:[%s9914_s6 + $0x50] sm:$0xff]  ;;  %v6626_v0 = vld [vmem:[%s9914_s6 + $0x58] sm:$0xff] }
 0x9f5   :  { %v1412_v43 = vadd.f32 %v1408_v32, %v7570_v36  ;;  %v6621_v36 = vld [vmem:[%s9914_s6 + $0x30] sm:$0xff] }
 0x9fb   :  { %v1395_v1 = vpop.permute.xlu1 %1394  ;;  %v1403_v2 = vpop.permute.xlu0 %1402 }
 0x9fc   :  { %v1425_v5 = vpop.permute.xlu2 %1424  ;;  %v1409_v30 = vsel %vm7621_vm12, %v1395_v1, %v1403_v2 }
 0x9fd   :  { %v1413_v35 = vadd.f32 %v1409_v30, %v7575_v38 }
 0xa03   :  { %v1397_v4 = vpop.permute.xlu1 %1396  ;;  %v1405_v6 = vpop.permute.xlu0 %1404 }
 0xa04   :  { %v1410_v8 = vsel %vm7621_vm12, %v1397_v4, %v1405_v6 }
 0xa05   :  { %v1414_v20 = vadd.f32 %v1410_v8, %v7577_v41  ;;  %v4921_v8 = vld [vmem:[%s9915_s7 + $0x78] sm:$0xff] }
 0xa0b   :  { %v1407_v7 = vpop.permute.xlu1 %1406  ;;  %v1421_v9 = vpop.permute.xlu2 %1420 }
 0xa0c   :  { %v1411_v21 = vsel %vm7621_vm12, %v1399_v3, %v1407_v7 }
 0xa0d   :  { %v1415_v10 = vadd.f32 %v1411_v21, %v7579_v42 }
 0xa13   :  { %v1417_v40 = vpop.permute.xlu0 %1416  ;;  %v1431_v13 = vpop.permute.xlu2 %1430 }
 0xa14   :  { %v1432_v37 = vsel %vm7627_vm13, %v1417_v40, %v1425_v5 }
 0xa15   :  { %v1436_v47 = vadd.f32 %v1432_v37, %v1412_v43 }
 0xa1b   :  { %v1419_v11 = vpop.permute.xlu1 %1418  ;;  %v1427_v17 = vpop.permute.xlu0 %1426 }
 0xa1c   :  { %v1482_v27 = vpop.permute.xlu2 %1481  ;;  %v1433_v33 = vsel %vm7627_vm13, %v1419_v11, %v1427_v17  ;;  %v4915_v11 = vld [vmem:[%s9915_s7 + $0x48] sm:$0xff]  ;;  %v4914_v17 = vld [vmem:[%s9915_s7 + $0x40] sm:$0xff] }
 0xa1d   :  { %v1437_v44 = vadd.f32 %v1433_v33, %v1413_v35 }
 0xa23   :  { %v1429_v18 = vpop.permute.xlu1 %1428 }
 0xa24   :  { %v1434_v19 = vsel %vm7627_vm13, %v1421_v9, %v1429_v18  ;;  %v1467_v22 = vpop.permute.xlu2 %1466  ;;  %v5012_v18 = vld [vmem:[%s9915_s7 + $0xb0] sm:$0xff] }
 0xa25   :  { %v1438_v24 = vadd.f32 %v1434_v19, %v1414_v20  ;;  %v4918_v19 = vld [vmem:[%s9915_s7 + $0x60] sm:$0xff]  ;;  %v4919_v20 = vld [vmem:[%s9915_s7 + $0x68] sm:$0xff] }
 0xa27   :  { %v1462_v16 = vmul.f32 %v1453_v52, %v1438_v24  ;;  %v6622_v52 = vld [vmem:[%s9914_s6 + $0x38] sm:$0xff] }
 0xa28   :  { %v5009_v24 = vld [vmem:[%s9915_s7 + $0x98] sm:$0xff] }
 0xa29   :  { %v1486_v41 = vadd.f32 %v1477_v62, %v1462_v16  ;;  %v6624_v62 = vld [vmem:[%s9914_s6 + $0x48] sm:$0xff] }
 0xa2b   :  { %v1448_v23 = vpop.permute.xlu1 %1447  ;;  %v1490_v39 = vmax.f32 %v1486_v41, 0.0 }
 0xa2c   :  { %v1423_v63 = vpop.permute.xlu0 %1422  ;;  %v1461_v46 = vmul.f32 %v1448_v23, %v1437_v44  ;;  %v1642_v21 = vpop.permute.xlu2 %1641 }
 0xa2d   :  { %v1435_v31 = vsel %vm7627_vm13, %v1423_v63, %v1431_v13  ;;  %v5008_v13 = vld [vmem:[%s9915_s7 + $0x90] sm:$0xff] }
 0xa2e   :  { %v1439_v34 = vadd.f32 %v1435_v31, %v1415_v10 }
 0xa30   :  { %v1463_v42 = vmul.f32 %v1458_v61, %v1439_v34  ;;  %v6623_v61 = vld [vmem:[%s9914_s6 + $0x40] sm:$0xff] }
 0xa32   :  { %v1487_v45 = vadd.f32 %v1482_v27, %v1463_v42 }
 0xa33   :  { %v1472_v54 = vpop.permute.xlu1 %1471 }
 0xa34   :  { %v1491_v48 = vmax.f32 %v1487_v45, 0.0  ;;  %v1443_v49 = vpop.permute.xlu0 %1442  ;;  %v1485_v57 = vadd.f32 %v1472_v54, %v1461_v46  ;;  %v1666_v27 = vpop.permute.xlu2 %1665 }
 0xa35   :  { %v1460_v56 = vmul.f32 %v1443_v49, %v1436_v47 }
 0xa36   :  { %v1493_v58 = vpack.c.bf16 %v1491_v48, %v1490_v39  ;;  %v1489_v51 = vmax.f32 %v1485_v57, 0.0 }
 0xa37   :  { %v1484_v38 = vadd.f32 %v1467_v22, %v1460_v56 }
 0xa38   :  { %1548 = vmatpush.bf16.msra.mxu3 %v1493_v58 }
 0xa39   :  { %v1488_v59 = vmax.f32 %v1484_v38, 0.0 }
 0xa3b   :  { %v1492_v60 = vpack.c.bf16 %v1489_v51, %v1488_v59 }
 0xa3c   :  { %v1647_v16 = vpop.permute.xlu0 %1646 }
 0xa3d   :  { %1549 = vmatpush.bf16.msra.mxu3 %v1492_v60 }
 0xa40   :  { %4976 = vmatmul.msk.bf16.vlgmr.msra.gmra.mxu3 %vm228_vm0, %v6621_v36 }
 0xa50   :  { %4977 = vmatmul.msk.bf16.gmra.mxu3 %vm228_vm0, %v6622_v52 }
 0xa60   :  { %4978 = vmatmul.msk.bf16.gmra.mxu3 %vm228_vm0, %v6623_v61 }
 0xa70   :  { %4979 = vmatmul.msk.bf16.gmra.mxu3 %vm228_vm0, %v6624_v62 }
 0xa80   :  { %4980 = vmatmul.msk.bf16.gmra.mxu3 %vm228_vm0, %v6625_v50 }
 0xa90   :  { %4981 = vmatmul.msk.bf16.gmra.mxu3 %vm228_vm0, %v6626_v0 }
 0xac3   :  { %v7673_v1 = vpop.f32.mrf.mxu3 }
 0xacb   :  { %v7675_v3 = vpop.f32.mrf.mxu3 }
 0xad3   :  { %v1556_v2 = vpop.f32.mrf.mxu3 }
 0xadb   :  { %v7677_v4 = vpop.f32.mrf.mxu3 }
 0xae3   :  { %v1561_v5 = vpop.f32.mrf.mxu3 }
 0xae4   :  { %1589 = vrot.lane.b32.xlu0 %v1561_v5, %s7014_s5  ;;  %1581 = vrot.lane.b32.xlu1 %v1561_v5, %s7019_s1 }
 0xaeb   :  { %v1563_v6 = vpop.f32.mrf.mxu3 }
 0xaec   :  { %1591 = vrot.lane.b32.xlu1 %v1563_v6, %s7014_s5  ;;  %1583 = vrot.lane.b32.xlu2 %v1563_v6, %s7019_s1 }
 0xaf3   :  { %v1566_v7 = vpop.f32.mrf.mxu3 }
 0xaf4   :  { %1593 = vrot.lane.b32.xlu1 %v1566_v7, %s7014_s5  ;;  %1585 = vrot.lane.b32.xlu2 %v1566_v7, %s7019_s1 }
 0xafb   :  { %v1568_v55 = vpop.f32.mrf.mxu3 }
 0xafc   :  { %1595 = vrot.lane.b32.xlu2 %v1568_v55, %s7014_s5  ;;  %1587 = vrot.lane.b32.xlu0 %v1568_v55, %s7019_s1 }
 0xb03   :  { %v1571_v9 = vpop.f32.mrf.mxu3 }
 0xb04   :  { %1613 = vrot.lane.b32.xlu0 %v1571_v9, %s7020_s17  ;;  %1605 = vrot.lane.b32.xlu1 %v1571_v9, %s7021_s18 }
 0xb0b   :  { %v1573_v53 = vpop.f32.mrf.mxu3 }
 0xb0c   :  { %1615 = vrot.lane.b32.xlu1 %v1573_v53, %s7020_s17  ;;  %1607 = vrot.lane.b32.xlu2 %v1573_v53, %s7021_s18 }
 0xb13   :  { %v1576_v40 = vpop.f32.mrf.mxu3 }
 0xb14   :  { %1617 = vrot.lane.b32.xlu2 %v1576_v40, %s7020_s17  ;;  %1609 = vrot.lane.b32.xlu0 %v1576_v40, %s7021_s18 }
 0xb1b   :  { %v1578_v12 = vpop.f32.mrf.mxu3 }
 0xb1c   :  { %1636 = vperm.xlu2 %6955, %v4915_v11   ;;  %1619 = vrot.lane.b32.xlu0 %v1578_v12, %s7020_s17 }
 0xb1d   :  { %1611 = vrot.lane.b32.xlu1 %v1578_v12, %s7021_s18 }
 0xb24   :  { %1880 = vperm.xlu2 %6955, %v5008_v13   ;;  %1670 = vperm.xlu0 %6956, %v4921_v8  }
 0xb25   :  { %1631 = vperm.xlu1 %6954, %v4914_v17  }
 0xb2c   :  { %1904 = vperm.xlu2 %6955, %v5012_v18   ;;  %1655 = vperm.xlu0 %6956, %v4918_v19  }
 0xb2d   :  { %1660 = vperm.xlu1 %6954, %v4919_v20   ;;  %v6627_v20 = vld [vmem:[%s9914_s6 + $0x60] sm:$0xff] }
 0xb34   :  { %1885 = vperm.xlu0 %6956, %v5009_v24   ;;  %v6630_v24 = vld [vmem:[%s9914_s6 + $0x78] sm:$0xff] }
 0xb46   :  { %v1584_v30 = vpop.permute.xlu2 %1583 }
 0xb4e   :  { %v1586_v63 = vpop.permute.xlu2 %1585 }
 0xb56   :  { %v1582_v10 = vpop.permute.xlu1 %1581  ;;  %v1590_v31 = vpop.permute.xlu0 %1589 }
 0xb57   :  { %v1596_v33 = vpop.permute.xlu2 %1595  ;;  %v1597_v60 = vsel %vm7621_vm12, %v1582_v10, %v1590_v31 }
 0xb5e   :  { %v1592_v23 = vpop.permute.xlu1 %1591 }
 0xb5f   :  { %v1598_v59 = vsel %vm7621_vm12, %v1584_v30, %v1592_v23 }
 0xb60   :  { %v1602_v0 = vadd.f32 %v1598_v59, %v7675_v3 }
 0xb66   :  { %v1594_v34 = vpop.permute.xlu1 %1593  ;;  %v1608_v35 = vpop.permute.xlu2 %1607 }
 0xb67   :  { %v1599_v42 = vsel %vm7621_vm12, %v1586_v63, %v1594_v34 }
 0xb68   :  { %v1603_v47 = vadd.f32 %v1599_v42, %v1556_v2 }
 0xb6e   :  { %v1588_v32 = vpop.permute.xlu0 %1587  ;;  %v1618_v44 = vpop.permute.xlu2 %1617 }
 0xb6f   :  { %v1600_v48 = vsel %vm7621_vm12, %v1588_v32, %v1596_v33 }
 0xb70   :  { %v1604_v54 = vadd.f32 %v1600_v48, %v7677_v4  ;;  %v1601_v4 = vadd.f32 %v1597_v60, %v7673_v1  ;;  %v5014_v48 = vld [vmem:[%s9915_s7 + $0xc0] sm:$0xff] }
 0xb76   :  { %v1606_v37 = vpop.permute.xlu1 %1605  ;;  %v1614_v41 = vpop.permute.xlu0 %1613 }
 0xb77   :  { %v1621_v2 = vsel %vm7627_vm13, %v1606_v37, %v1614_v41  ;;  %v5007_v41 = vld [vmem:[%s9915_s7 + $0x88] sm:$0xff] }
 0xb78   :  { %v1625_v9 = vadd.f32 %v1621_v2, %v1601_v4 }
 0xb7e   :  { %v1616_v45 = vpop.permute.xlu1 %1615 }
 0xb7f   :  { %v1622_v52 = vsel %vm7627_vm13, %v1608_v35, %v1616_v45  ;;  %v5006_v45 = vld [vmem:[%s9915_s7 + $0x80] sm:$0xff] }
 0xb80   :  { %v1626_v6 = vadd.f32 %v1622_v52, %v1602_v0 }
 0xb86   :  { %v1610_v43 = vpop.permute.xlu0 %1609 }
 0xb87   :  { %v1623_v46 = vsel %vm7627_vm13, %v1610_v43, %v1618_v44  ;;  %v5015_v43 = vld [vmem:[%s9915_s7 + $0xc8] sm:$0xff]  ;;  %v5013_v44 = vld [vmem:[%s9915_s7 + $0xb8] sm:$0xff] }
 0xb88   :  { %v1627_v39 = vadd.f32 %v1623_v46, %v1603_v47  ;;  %v5010_v46 = vld [vmem:[%s9915_s7 + $0xa0] sm:$0xff]  ;;  %v5011_v47 = vld [vmem:[%s9915_s7 + $0xa8] sm:$0xff] }
 0xb8a   :  { %v1651_v56 = vmul.f32 %v1642_v21, %v1627_v39  ;;  %v6631_v21 = vld [vmem:[%s9914_s6 + $0x80] sm:$0xff] }
 0xb8b   :  { %v5018_v39 = vld [vmem:[%s9915_s7 + $0xe0] sm:$0xff] }
 0xb8c   :  { %v1675_v38 = vadd.f32 %v1666_v27, %v1651_v56  ;;  %v6632_v27 = vld [vmem:[%s9914_s6 + $0x88] sm:$0xff] }
 0xb8e   :  { %v1620_v49 = vpop.permute.xlu0 %1619  ;;  %v7735_v61 = vadd.f32 %v1675_v38, %v7525_v25  ;;  %v1637_v25 = vpop.permute.xlu2 %1636 }
 0xb8f   :  { %v1612_v57 = vpop.permute.xlu1 %1611  ;;  %v1650_v11 = vmul.f32 %v1637_v25, %v1626_v6 }
 0xb90   :  { %v1624_v22 = vsel %vm7627_vm13, %v1612_v57, %v1620_v49  ;;  %v1683_v7 = vmax.f32 %v7735_v61, 0.0  ;;  %v5019_v49 = vld [vmem:[%s9915_s7 + $0xe8] sm:$0xff] }
 0xb91   :  { %v1628_v58 = vadd.f32 %v1624_v22, %v1604_v54  ;;  %v5016_v54 = vld [vmem:[%s9915_s7 + $0xd0] sm:$0xff] }
 0xb93   :  { %v1652_v51 = vmul.f32 %v1647_v16, %v1628_v58 }
 0xb96   :  { %v1671_v36 = vpop.permute.xlu0 %1670  ;;  %v1881_v56 = vpop.permute.xlu2 %1880 }
 0xb97   :  { %v1676_v62 = vadd.f32 %v1671_v36, %v1652_v51  ;;  %v1632_v50 = vpop.permute.xlu1 %1631 }
 0xb98   :  { %v1649_v53 = vmul.f32 %v1632_v50, %v1625_v9 }
 0xb99   :  { %v7742_v5 = vadd.f32 %v1676_v62, %v7528_v26 }
 0xb9b   :  { %v1684_v55 = vmax.f32 %v7742_v5, 0.0  ;;  %v5620_v5 = vld [vmem:[%s9917_s9 + $0x330] sm:$0xf] }
 0xb9d   :  { %v1732_v3 = vpack.c.bf16 %v1684_v55, %v1683_v7 }
 0xb9e   :  { %v1656_v40 = vpop.permute.xlu0 %1655  ;;  %v1905_v57 = vpop.permute.xlu2 %1904 }
 0xb9f   :  { %v1673_v12 = vadd.f32 %v1656_v40, %v1649_v53  ;;  %v1661_v1 = vpop.permute.xlu1 %1660  ;;  %1787 = vmatpush.bf16.msrb.mxu0 %v1732_v3 }
 0xba0   :  { %v1674_v26 = vadd.f32 %v1661_v1, %v1650_v11 }
 0xba1   :  { %v7751_v13 = vadd.f32 %v1673_v12, %v7533_v28  ;;  %v6628_v28 = vld [vmem:[%s9914_s6 + $0x68] sm:$0xff] }
 0xba2   :  { %v7754_v8 = vadd.f32 %v1674_v26, %v7536_v29  ;;  %v6629_v29 = vld [vmem:[%s9914_s6 + $0x70] sm:$0xff] }
 0xba3   :  { %v1681_v17 = vmax.f32 %v7751_v13, 0.0  ;;  %v6710_v13 = vld [vmem:[%s9917_s9 + $0x238] sm:$0xf0] }
 0xba4   :  { %v1682_v18 = vmax.f32 %v7754_v8, 0.0  ;;  %v5680_v8 = vld [vmem:[%s9917_s9 + $0x3a8] sm:$0xf] }
 0xba6   :  { %v1731_v19 = vpack.c.bf16 %v1682_v18, %v1681_v17  ;;  %v1886_v38 = vpop.permute.xlu0 %1885 }
 0xba8   :  { %1788 = vmatpush.bf16.msrb.mxu0 %v1731_v19 }
 0xbab   :  { %5046 = vmatmul.msk.bf16.vlgmr.msrb.gmra.mxu0 %vm228_vm0, %v6627_v20 }
 0xbbb   :  { %5047 = vmatmul.msk.bf16.gmra.mxu0 %vm228_vm0, %v6628_v28 }
 0xbcb   :  { %5048 = vmatmul.msk.bf16.gmra.mxu0 %vm228_vm0, %v6629_v29 }
 0xbdb   :  { %5049 = vmatmul.msk.bf16.gmra.mxu0 %vm228_vm0, %v6630_v24 }
 0xbeb   :  { %5050 = vmatmul.msk.bf16.gmra.mxu0 %vm228_vm0, %v6631_v21 }
 0xbfb   :  { %5051 = vmatmul.msk.bf16.gmra.mxu0 %vm228_vm0, %v6632_v27 }
 0xc28   :  { %v7786_v30 = vpop.f32.mrf.mxu0 }
 0xc30   :  { %v7788_v10 = vpop.f32.mrf.mxu0 }
 0xc38   :  { %v7790_v16 = vpop.f32.mrf.mxu0 }
 0xc40   :  { %v7792_v63 = vpop.f32.mrf.mxu0 }
 0xc48   :  { %v1800_v23 = vpop.f32.mrf.mxu0 }
 0xc49   :  { %1828 = vrot.lane.b32.xlu0 %v1800_v23, %s7014_s5  ;;  %1820 = vrot.lane.b32.xlu1 %v1800_v23, %s7019_s1 }
 0xc50   :  { %v1802_v31 = vpop.f32.mrf.mxu0 }
 0xc51   :  { %1830 = vrot.lane.b32.xlu1 %v1802_v31, %s7014_s5  ;;  %1822 = vrot.lane.b32.xlu2 %v1802_v31, %s7019_s1 }
 0xc58   :  { %v1805_v32 = vpop.f32.mrf.mxu0 }
 0xc59   :  { %1832 = vrot.lane.b32.xlu1 %v1805_v32, %s7014_s5  ;;  %1824 = vrot.lane.b32.xlu2 %v1805_v32, %s7019_s1 }
 0xc60   :  { %v1807_v33 = vpop.f32.mrf.mxu0 }
 0xc61   :  { %1834 = vrot.lane.b32.xlu2 %v1807_v33, %s7014_s5  ;;  %1826 = vrot.lane.b32.xlu0 %v1807_v33, %s7019_s1 }
 0xc68   :  { %v1810_v34 = vpop.f32.mrf.mxu0 }
 0xc69   :  { %1852 = vrot.lane.b32.xlu0 %v1810_v34, %s7020_s17  ;;  %1844 = vrot.lane.b32.xlu1 %v1810_v34, %s7021_s18 }
 0xc70   :  { %v1812_v35 = vpop.f32.mrf.mxu0 }
 0xc71   :  { %1854 = vrot.lane.b32.xlu1 %v1812_v35, %s7020_s17  ;;  %1846 = vrot.lane.b32.xlu2 %v1812_v35, %s7021_s18 }
 0xc78   :  { %v1815_v37 = vpop.f32.mrf.mxu0 }
 0xc79   :  { %1856 = vrot.lane.b32.xlu2 %v1815_v37, %s7020_s17  ;;  %1848 = vrot.lane.b32.xlu0 %v1815_v37, %s7021_s18 }
 0xc80   :  { %v1817_v42 = vpop.f32.mrf.mxu0 }
 0xc81   :  { %1875 = vperm.xlu2 %6955, %v5007_v41   ;;  %1858 = vrot.lane.b32.xlu0 %v1817_v42, %s7020_s17 }
 0xc82   :  { %1850 = vrot.lane.b32.xlu1 %v1817_v42, %s7021_s18 }
 0xc89   :  { %2064 = vperm.xlu2 %6955, %v5015_v43   ;;  %1909 = vperm.xlu0 %6956, %v5013_v44  }
 0xc8a   :  { %1870 = vperm.xlu1 %6954, %v5006_v45  }
 0xc91   :  { %1894 = vperm.xlu0 %6956, %v5010_v46  }
 0xc92   :  { %1899 = vperm.xlu1 %6954, %v5011_v47  }
 0xc99   :  { %2083 = vperm.xlu0 %6956, %v5018_v39  }
 0xc9a   :  { %2059 = vperm.xlu1 %6954, %v5014_v48  }
 0xca2   :  { %2088 = vperm.xlu1 %6954, %v5019_v49  }
 0xcaa   :  { %2069 = vperm.xlu1 %6954, %v5016_v54  }
 0xcab   :  { %v1823_v58 = vpop.permute.xlu2 %1822 }
 0xcb3   :  { %v1825_v60 = vpop.permute.xlu2 %1824 }
 0xcbb   :  { %v1821_v22 = vpop.permute.xlu1 %1820  ;;  %v1829_v51 = vpop.permute.xlu0 %1828 }
 0xcbc   :  { %v1835_v62 = vpop.permute.xlu2 %1834  ;;  %v1836_v27 = vsel %vm7621_vm12, %v1821_v22, %v1829_v51  ;;  %v6635_v22 = vld [vmem:[%s9914_s6 + $0xa0] sm:$0xff] }
 0xcbd   :  { %v1840_v34 = vadd.f32 %v1836_v27, %v7786_v30  ;;  %v6633_v30 = vld [vmem:[%s9914_s6 + $0x90] sm:$0xff]  ;;  %v6658_v27 = vld [vmem:[%s9917_s9 + $0x98] sm:$0xf0] }
 0xcc3   :  { %v1831_v59 = vpop.permute.xlu1 %1830 }
 0xcc4   :  { %v1837_v29 = vsel %vm7621_vm12, %v1823_v58, %v1831_v59  ;;  %v6636_v58 = vld [vmem:[%s9914_s6 + $0xa8] sm:$0xff]  ;;  %v6638_v59 = vld [vmem:[%s9914_s6 + $0xb8] sm:$0xff] }
 0xcc5   :  { %v1841_v32 = vadd.f32 %v1837_v29, %v7788_v10 }
 0xccb   :  { %v1833_v52 = vpop.permute.xlu1 %1832  ;;  %v1847_v2 = vpop.permute.xlu2 %1846 }
 0xccc   :  { %v1838_v9 = vsel %vm7621_vm12, %v1825_v60, %v1833_v52 }
 0xccd   :  { %v1842_v53 = vadd.f32 %v1838_v9, %v7790_v16 }
 0xcd3   :  { %v1827_v36 = vpop.permute.xlu0 %1826  ;;  %v1857_v25 = vpop.permute.xlu2 %1856 }
 0xcd4   :  { %v1839_v40 = vsel %vm7621_vm12, %v1827_v36, %v1835_v62 }
 0xcd5   :  { %v1843_v1 = vadd.f32 %v1839_v40, %v7792_v63  ;;  %v5021_v40 = vld [vmem:[%s9915_s7 + $0xf8] sm:$0xff] }
 0xcdb   :  { %v1845_v50 = vpop.permute.xlu1 %1844  ;;  %v1853_v0 = vpop.permute.xlu0 %1852 }
 0xcdc   :  { %v1860_v33 = vsel %vm7627_vm13, %v1845_v50, %v1853_v0  ;;  %v1876_v44 = vpop.permute.xlu2 %1875 }
 0xcdd   :  { %v1864_v43 = vadd.f32 %v1860_v33, %v1840_v34 }
 0xce3   :  { %v1855_v6 = vpop.permute.xlu1 %1854 }
 0xce4   :  { %v1861_v23 = vsel %vm7627_vm13, %v1847_v2, %v1855_v6 }
 0xce5   :  { %v1865_v41 = vadd.f32 %v1861_v23, %v1841_v32  ;;  %v6659_v32 = vld [vmem:[%s9917_s9 + $0xa0] sm:$0xf0] }
 0xce7   :  { %v1889_v47 = vmul.f32 %v1876_v44, %v1865_v41  ;;  %v6654_v41 = vld [vmem:[%s9917_s9 + $0x7c] sm:$0xf]  ;;  %v5152_v44 = vld [vmem:[%s9917_s9 + $0x80] sm:$0xf] }
 0xceb   :  { %v1849_v4 = vpop.permute.xlu0 %1848 }
 0xcec   :  { %v1862_v3 = vsel %vm7627_vm13, %v1849_v4, %v1857_v25  ;;  %v5017_v25 = vld [vmem:[%s9915_s7 + $0xd8] sm:$0xff] }
 0xced   :  { %v1866_v11 = vadd.f32 %v1862_v3, %v1842_v53  ;;  %v5020_v53 = vld [vmem:[%s9915_s7 + $0xf0] sm:$0xff] }
 0xcef   :  { %v1890_v20 = vmul.f32 %v1881_v56, %v1866_v11  ;;  %v5168_v11 = vld [vmem:[%s9917_s9 + $0xa8] sm:$0xf] }
 0xcf1   :  { %v1914_v24 = vadd.f32 %v1905_v57, %v1890_v20  ;;  %v6634_v57 = vld [vmem:[%s9914_s6 + $0x98] sm:$0xff]  ;;  %v5176_v20 = vld [vmem:[%s9917_s9 + $0xb0] sm:$0xf] }
 0xcf3   :  { %v1859_v12 = vpop.permute.xlu0 %1858  ;;  %v1918_v35 = vmax.f32 %v1914_v24, 0.0 }
 0xcf4   :  { %v1851_v26 = vpop.permute.xlu1 %1850 }
 0xcf5   :  { %v1863_v19 = vsel %vm7627_vm13, %v1851_v26, %v1859_v12  ;;  %v6661_v12 = vld [vmem:[%s9917_s9 + $0xb0] sm:$0xf0] }
 0xcf6   :  { %v1867_v28 = vadd.f32 %v1863_v19, %v1843_v1  ;;  %v6660_v1 = vld [vmem:[%s9917_s9 + $0xac] sm:$0xf]  ;;  %v5169_v26 = vor.u32 %v6661_v12, %v5168_v11  ;;  %v5170_v19 = vld [vmem:[%s9917_s9 + $0xb4] sm:$0xf0]  ;;  %v6645_v11 = vld [vmem:[%s9917_s9 + $0x34] sm:$0xf] }
 0xcf7   :  { %v5173_v29 = vor.u32 %v6660_v1, %v5170_v19  ;;  %v5110_v12 = vld [vmem:[%s9917_s9 + $0x3c] sm:$0xf0]  ;;  %v5116_v19 = vld [vmem:[%s9917_s9 + $0x38] sm:$0xf] }
 0xcf8   :  { %v1891_v21 = vmul.f32 %v1886_v38, %v1867_v28  ;;  %v6637_v38 = vld [vmem:[%s9914_s6 + $0xb0] sm:$0xff]  ;;  %v6662_v28 = vld [vmem:[%s9917_s9 + $0xb8] sm:$0xf0]  ;;  %2435 = vmatpush.bf16.msra.mxu2 %v5169_v26  ;;  %v5113_v26 = vor.u32 %v6645_v11, %v5110_v12  ;;  %v5414_v12 = vld [vmem:[%s9917_s9 + $0x21c] sm:$0xf0] }
 0xcf9   :  { %v5177_v24 = vor.u32 %v6662_v28, %v5176_v20  ;;  %2463 = vmatpush.bf16.msra.mxu0 %v5173_v29  ;;  %v6647_v20 = vld [vmem:[%s9917_s9 + $0x40] sm:$0xf0]  ;;  %v8031_v28 = vpop.permute.xlu2 %2064  ;;  %v6705_v11 = vld [vmem:[%s9917_s9 + $0x214] sm:$0xf] }
 0xcfa   :  { %v5117_v29 = vor.u32 %v6647_v20, %v5116_v19  ;;  %v5417_v19 = vor.u32 %v6705_v11, %v5414_v12  ;;  %v5216_v20 = vld [vmem:[%s9917_s9 + $0x108] sm:$0xf]  ;;  %v6686_v11 = vld [vmem:[%s9917_s9 + $0x178] sm:$0xf0] }
 0xcfb   :  { %v1910_v16 = vpop.permute.xlu0 %1909 }
 0xcfc   :  { %v1915_v31 = vadd.f32 %v1910_v16, %v1891_v21  ;;  %v1871_v63 = vpop.permute.xlu1 %1870  ;;  %v5156_v21 = vld [vmem:[%s9917_s9 + $0x90] sm:$0xf]  ;;  %v6657_v16 = vld [vmem:[%s9917_s9 + $0x94] sm:$0xf] }
 0xcfd   :  { %v1888_v45 = vmul.f32 %v1871_v63, %v1864_v43  ;;  %v5157_v23 = vor.u32 %v6658_v27, %v5156_v21  ;;  %v5164_v63 = vld [vmem:[%s9917_s9 + $0x98] sm:$0xf]  ;;  %v5146_v43 = vld [vmem:[%s9917_s9 + $0x84] sm:$0xf0]  ;;  %v6682_v21 = vld [vmem:[%s9917_s9 + $0x158] sm:$0xf0] }
 0xcfe   :  { %v1919_v37 = vmax.f32 %v1915_v31, 0.0  ;;  %v5158_v31 = vld [vmem:[%s9917_s9 + $0x9c] sm:$0xf0]  ;;  %v5165_v34 = vor.u32 %v6659_v32, %v5164_v63  ;;  %v5098_v32 = vld [vmem:[%s9917_s9 + $0x24] sm:$0xf0] }
 0xcff   :  { %v5161_v33 = vor.u32 %v6657_v16, %v5158_v31  ;;  %2436 = vmatpush.bf16.msra.mxu2 %v5157_v23  ;;  %v5096_v16 = vld [vmem:[%s9917_s9 + $0x18] sm:$0xf]  ;;  %v6643_v23 = vld [vmem:[%s9917_s9 + $0x20] sm:$0xf0]  ;;  %v6642_v31 = vld [vmem:[%s9917_s9 + $0x1c] sm:$0xf] }
 0xd00   :  { %v1921_v42 = vpack.c.bf16 %v1919_v37, %v1918_v35  ;;  %v5144_v35 = vld [vmem:[%s9917_s9 + $0x78] sm:$0xf]  ;;  %v6655_v37 = vld [vmem:[%s9917_s9 + $0x80] sm:$0xf0]  ;;  %v5097_v63 = vor.u32 %v6643_v23, %v5096_v16 }
 0xd01   :  { %2464 = vmatpush.bf16.msra.mxu0 %v5161_v33  ;;  %v5104_v33 = vld [vmem:[%s9917_s9 + $0x20] sm:$0xf]  ;;  %v5400_v16 = vld [vmem:[%s9917_s9 + $0x1f8] sm:$0xf] }
 0xd02   :  { %1976 = vmatpush.bf16.msrb.mxu1 %v1921_v42  ;;  %v5145_v42 = vor.u32 %v6655_v37, %v5144_v35  ;;  %v5101_v35 = vor.u32 %v6642_v31, %v5098_v32  ;;  %v6703_v31 = vld [vmem:[%s9917_s9 + $0x200] sm:$0xf0]  ;;  %v5402_v32 = vld [vmem:[%s9917_s9 + $0x204] sm:$0xf0] }
 0xd03   :  { %v1895_v46 = vpop.permute.xlu0 %1894 }
 0xd04   :  { %v1912_v39 = vadd.f32 %v1895_v46, %v1888_v45  ;;  %v1900_v48 = vpop.permute.xlu1 %1899  ;;  %v6656_v45 = vld [vmem:[%s9917_s9 + $0x88] sm:$0xf0]  ;;  %v5149_v46 = vor.u32 %v6654_v41, %v5146_v43  ;;  %2437 = vmatpush.bf16.msra.mxu2 %v5145_v42  ;;  %v5240_v41 = vld [vmem:[%s9917_s9 + $0x138] sm:$0xf]  ;;  %v6679_v42 = vld [vmem:[%s9917_s9 + $0x140] sm:$0xf0] }
 0xd05   :  { %v1913_v49 = vadd.f32 %v1900_v48, %v1889_v47  ;;  %v5153_v47 = vor.u32 %v6656_v45, %v5152_v44  ;;  %v6652_v48 = vld [vmem:[%s9917_s9 + $0x68] sm:$0xf0]  ;;  %v5084_v43 = vld [vmem:[%s9917_s9] sm:$0xf]  ;;  %v5241_v44 = vor.u32 %v6679_v42, %v5240_v41  ;;  %v6670_v41 = vld [vmem:[%s9917_s9 + $0xf8] sm:$0xf0] }
 0xd06   :  { %v1916_v54 = vmax.f32 %v1912_v39, 0.0  ;;  %v5132_v39 = vld [vmem:[%s9917_s9 + $0x60] sm:$0xf]  ;;  %2465 = vmatpush.bf16.msra.mxu0 %v5149_v46  ;;  %v6640_v45 = vld [vmem:[%s9917_s9 + $0x8] sm:$0xf0] }
 0xd07   :  { %v1917_v10 = vmax.f32 %v1913_v49, 0.0  ;;  %v6651_v49 = vld [vmem:[%s9917_s9 + $0x64] sm:$0xf] }
 0xd08   :  { %v6639_v46 = vld [vmem:[%s9917_s9 + $0x4] sm:$0xf] }
 0xd09   :  { %v1920_v56 = vpack.c.bf16 %v1917_v10, %v1916_v54  ;;  %v5133_v54 = vor.u32 %v6652_v48, %v5132_v39  ;;  %v5134_v10 = vld [vmem:[%s9917_s9 + $0x6c] sm:$0xf0]  ;;  %v5085_v39 = vor.u32 %v6640_v45, %v5084_v43  ;;  %v6675_v43 = vld [vmem:[%s9917_s9 + $0x124] sm:$0xf]  ;;  %v5388_v45 = vld [vmem:[%s9917_s9 + $0x1e0] sm:$0xf] }
 0xd0b   :  { %1977 = vmatpush.bf16.msrb.mxu1 %v1920_v56  ;;  %v5140_v56 = vld [vmem:[%s9917_s9 + $0x68] sm:$0xf]  ;;  %2438 = vmatpush.bf16.msra.mxu2 %v5133_v54  ;;  %v6641_v54 = vld [vmem:[%s9917_s9 + $0x10] sm:$0xf0] }
 0xd0e   :  { %5076 = vmatmul.msk.bf16.vlgmr.msrb.gmra.mxu1 %vm228_vm0, %v6633_v30  ;;  %v6653_v30 = vld [vmem:[%s9917_s9 + $0x70] sm:$0xf0] }
 0xd0f   :  { %2491 = vmatpush.bf16.msra.mxu1 %v5177_v24  ;;  %v5252_v24 = vld [vmem:[%s9917_s9 + $0x150] sm:$0xf] }
 0xd10   :  { %v5253_v27 = vor.u32 %v6682_v21, %v5252_v24  ;;  %v6678_v21 = vld [vmem:[%s9917_s9 + $0x13c] sm:$0xf] }
 0xd13   :  { %2492 = vmatpush.bf16.msra.mxu1 %v5165_v34  ;;  %v6644_v34 = vld [vmem:[%s9917_s9 + $0x28] sm:$0xf0] }
 0xd14   :  { %v5105_v37 = vor.u32 %v6644_v34, %v5104_v33  ;;  %v5401_v34 = vor.u32 %v6703_v31, %v5400_v16  ;;  %v5366_v16 = vld [vmem:[%s9917_s9 + $0x1bc] sm:$0xf0] }
 0xd17   :  { %2493 = vmatpush.bf16.msra.mxu1 %v5153_v47  ;;  %v5086_v47 = vld [vmem:[%s9917_s9 + $0xc] sm:$0xf0] }
 0xd18   :  { %v5089_v48 = vor.u32 %v6639_v46, %v5086_v47  ;;  %v6700_v47 = vld [vmem:[%s9917_s9 + $0x1e8] sm:$0xf0] }
 0xd1e   :  { %5077 = vmatmul.msk.bf16.gmra.mxu1 %vm228_vm0, %v6634_v57  ;;  %v5137_v57 = vor.u32 %v6651_v49, %v5134_v10  ;;  %v5092_v49 = vld [vmem:[%s9917_s9 + $0x8] sm:$0xf] }
 0xd20   :  { %2466 = vmatpush.bf16.msra.mxu0 %v5137_v57  ;;  %v5266_v57 = vld [vmem:[%s9917_s9 + $0x174] sm:$0xf0] }
 0xd2e   :  { %5078 = vmatmul.msk.bf16.gmra.mxu1 %vm228_vm0, %v6635_v22  ;;  %v5141_v22 = vor.u32 %v6653_v30, %v5140_v56  ;;  %v5093_v56 = vor.u32 %v6641_v54, %v5092_v49  ;;  %v6684_v30 = vld [vmem:[%s9917_s9 + $0x16c] sm:$0xf]  ;;  %v5389_v49 = vor.u32 %v6700_v47, %v5388_v45  ;;  %v6691_v45 = vld [vmem:[%s9917_s9 + $0x1a0] sm:$0xf0]  ;;  %v5354_v47 = vld [vmem:[%s9917_s9 + $0x1a4] sm:$0xf0] }
 0xd30   :  { %2494 = vmatpush.bf16.msra.mxu1 %v5141_v22  ;;  %v5424_v22 = vld [vmem:[%s9917_s9 + $0x228] sm:$0xf] }
 0xd3e   :  { %5079 = vmatmul.msk.bf16.gmra.mxu1 %vm228_vm0, %v6636_v58  ;;  %v5120_v58 = vld [vmem:[%s9917_s9 + $0x48] sm:$0xf] }
 0xd4e   :  { %5080 = vmatmul.msk.bf16.gmra.mxu1 %vm228_vm0, %v6637_v38  ;;  %v6649_v38 = vld [vmem:[%s9917_s9 + $0x50] sm:$0xf0] }
 0xd5e   :  { %5081 = vmatmul.msk.bf16.gmra.mxu1 %vm228_vm0, %v6638_v59  ;;  %v6648_v59 = vld [vmem:[%s9917_s9 + $0x4c] sm:$0xf]  ;;  %vm4580_vm0 = vcmask 785408  }
 0xd8b   :  { %v7884_v51 = vpop.f32.mrf.mxu1 }
 0xd93   :  { %v7886_v60 = vpop.f32.mrf.mxu1 }
 0xd9b   :  { %v7888_v36 = vpop.f32.mrf.mxu1 }
 0xda3   :  { %v7890_v52 = vpop.f32.mrf.mxu1 }
 0xdab   :  { %v1989_v62 = vpop.f32.mrf.mxu1 }
 0xdac   :  { %2017 = vrot.lane.b32.xlu1 %v1989_v62, %s7014_s5  ;;  %2009 = vrot.lane.b32.xlu2 %v1989_v62, %s7019_s1  ;;  %v5121_v62 = vor.u32 %v6649_v38, %v5120_v58  ;;  %v5269_v58 = vor.u32 %v6684_v30, %v5266_v57  ;;  %v6709_v38 = vld [vmem:[%s9917_s9 + $0x230] sm:$0xf0]  ;;  %v6667_v30 = vld [vmem:[%s9917_s9 + $0xe0] sm:$0xf0] }
 0xdae   :  { %2439 = vmatpush.bf16.msra.mxu2 %v5121_v62  ;;  %v5426_v62 = vld [vmem:[%s9917_s9 + $0x234] sm:$0xf0] }
 0xdb3   :  { %v1991_v50 = vpop.f32.mrf.mxu1 }
 0xdb4   :  { %2019 = vrot.lane.b32.xlu2 %v1991_v50, %s7014_s5  ;;  %2011 = vrot.lane.b32.xlu0 %v1991_v50, %s7019_s1  ;;  %v5122_v50 = vld [vmem:[%s9917_s9 + $0x54] sm:$0xf0] }
 0xdbb   :  { %v1994_v0 = vpop.f32.mrf.mxu1 }
 0xdbc   :  { %2021 = vrot.lane.b32.xlu1 %v1994_v0, %s7014_s5  ;;  %2013 = vrot.lane.b32.xlu2 %v1994_v0, %s7019_s1  ;;  %v5128_v0 = vld [vmem:[%s9917_s9 + $0x50] sm:$0xf] }
 0xdc3   :  { %v1996_v2 = vpop.f32.mrf.mxu1 }
 0xdc4   :  { %2023 = vrot.lane.b32.xlu2 %v1996_v2, %s7014_s5  ;;  %2015 = vrot.lane.b32.xlu0 %v1996_v2, %s7019_s1  ;;  %v6650_v2 = vld [vmem:[%s9917_s9 + $0x58] sm:$0xf0] }
 0xdcb   :  { %v1999_v4 = vpop.f32.mrf.mxu1 }
 0xdcc   :  { %2041 = vrot.lane.b32.xlu2 %v1999_v4, %s7020_s17  ;;  %2033 = vrot.lane.b32.xlu0 %v1999_v4, %s7021_s18  ;;  %v5125_v4 = vor.u32 %v6648_v59, %v5122_v50  ;;  %v6708_v59 = vld [vmem:[%s9917_s9 + $0x22c] sm:$0xf]  ;;  %v5425_v50 = vor.u32 %v6709_v38, %v5424_v22  ;;  %v5218_v38 = vld [vmem:[%s9917_s9 + $0x114] sm:$0xf0] }
 0xdce   :  { %2467 = vmatpush.bf16.msra.mxu0 %v5125_v4  ;;  %v6676_v4 = vld [vmem:[%s9917_s9 + $0x128] sm:$0xf0] }
 0xdd2   :  { %2468 = vmatpush.bf16.msra.mxu0 %v5113_v26 }
 0xdd3   :  { %v2001_v6 = vpop.f32.mrf.mxu1 }
 0xdd4   :  { %2043 = vrot.lane.b32.xlu0 %v2001_v6, %s7020_s17  ;;  %2035 = vrot.lane.b32.xlu1 %v2001_v6, %s7021_s18  ;;  %v5129_v6 = vor.u32 %v6650_v2, %v5128_v0  ;;  %v5429_v0 = vor.u32 %v6708_v59, %v5426_v62  ;;  %v5228_v2 = vld [vmem:[%s9917_s9 + $0x120] sm:$0xf]  ;;  %v5376_v59 = vld [vmem:[%s9917_s9 + $0x1c8] sm:$0xf]  ;;  %v8194_v62 = vpop.permute.xlu0 %2083 }
 0xdd6   :  { %2495 = vmatpush.bf16.msra.mxu1 %v5129_v6  ;;  %2469 = vmatpush.bf16.msra.mxu0 %v5101_v35  ;;  %v5229_v6 = vor.u32 %v6676_v4, %v5228_v2  ;;  %v6696_v2 = vld [vmem:[%s9917_s9 + $0x1cc] sm:$0xf]  ;;  %v5378_v4 = vld [vmem:[%s9917_s9 + $0x1d4] sm:$0xf0] }
 0xdda   :  { %2496 = vmatpush.bf16.msra.mxu1 %v5117_v29  ;;  %2470 = vmatpush.bf16.msra.mxu0 %v5089_v48  ;;  %v6673_v29 = vld [vmem:[%s9917_s9 + $0x110] sm:$0xf0]  ;;  %v5390_v48 = vld [vmem:[%s9917_s9 + $0x1ec] sm:$0xf0] }
 0xddb   :  { %v2004_v9 = vpop.f32.mrf.mxu1  ;;  %v5217_v24 = vor.u32 %v6673_v29, %v5216_v20  ;;  %v5206_v20 = vld [vmem:[%s9917_s9 + $0xfc] sm:$0xf0]  ;;  %v5364_v29 = vld [vmem:[%s9917_s9 + $0x1b0] sm:$0xf] }
 0xddc   :  { %2045 = vrot.lane.b32.xlu2 %v2004_v9, %s7020_s17  ;;  %2037 = vrot.lane.b32.xlu0 %v2004_v9, %s7021_s18  ;;  %v5264_v9 = vld [vmem:[%s9917_s9 + $0x168] sm:$0xf] }
 0xdde   :  { %2497 = vmatpush.bf16.msra.mxu1 %v5105_v37  ;;  %2840 = vmatpush.bf16.msrb.mxu0 %v5425_v50  ;;  %v5204_v37 = vld [vmem:[%s9917_s9 + $0xf0] sm:$0xf] }
 0xddf   :  { %v5205_v42 = vor.u32 %v6670_v41, %v5204_v37  ;;  %v5194_v37 = vld [vmem:[%s9917_s9 + $0xe4] sm:$0xf0]  ;;  %v5352_v41 = vld [vmem:[%s9917_s9 + $0x198] sm:$0xf] }
 0xde2   :  { %2498 = vmatpush.bf16.msra.mxu1 %v5093_v56  ;;  %v5192_v56 = vld [vmem:[%s9917_s9 + $0xd8] sm:$0xf] }
 0xde3   :  { %v2006_v3 = vpop.f32.mrf.mxu1  ;;  %v5193_v22 = vor.u32 %v6667_v30, %v5192_v56  ;;  %v6663_v30 = vld [vmem:[%s9917_s9 + $0xc4] sm:$0xf] }
 0xde4   :  { %2074 = vperm.xlu2 %6955, %v5017_v25   ;;  %2047 = vrot.lane.b32.xlu0 %v2006_v3, %s7020_s17  ;;  %v6685_v25 = vld [vmem:[%s9917_s9 + $0x170] sm:$0xf0] }
 0xde5   :  { %2039 = vrot.lane.b32.xlu1 %v2006_v3, %s7021_s18  ;;  %v5108_v3 = vld [vmem:[%s9917_s9 + $0x30] sm:$0xf] }
 0xde6   :  { %2868 = vmatpush.bf16.msrb.mxu1 %v5429_v0  ;;  %v6697_v0 = vld [vmem:[%s9917_s9 + $0x1d0] sm:$0xf0] }
 0xdea   :  { %2869 = vmatpush.bf16.msrb.mxu1 %v5417_v19  ;;  %v6669_v19 = vld [vmem:[%s9917_s9 + $0xf4] sm:$0xf] }
 0xdec   :  { %2093 = vperm.xlu0 %6956, %v5020_v53   ;;  %v5265_v53 = vor.u32 %v6685_v25, %v5264_v9  ;;  %v6681_v9 = vld [vmem:[%s9917_s9 + $0x154] sm:$0xf]  ;;  %v5254_v25 = vld [vmem:[%s9917_s9 + $0x15c] sm:$0xf0] }
 0xded   :  { %2098 = vperm.xlu1 %6954, %v5021_v40   ;;  %v6646_v40 = vld [vmem:[%s9917_s9 + $0x38] sm:$0xf0] }
 0xdee   :  { %v5109_v1 = vor.u32 %v6646_v40, %v5108_v3  ;;  %2449 = vmatpush.bf16.msrb.mxu3 %v5265_v53  ;;  %v5412_v3 = vld [vmem:[%s9917_s9 + $0x210] sm:$0xf]  ;;  %v5257_v53 = vor.u32 %v6681_v9, %v5254_v25  ;;  %v6706_v40 = vld [vmem:[%s9917_s9 + $0x218] sm:$0xf0]  ;;  %v5381_v9 = vor.u32 %v6696_v2, %v5378_v4  ;;  %v5180_v25 = vld [vmem:[%s9917_s9 + $0xc0] sm:$0xf] }
 0xdef   :  { %v5413_v26 = vor.u32 %v6706_v40, %v5412_v3  ;;  %v6664_v3 = vld [vmem:[%s9917_s9 + $0xc8] sm:$0xf0]  ;;  %v5272_v40 = vld [vmem:[%s9917_s9 + $0x170] sm:$0xf] }
 0xdf0   :  { %2440 = vmatpush.bf16.msra.mxu2 %v5109_v1  ;;  %v8125_v1 = vpop.permute.xlu1 %2059 }
 0xdf1   :  { %2841 = vmatpush.bf16.msrb.mxu0 %v5413_v26  ;;  %v5273_v26 = vor.u32 %v6686_v11, %v5272_v40  ;;  %v5224_v11 = vld [vmem:[%s9917_s9 + $0x110] sm:$0xf] }
 0xdf2   :  { %2450 = vmatpush.bf16.msrb.mxu3 %v5253_v27  ;;  %v5242_v27 = vld [vmem:[%s9917_s9 + $0x144] sm:$0xf0] }
 0xdf3   :  { %v5245_v23 = vor.u32 %v6678_v21, %v5242_v27  ;;  %v6694_v21 = vld [vmem:[%s9917_s9 + $0x1b8] sm:$0xf0]  ;;  %v6693_v27 = vld [vmem:[%s9917_s9 + $0x1b4] sm:$0xf] }
 0xdf4   :  { %2441 = vmatpush.bf16.msra.mxu2 %v5097_v63  ;;  %v6702_v63 = vld [vmem:[%s9917_s9 + $0x1fc] sm:$0xf]  ;;  %v5369_v31 = vor.u32 %v6693_v27, %v5366_v16 }
 0xdf5   :  { %v5405_v35 = vor.u32 %v6702_v63, %v5402_v32  ;;  %2842 = vmatpush.bf16.msrb.mxu0 %v5401_v34  ;;  %v5260_v63 = vld [vmem:[%s9917_s9 + $0x158] sm:$0xf]  ;;  %v6683_v32 = vld [vmem:[%s9917_s9 + $0x160] sm:$0xf0] }
 0xdf6   :  { %2451 = vmatpush.bf16.msrb.mxu3 %v5241_v44  ;;  %v5230_v44 = vld [vmem:[%s9917_s9 + $0x12c] sm:$0xf0]  ;;  %v5261_v34 = vor.u32 %v6683_v32, %v5260_v63  ;;  %v5200_v32 = vld [vmem:[%s9917_s9 + $0xe0] sm:$0xf] }
 0xdf7   :  { %2870 = vmatpush.bf16.msrb.mxu1 %v5405_v35  ;;  %v5233_v46 = vor.u32 %v6675_v43, %v5230_v44  ;;  %v6666_v35 = vld [vmem:[%s9917_s9 + $0xdc] sm:$0xf] }
 0xdf8   :  { %2442 = vmatpush.bf16.msra.mxu2 %v5085_v39  ;;  %v6699_v39 = vld [vmem:[%s9917_s9 + $0x1e4] sm:$0xf]  ;;  %v8183_v57 = vpop.permute.xlu1 %2088  ;;  %v5197_v44 = vor.u32 %v6666_v35, %v5194_v37 }
 0xdf9   :  { %v5393_v54 = vor.u32 %v6699_v39, %v5390_v48  ;;  %2843 = vmatpush.bf16.msrb.mxu0 %v5389_v49  ;;  %v5353_v39 = vor.u32 %v6691_v45, %v5352_v41  ;;  %v5248_v49 = vld [vmem:[%s9917_s9 + $0x140] sm:$0xf]  ;;  %v5188_v41 = vld [vmem:[%s9917_s9 + $0xc8] sm:$0xf] }
 0xdfa   :  { %2452 = vmatpush.bf16.msrb.mxu3 %v5229_v6  ;;  %v5377_v6 = vor.u32 %v6697_v0, %v5376_v59  ;;  %v6688_v59 = vld [vmem:[%s9917_s9 + $0x188] sm:$0xf0]  ;;  %v5342_v0 = vld [vmem:[%s9917_s9 + $0x18c] sm:$0xf0] }
 0xdfb   :  { %2871 = vmatpush.bf16.msrb.mxu1 %v5393_v54  ;;  %v6680_v54 = vld [vmem:[%s9917_s9 + $0x148] sm:$0xf0] }
 0xdfc   :  { %2477 = vmatpush.bf16.msrb.mxu2 %v5269_v58  ;;  %v6672_v58 = vld [vmem:[%s9917_s9 + $0x10c] sm:$0xf]  ;;  %v5249_v56 = vor.u32 %v6680_v54, %v5248_v49 }
 0xdfd   :  { %v5221_v50 = vor.u32 %v6672_v58, %v5218_v38  ;;  %2844 = vmatpush.bf16.msrb.mxu0 %v5377_v6  ;;  %v5340_v58 = vld [vmem:[%s9917_s9 + $0x180] sm:$0xf] }
 0xdfe   :  { %2453 = vmatpush.bf16.msrb.mxu3 %v5217_v24  ;;  %v5209_v24 = vor.u32 %v6669_v19, %v5206_v20  ;;  %v5341_v4 = vor.u32 %v6688_v59, %v5340_v58 }
 0xdff   :  { %2872 = vmatpush.bf16.msrb.mxu1 %v5381_v9  ;;  %v5236_v9 = vld [vmem:[%s9917_s9 + $0x128] sm:$0xf] }
 0xe00   :  { %2478 = vmatpush.bf16.msrb.mxu2 %v5257_v53  ;;  %v5181_v53 = vor.u32 %v6664_v3, %v5180_v25  ;;  %v6677_v25 = vld [vmem:[%s9917_s9 + $0x130] sm:$0xf0] }
 0xe01   :  { %v5237_v40 = vor.u32 %v6677_v25, %v5236_v9  ;;  %v6707_v9 = vld [vmem:[%s9917_s9 + $0x220] sm:$0xf0]  ;;  %v5668_v25 = vld [vmem:[%s9917_s9 + $0x390] sm:$0xf] }
 0xe02   :  { %2454 = vmatpush.bf16.msrb.mxu3 %v5205_v42  ;;  %v8252_v42 = vpop.permute.xlu1 %2069 }
 0xe03   :  { %2873 = vmatpush.bf16.msrb.mxu1 %v5369_v31 }
 0xe04   :  { %2479 = vmatpush.bf16.msrb.mxu2 %v5245_v23  ;;  %v5365_v23 = vor.u32 %v6694_v21, %v5364_v29  ;;  %v6671_v21 = vld [vmem:[%s9917_s9 + $0x100] sm:$0xf0] }
 0xe06   :  { %v8081_v10 = vpop.permute.xlu2 %2009  ;;  %2455 = vmatpush.bf16.msrb.mxu3 %v5193_v22  ;;  %2845 = vmatpush.bf16.msrb.mxu0 %v5365_v23  ;;  %v5182_v22 = vld [vmem:[%s9917_s9 + $0xcc] sm:$0xf0] }
 0xe07   :  { %v5185_v38 = vor.u32 %v6663_v30, %v5182_v22  ;;  %v5520_v30 = vld [vmem:[%s9917_s9 + $0x2e8] sm:$0xf] }
 0xe08   :  { %2480 = vmatpush.bf16.msrb.mxu2 %v5233_v46  ;;  %v6690_v46 = vld [vmem:[%s9917_s9 + $0x19c] sm:$0xf] }
 0xe09   :  { %v5357_v48 = vor.u32 %v6690_v46, %v5354_v47 }
 0xe0a   :  { %2456 = vmatpush.bf16.msrb.mxu3 %v5181_v53  ;;  %2846 = vmatpush.bf16.msrb.mxu0 %v5353_v39 }
 0xe0b   :  { %2874 = vmatpush.bf16.msrb.mxu1 %v5357_v48 }
 0xe0c   :  { %2481 = vmatpush.bf16.msrb.mxu2 %v5221_v50  ;;  %v6687_v50 = vld [vmem:[%s9917_s9 + $0x184] sm:$0xf] }
 0xe0d   :  { %v5345_v6 = vor.u32 %v6687_v50, %v5342_v0  ;;  %v5508_v50 = vld [vmem:[%s9917_s9 + $0x2d0] sm:$0xf]  ;;  %v6730_v0 = vld [vmem:[%s9917_s9 + $0x2d8] sm:$0xf0] }
 0xe0e   :  { %v8151_v33 = vpop.permute.xlu2 %2019  ;;  %2505 = vmatpush.bf16.msra.mxu3 %v5273_v26  ;;  %2847 = vmatpush.bf16.msrb.mxu0 %v5341_v4  ;;  %v6674_v26 = vld [vmem:[%s9917_s9 + $0x118] sm:$0xf0]  ;;  %v5420_v4 = vld [vmem:[%s9917_s9 + $0x218] sm:$0xf] }
 0xe0f   :  { %2875 = vmatpush.bf16.msrb.mxu1 %v5345_v6  ;;  %v5225_v19 = vor.u32 %v6674_v26, %v5224_v11  ;;  %v5509_v26 = vor.u32 %v6730_v0, %v5508_v50  ;;  %v6695_v50 = vld [vmem:[%s9917_s9 + $0x1c0] sm:$0xf0] }
 0xe10   :  { %2482 = vmatpush.bf16.msrb.mxu2 %v5209_v24  ;;  %v5212_v24 = vld [vmem:[%s9917_s9 + $0xf8] sm:$0xf] }
 0xe11   :  { %v5213_v31 = vor.u32 %v6671_v21, %v5212_v24  ;;  %v5496_v24 = vld [vmem:[%s9917_s9 + $0x2b8] sm:$0xf] }
 0xe12   :  { %2506 = vmatpush.bf16.msra.mxu3 %v5261_v34  ;;  %v6668_v34 = vld [vmem:[%s9917_s9 + $0xe8] sm:$0xf0] }
 0xe13   :  { %v5201_v35 = vor.u32 %v6668_v34, %v5200_v32 }
 0xe14   :  { %2483 = vmatpush.bf16.msrb.mxu2 %v5197_v44  ;;  %v6665_v44 = vld [vmem:[%s9917_s9 + $0xd0] sm:$0xf0] }
 0xe15   :  { %v5189_v39 = vor.u32 %v6665_v44, %v5188_v41  ;;  %v5644_v41 = vld [vmem:[%s9917_s9 + $0x360] sm:$0xf]  ;;  %v6748_v44 = vld [vmem:[%s9917_s9 + $0x368] sm:$0xf0] }
 0xe16   :  { %v8217_v12 = vpop.permute.xlu2 %2013  ;;  %2507 = vmatpush.bf16.msra.mxu3 %v5249_v56 }
 0xe18   :  { %2484 = vmatpush.bf16.msrb.mxu2 %v5185_v38 }
 0xe1a   :  { %2508 = vmatpush.bf16.msra.mxu3 %v5237_v40 }
 0xe1e   :  { %v8287_v2 = vpop.permute.xlu2 %2023  ;;  %v2018_v3 = vpop.permute.xlu1 %2017  ;;  %2509 = vmatpush.bf16.msra.mxu3 %v5225_v19 }
 0xe1f   :  { %v2025_v20 = vsel %vm7621_vm12, %v8081_v10, %v2018_v3  ;;  %v6754_v3 = vld [vmem:[%s9917_s9 + $0x398] sm:$0xf0] }
 0xe20   :  { %v2029_v27 = vadd.f32 %v2025_v20, %v7884_v51 }
 0xe22   :  { %2510 = vmatpush.bf16.msra.mxu3 %v5213_v31 }
 0xe26   :  { %v2012_v43 = vpop.permute.xlu0 %2011  ;;  %v2042_v29 = vpop.permute.xlu2 %2041  ;;  %2511 = vmatpush.bf16.msra.mxu3 %v5201_v35 }
 0xe27   :  { %v2026_v51 = vsel %vm7621_vm12, %v2012_v43, %v8151_v33 }
 0xe28   :  { %v2030_v45 = vadd.f32 %v2026_v51, %v7886_v60  ;;  %v5484_v51 = vld [vmem:[%s9917_s9 + $0x2a0] sm:$0xf] }
 0xe2a   :  { %2512 = vmatpush.bf16.msra.mxu3 %v5189_v39 }
 0xe2e   :  { %v8313_v16 = vpop.permute.xlu1 %2021 }
 0xe2f   :  { %v2027_v40 = vsel %vm7621_vm12, %v8217_v12, %v8313_v16  ;;  %v5421_v12 = vor.u32 %v6707_v9, %v5420_v4  ;;  %v5656_v16 = vld [vmem:[%s9917_s9 + $0x378] sm:$0xf] }
 0xe36   :  { %v8295_v53 = vpop.permute.xlu0 %2015  ;;  %v2046_v6 = vpop.permute.xlu2 %2045 }
 0xe37   :  { %v2028_v11 = vsel %vm7621_vm12, %v8295_v53, %v8287_v2  ;;  %v5408_v2 = vld [vmem:[%s9917_s9 + $0x200] sm:$0xf]  ;;  %v2031_v53 = vadd.f32 %v2027_v40, %v7888_v36  ;;  %v5497_v36 = vor.u32 %v6727_v14, %v5496_v24  ;;  %v5608_v24 = vld [vmem:[%s9917_s9 + $0x318] sm:$0xf]  ;;  %v6739_v14 = vld [vmem:[%s9917_s9 + $0x320] sm:$0xf0] }
 0xe38   :  { %v2032_v31 = vadd.f32 %v2028_v11, %v7890_v52  ;;  %v6701_v52 = vld [vmem:[%s9917_s9 + $0x1f0] sm:$0xf0] }
 0xe3e   :  { %v2034_v23 = vpop.permute.xlu0 %2033 }
 0xe3f   :  { %v2049_v63 = vsel %vm7627_vm13, %v2034_v23, %v2042_v29  ;;  %v5669_v29 = vor.u32 %v6754_v3, %v5668_v25  ;;  %v6751_v23 = vld [vmem:[%s9917_s9 + $0x380] sm:$0xf0]  ;;  %v6729_v25 = vld [vmem:[%s9917_s9 + $0x2d4] sm:$0xf]  ;;  %v5510_v3 = vld [vmem:[%s9917_s9 + $0x2dc] sm:$0xf0] }
 0xe40   :  { %v2053_v10 = vadd.f32 %v2049_v63, %v2029_v27  ;;  %v6704_v27 = vld [vmem:[%s9917_s9 + $0x208] sm:$0xf0]  ;;  %v5657_v35 = vor.u32 %v6751_v23, %v5656_v16  ;;  %v5436_v16 = vld [vmem:[%s9917_s9 + $0x240] sm:$0xf] }
 0xe41   :  { %v5409_v34 = vor.u32 %v6704_v27, %v5408_v2  ;;  %v5513_v2 = vor.u32 %v6729_v25, %v5510_v3  ;;  %v5498_v27 = vld [vmem:[%s9917_s9 + $0x2c4] sm:$0xf0]  ;;  %v6725_v25 = vld [vmem:[%s9917_s9 + $0x2b0] sm:$0xf0]  ;;  %v6747_v3 = vld [vmem:[%s9917_s9 + $0x364] sm:$0xf] }
 0xe42   :  { %v2077_v37 = vmul.f32 %v8125_v1, %v2053_v10 }
 0xe44   :  { %v2101_v33 = vadd.f32 %v8194_v62, %v2077_v37  ;;  %v6733_v62 = vld [vmem:[%s9917_s9 + $0x2f0] sm:$0xf0]  ;;  %v6724_v37 = vld [vmem:[%s9917_s9 + $0x2a8] sm:$0xf0] }
 0xe45   :  { %v5521_v22 = vor.u32 %v6733_v62, %v5520_v30  ;;  %v5632_v30 = vld [vmem:[%s9917_s9 + $0x348] sm:$0xf]  ;;  %v6745_v62 = vld [vmem:[%s9917_s9 + $0x350] sm:$0xf0] }
 0xe46   :  { %v2044_v46 = vpop.permute.xlu0 %2043  ;;  %v2036_v47 = vpop.permute.xlu1 %2035  ;;  %v2105_v49 = vadd.f32 %v2101_v33, %v1681_v17  ;;  %v6757_v17 = vld [vmem:[%s9917_s9 + $0x3b0] sm:$0xf0]  ;;  %v5397_v33 = vor.u32 %v6701_v52, %v5396_v15  ;;  %v5682_v15 = vld [vmem:[%s9917_s9 + $0x3b4] sm:$0xf0] }
 0xe47   :  { %v2050_v48 = vsel %vm7627_vm13, %v2036_v47, %v2044_v46  ;;  %v5681_v59 = vor.u32 %v6757_v17, %v5680_v8  ;;  %v5485_v47 = vor.u32 %v6724_v37, %v5484_v51  ;;  %v6732_v17 = vld [vmem:[%s9917_s9 + $0x2ec] sm:$0xf]  ;;  %v6734_v51 = vld [vmem:[%s9917_s9 + $0x2f8] sm:$0xf0] }
 0xe48   :  { %v2054_v1 = vadd.f32 %v2050_v48, %v2030_v45  ;;  %v2075_v45 = vpop.permute.xlu2 %2074  ;;  %v6756_v37 = vld [vmem:[%s9917_s9 + $0x3ac] sm:$0xf] }
 0xe4a   :  { %v2078_v43 = vmul.f32 %v8031_v28, %v2054_v1  ;;  %v5432_v28 = vld [vmem:[%s9917_s9 + $0x230] sm:$0xf]  ;;  %v5645_v1 = vor.u32 %v6748_v44, %v5644_v41 }
 0xe4b   :  { %v5433_v38 = vor.u32 %v6710_v13, %v5432_v28  ;;  %v5688_v44 = vld [vmem:[%s9917_s9 + $0x3b0] sm:$0xf] }
 0xe4c   :  { %v2102_v54 = vadd.f32 %v8183_v57, %v2078_v43  ;;  %v5472_v43 = vld [vmem:[%s9917_s9 + $0x288] sm:$0xf] }
 0xe4e   :  { %v2106_v60 = vadd.f32 %v2102_v54, %v1682_v18  ;;  %v2038_v56 = vpop.permute.xlu0 %2037  ;;  %v2109_v18 = vmax.f32 %v2105_v49, 0.0  ;;  %v6721_v49 = vld [vmem:[%s9917_s9 + $0x290] sm:$0xf0]  ;;  %v5384_v54 = vld [vmem:[%s9917_s9 + $0x1d0] sm:$0xf] }
 0xe4f   :  { %v2051_v19 = vsel %vm7627_vm13, %v2038_v56, %v2046_v6  ;;  %v6698_v56 = vld [vmem:[%s9917_s9 + $0x1d8] sm:$0xf0]  ;;  %v5473_v8 = vor.u32 %v6721_v49, %v5472_v43  ;;  %v5516_v43 = vld [vmem:[%s9917_s9 + $0x2d8] sm:$0xf] }
 0xe50   :  { %v2110_v57 = vmax.f32 %v2106_v60, 0.0  ;;  %v2055_v10 = vadd.f32 %v2051_v19, %v2031_v53  ;;  %v5385_v61 = vor.u32 %v6698_v56, %v5384_v54  ;;  %v5448_v19 = vld [vmem:[%s9917_s9 + $0x258] sm:$0xf]  ;;  %v6731_v54 = vld [vmem:[%s9917_s9 + $0x2e0] sm:$0xf0] }
 0xe52   :  { %v8361_v58 = vpack.c.bf16 %v2110_v57, %v2109_v18  ;;  %v2079_v46 = vmul.f32 %v8252_v42, %v2055_v10  ;;  %v5522_v18 = vld [vmem:[%s9917_s9 + $0x2f4] sm:$0xf0]  ;;  %v5460_v57 = vld [vmem:[%s9917_s9 + $0x270] sm:$0xf]  ;;  %v5348_v10 = vld [vmem:[%s9917_s9 + $0x188] sm:$0xf] }
 0xe53   :  { %v5525_v6 = vor.u32 %v6732_v17, %v5522_v18  ;;  %v5504_v18 = vld [vmem:[%s9917_s9 + $0x2c0] sm:$0xf] }
 0xe54   :  { %2443 = vmatmul.bf16.vlgmr.msra.gmra.mxu2 %v8361_v58  ;;  %2471 = vmatmul.bf16.vlgmr.msra.gmra.mxu0 %v8361_v58 }
 0xe55   :  { %2499 = vmatmul.bf16.vlgmr.msra.gmra.mxu1 %v8361_v58  ;;  %2854 = vmatpush.bf16.msra.mxu2 %v5521_v22 }
 0xe56   :  { %2896 = vmatpush.bf16.msra.mxu0 %v5433_v38  ;;  %3245 = vmatpush.bf16.msra.mxu1 %v5681_v59  ;;  %v2048_v20 = vpop.permute.xlu0 %2047  ;;  %v6718_v38 = vld [vmem:[%s9917_s9 + $0x278] sm:$0xf0]  ;;  %v5372_v59 = vld [vmem:[%s9917_s9 + $0x1b8] sm:$0xf] }
 0xe57   :  { %v2040_v21 = vpop.permute.xlu1 %2039  ;;  %v5461_v9 = vor.u32 %v6718_v38, %v5460_v57  ;;  %v5373_v11 = vor.u32 %v6695_v50, %v5372_v59  ;;  %v5664_v59 = vld [vmem:[%s9917_s9 + $0x380] sm:$0xf]  ;;  %v6752_v50 = vld [vmem:[%s9917_s9 + $0x388] sm:$0xf0] }
 0xe58   :  { %v2052_v63 = vsel %vm7627_vm13, %v2040_v21, %v2048_v20  ;;  %v6715_v20 = vld [vmem:[%s9917_s9 + $0x260] sm:$0xf0]  ;;  %v6726_v21 = vld [vmem:[%s9917_s9 + $0x2bc] sm:$0xf] }
 0xe59   :  { %2855 = vmatpush.bf16.msra.mxu2 %v5509_v26  ;;  %v2056_v32 = vadd.f32 %v2052_v63, %v2032_v31  ;;  %v5449_v53 = vor.u32 %v6715_v20, %v5448_v19  ;;  %v5609_v31 = vor.u32 %v6739_v14, %v5608_v24  ;;  %v6712_v63 = vld [vmem:[%s9917_s9 + $0x248] sm:$0xf0]  ;;  %v5501_v52 = vor.u32 %v6726_v21, %v5498_v27  ;;  %v5652_v19 = vld [vmem:[%s9917_s9 + $0x368] sm:$0xf]  ;;  %v6749_v20 = vld [vmem:[%s9917_s9 + $0x370] sm:$0xf0] }
 0xe5a   :  { %2897 = vmatpush.bf16.msra.mxu0 %v5421_v12  ;;  %3246 = vmatpush.bf16.msra.mxu1 %v5669_v29  ;;  %v5360_v12 = vld [vmem:[%s9917_s9 + $0x1a0] sm:$0xf]  ;;  %v6692_v29 = vld [vmem:[%s9917_s9 + $0x1a8] sm:$0xf0]  ;;  %v5437_v41 = vor.u32 %v6712_v63, %v5436_v16  ;;  %v6722_v21 = vld [vmem:[%s9917_s9 + $0x298] sm:$0xf0] }
 0xe5b   :  { %v2080_v48 = vmul.f32 %v2075_v45, %v2056_v32  ;;  %v5361_v23 = vor.u32 %v6692_v29, %v5360_v12  ;;  %v5596_v32 = vld [vmem:[%s9917_s9 + $0x300] sm:$0xf]  ;;  %v6758_v45 = vld [vmem:[%s9917_s9 + $0x3b8] sm:$0xf0]  ;;  %v5450_v29 = vld [vmem:[%s9917_s9 + $0x264] sm:$0xf0] }
 0xe5c   :  { %v5689_v49 = vor.u32 %v6758_v45, %v5688_v44  ;;  %v6714_v12 = vld [vmem:[%s9917_s9 + $0x25c] sm:$0xf]  ;;  %v6744_v27 = vld [vmem:[%s9917_s9 + $0x34c] sm:$0xf]  ;;  %v5634_v16 = vld [vmem:[%s9917_s9 + $0x354] sm:$0xf0] }
 0xe5d   :  { %2856 = vmatpush.bf16.msra.mxu2 %v5497_v36  ;;  %v6689_v36 = vld [vmem:[%s9917_s9 + $0x190] sm:$0xf0]  ;;  %v6746_v63 = vld [vmem:[%s9917_s9 + $0x358] sm:$0xf0]  ;;  %v5622_v44 = vld [vmem:[%s9917_s9 + $0x33c] sm:$0xf0] }
 0xe5e   :  { %2898 = vmatpush.bf16.msra.mxu0 %v5409_v34  ;;  %3247 = vmatpush.bf16.msra.mxu1 %v5657_v35  ;;  %v2094_v39 = vpop.permute.xlu0 %2093  ;;  %v6736_v34 = vld [vmem:[%s9917_s9 + $0x308] sm:$0xf0]  ;;  %v5528_v35 = vld [vmem:[%s9917_s9 + $0x2f0] sm:$0xf] }
 0xe5f   :  { %v2103_v42 = vadd.f32 %v2094_v39, %v2079_v46  ;;  %v2099_v60 = vpop.permute.xlu1 %2098  ;;  %v5349_v46 = vor.u32 %v6689_v36, %v5348_v10  ;;  %v6723_v39 = vld [vmem:[%s9917_s9 + $0x2a4] sm:$0xf]  ;;  %v5438_v36 = vld [vmem:[%s9917_s9 + $0x24c] sm:$0xf0] }
 0xe60   :  { %v2104_v28 = vadd.f32 %v2099_v60, %v2080_v48  ;;  %v5486_v48 = vld [vmem:[%s9917_s9 + $0x2ac] sm:$0xf0]  ;;  %v5670_v60 = vld [vmem:[%s9917_s9 + $0x39c] sm:$0xf0]  ;;  %v6711_v10 = vld [vmem:[%s9917_s9 + $0x244] sm:$0xf] }
 0xe61   :  { %v2107_v13 = vadd.f32 %v2103_v42, %v1683_v7  ;;  %2857 = vmatpush.bf16.msra.mxu2 %v5485_v47  ;;  %v5633_v7 = vor.u32 %v6745_v62, %v5632_v30  ;;  %v5597_v47 = vor.u32 %v6736_v34, %v5596_v32  ;;  %v6753_v42 = vld [vmem:[%s9917_s9 + $0x394] sm:$0xf]  ;;  %v5489_v56 = vor.u32 %v6723_v39, %v5486_v48  ;;  %v5676_v30 = vld [vmem:[%s9917_s9 + $0x398] sm:$0xf]  ;;  %v6755_v62 = vld [vmem:[%s9917_s9 + $0x3a0] sm:$0xf0] }
 0xe62   :  { %v2108_v22 = vadd.f32 %v2104_v28, %v1684_v55  ;;  %2899 = vmatpush.bf16.msra.mxu0 %v5397_v33  ;;  %3248 = vmatpush.bf16.msra.mxu1 %v5645_v1  ;;  %v6742_v55 = vld [vmem:[%s9917_s9 + $0x338] sm:$0xf0]  ;;  %v5529_v33 = vor.u32 %v6734_v51, %v5528_v35  ;;  %v5685_v1 = vor.u32 %v6756_v37, %v5682_v15  ;;  %v6720_v28 = vld [vmem:[%s9917_s9 + $0x28c] sm:$0xf]  ;;  %v5776_v35 = vld [vmem:[%s9917_s9 + $0x468] sm:$0xf] }
 0xe63   :  { %v2111_v0 = vmax.f32 %v2107_v13, 0.0  ;;  %v5621_v26 = vor.u32 %v6742_v55, %v5620_v5  ;;  %v5474_v13 = vld [vmem:[%s9917_s9 + $0x294] sm:$0xf0]  ;;  %v5673_v17 = vor.u32 %v6753_v42, %v5670_v60  ;;  %v5677_v57 = vor.u32 %v6755_v62, %v5676_v30  ;;  %v5462_v5 = vld [vmem:[%s9917_s9 + $0x27c] sm:$0xf0] }
 0xe64   :  { %v2112_v4 = vmax.f32 %v2108_v22, 0.0  ;;  %2848 = vmatmul.bf16.vlgmr.msrb.gmra.mxu0 %v8361_v58  ;;  %v6728_v22 = vld [vmem:[%s9917_s9 + $0x2c8] sm:$0xf0]  ;;  %v5477_v38 = vor.u32 %v6720_v28, %v5474_v13  ;;  %v5637_v34 = vor.u32 %v6744_v27, %v5634_v16  ;;  %v6781_v51 = vld [vmem:[%s9917_s9 + $0x470] sm:$0xf0]  ;;  %v5441_v45 = vor.u32 %v6711_v10, %v5438_v36 }
 0xe65   :  { %2858 = vmatpush.bf16.msra.mxu2 %v5473_v8  ;;  %2876 = vmatmul.bf16.vlgmr.msrb.gmra.mxu1 %v8361_v58  ;;  %v5517_v8 = vor.u32 %v6731_v54, %v5516_v43  ;;  %v5505_v55 = vor.u32 %v6728_v22, %v5504_v18  ;;  %v5468_v37 = vld [vmem:[%s9917_s9 + $0x278] sm:$0xf]  ;;  %v5777_v39 = vor.u32 %v6781_v51, %v5776_v35  ;;  %v6778_v43 = vld [vmem:[%s9917_s9 + $0x458] sm:$0xf0]  ;;  %v6716_v42 = vld [vmem:[%s9917_s9 + $0x268] sm:$0xf0] }
 0xe66   :  { %v8489_v40 = vpack.c.bf16 %v2112_v4, %v2111_v0  ;;  %2900 = vmatpush.bf16.msra.mxu0 %v5385_v61  ;;  %3249 = vmatpush.bf16.msra.mxu1 %v5633_v7  ;;  %v6750_v61 = vld [vmem:[%s9917_s9 + $0x37c] sm:$0xf]  ;;  %v5658_v7 = vld [vmem:[%s9917_s9 + $0x384] sm:$0xf0]  ;;  %v6717_v0 = vld [vmem:[%s9917_s9 + $0x274] sm:$0xf] }
 0xe67   :  { %v5661_v4 = vor.u32 %v6750_v61, %v5658_v7  ;;  %v6738_v60 = vld [vmem:[%s9917_s9 + $0x31c] sm:$0xf]  ;;  %v5616_v30 = vld [vmem:[%s9917_s9 + $0x320] sm:$0xf]  ;;  %v6740_v62 = vld [vmem:[%s9917_s9 + $0x328] sm:$0xf0] }
 0xe68   :  { %2457 = vmatmul.bf16.vlgmr.msrb.gmra.mxu3 %v8489_v40  ;;  %2485 = vmatmul.bf16.vlgmr.msrb.gmra.mxu2 %v8489_v40  ;;  %v5752_v13 = vld [vmem:[%s9917_s9 + $0x438] sm:$0xf]  ;;  %v6713_v22 = vld [vmem:[%s9917_s9 + $0x250] sm:$0xf0]  ;;  %v6735_v61 = vld [vmem:[%s9917_s9 + $0x304] sm:$0xf]  ;;  %v5617_v7 = vor.u32 %v6740_v62, %v5616_v30 }
 0xe69   :  { %2882 = vmatpush.bf16.msrb.mxu3 %v5525_v6  ;;  %2859 = vmatpush.bf16.msra.mxu2 %v5461_v9  ;;  %v5492_v6 = vld [vmem:[%s9917_s9 + $0x2a8] sm:$0xf]  ;;  %v5665_v9 = vor.u32 %v6752_v50, %v5664_v59  ;;  %v6737_v50 = vld [vmem:[%s9917_s9 + $0x310] sm:$0xf0]  ;;  %v6802_v27 = vld [vmem:[%s9917_s9 + $0x518] sm:$0xf0] }
 0xe6a   :  { %2901 = vmatpush.bf16.msra.mxu0 %v5373_v11  ;;  %3250 = vmatpush.bf16.msra.mxu1 %v5621_v26  ;;  %v5646_v11 = vld [vmem:[%s9917_s9 + $0x36c] sm:$0xf0]  ;;  %v5465_v26 = vor.u32 %v6717_v0, %v5462_v5  ;;  %v5493_v24 = vor.u32 %v6725_v25, %v5492_v6  ;;  %v5604_v59 = vld [vmem:[%s9917_s9 + $0x308] sm:$0xf]  ;;  %v6780_v0 = vld [vmem:[%s9917_s9 + $0x46c] sm:$0xf] }
 0xe6b   :  { %v5649_v14 = vor.u32 %v6747_v3, %v5646_v11  ;;  %v5778_v5 = vld [vmem:[%s9917_s9 + $0x474] sm:$0xf0]  ;;  %v6805_v6 = vld [vmem:[%s9917_s9 + $0x530] sm:$0xf0]  ;;  %v5754_v35 = vld [vmem:[%s9917_s9 + $0x444] sm:$0xf0] }
 0xe6c   :  { %v5938_v25 = vld [vmem:[%s9917_s9 + $0x534] sm:$0xf0]  ;;  %v6801_v16 = vld [vmem:[%s9917_s9 + $0x514] sm:$0xf] }
 0xe6d   :  { %2883 = vmatpush.bf16.msrb.mxu3 %v5513_v2  ;;  %2860 = vmatpush.bf16.msra.mxu2 %v5449_v53  ;;  %v5480_v2 = vld [vmem:[%s9917_s9 + $0x290] sm:$0xf]  ;;  %v5653_v53 = vor.u32 %v6749_v20, %v5652_v19  ;;  %v6772_v19 = vld [vmem:[%s9917_s9 + $0x428] sm:$0xf0]  ;;  %v5605_v20 = vor.u32 %v6737_v50, %v5604_v59  ;;  %v5912_v51 = vld [vmem:[%s9917_s9 + $0x4f8] sm:$0xf] }
 0xe6e   :  { %2902 = vmatpush.bf16.msra.mxu0 %v5361_v23  ;;  %3251 = vmatpush.bf16.msra.mxu1 %v5609_v31  ;;  %v5453_v23 = vor.u32 %v6714_v12, %v5450_v29  ;;  %v5640_v31 = vld [vmem:[%s9917_s9 + $0x350] sm:$0xf]  ;;  %v5481_v32 = vor.u32 %v6722_v21, %v5480_v2  ;;  %v5781_v12 = vor.u32 %v6780_v0, %v5778_v5  ;;  %v5766_v2 = vld [vmem:[%s9917_s9 + $0x45c] sm:$0xf0]  ;;  %v6782_v0 = vld [vmem:[%s9917_s9 + $0x478] sm:$0xf0] }
 0xe6f   :  { %v5641_v15 = vor.u32 %v6746_v63, %v5640_v31  ;;  %v5728_v31 = vld [vmem:[%s9917_s9 + $0x408] sm:$0xf]  ;;  %v6769_v63 = vld [vmem:[%s9917_s9 + $0x410] sm:$0xf0]  ;;  %v5784_v50 = vld [vmem:[%s9917_s9 + $0x470] sm:$0xf] }
 0xe71   :  { %2884 = vmatpush.bf16.msrb.mxu3 %v5501_v52  ;;  %2861 = vmatpush.bf16.msra.mxu2 %v5437_v41  ;;  %v6719_v52 = vld [vmem:[%s9917_s9 + $0x280] sm:$0xf0]  ;;  %v6741_v41 = vld [vmem:[%s9917_s9 + $0x334] sm:$0xf] }
 0xe72   :  { %2903 = vmatpush.bf16.msra.mxu0 %v5349_v46  ;;  %3252 = vmatpush.bf16.msra.mxu1 %v5597_v47  ;;  %v5628_v46 = vld [vmem:[%s9917_s9 + $0x338] sm:$0xf]  ;;  %v6743_v47 = vld [vmem:[%s9917_s9 + $0x340] sm:$0xf0]  ;;  %v5469_v48 = vor.u32 %v6719_v52, %v5468_v37  ;;  %v5729_v37 = vor.u32 %v6769_v63, %v5728_v31  ;;  %v6798_v52 = vld [vmem:[%s9917_s9 + $0x4fc] sm:$0xf] }
 0xe73   :  { %v5629_v54 = vor.u32 %v6743_v47, %v5628_v46 }
 0xe75   :  { %2910 = vmatpush.bf16.msrb.mxu2 %v5529_v33  ;;  %2885 = vmatpush.bf16.msrb.mxu3 %v5489_v56  ;;  %v5625_v33 = vor.u32 %v6741_v41, %v5622_v44  ;;  %v5610_v56 = vld [vmem:[%s9917_s9 + $0x324] sm:$0xf0]  ;;  %v5716_v44 = vld [vmem:[%s9917_s9 + $0x3f0] sm:$0xf] }
 0xe76   :  { %3273 = vmatpush.bf16.msrb.mxu0 %v5685_v1  ;;  %3301 = vmatpush.bf16.msrb.mxu1 %v5689_v49  ;;  %v5764_v1 = vld [vmem:[%s9917_s9 + $0x450] sm:$0xf]  ;;  %v5456_v49 = vld [vmem:[%s9917_s9 + $0x260] sm:$0xf]  ;;  %v5613_v18 = vor.u32 %v6738_v60, %v5610_v56  ;;  %v5914_v41 = vld [vmem:[%s9917_s9 + $0x504] sm:$0xf0] }
 0xe77   :  { %2904 = vmatmul.bf16.vlgmr.msra.gmra.mxu0 %v8361_v58  ;;  %3253 = vmatmul.bf16.vlgmr.msra.gmra.mxu1 %v8361_v58  ;;  %v5765_v28 = vor.u32 %v6778_v43, %v5764_v1  ;;  %v5900_v1 = vld [vmem:[%s9917_s9 + $0x4e0] sm:$0xf]  ;;  %v5704_v60 = vld [vmem:[%s9917_s9 + $0x3d8] sm:$0xf]  ;;  %v6763_v56 = vld [vmem:[%s9917_s9 + $0x3e0] sm:$0xf0] }
 0xe78   :  { %2513 = vmatmul.bf16.vlgmr.msra.gmra.mxu3 %v8489_v40  ;;  %2862 = vmatmul.bf16.vlgmr.msra.gmra.mxu2 %v8489_v40 }
 0xe79   :  { %2911 = vmatpush.bf16.msrb.mxu2 %v5517_v8  ;;  %2886 = vmatpush.bf16.msrb.mxu3 %v5477_v38  ;;  %v6775_v8 = vld [vmem:[%s9917_s9 + $0x440] sm:$0xf0]  ;;  %v5598_v38 = vld [vmem:[%s9917_s9 + $0x30c] sm:$0xf0] }
 0xe7a   :  { %3274 = vmatpush.bf16.msrb.mxu0 %v5673_v17  ;;  %3302 = vmatpush.bf16.msrb.mxu1 %v5677_v57  ;;  %v5457_v17 = vor.u32 %v6716_v42, %v5456_v49  ;;  %v5444_v57 = vld [vmem:[%s9917_s9 + $0x248] sm:$0xf]  ;;  %v5601_v11 = vor.u32 %v6735_v61, %v5598_v38  ;;  %v6796_v49 = vld [vmem:[%s9917_s9 + $0x4e8] sm:$0xf0]  ;;  %v5902_v42 = vld [vmem:[%s9917_s9 + $0x4ec] sm:$0xf0] }
 0xe7b   :  { %v5445_v3 = vor.u32 %v6713_v22, %v5444_v57  ;;  %v5901_v62 = vor.u32 %v6796_v49, %v5900_v1  ;;  %v6793_v57 = vld [vmem:[%s9917_s9 + $0x4d0] sm:$0xf0]  ;;  %v6792_v22 = vld [vmem:[%s9917_s9 + $0x4cc] sm:$0xf]  ;;  %v5890_v61 = vld [vmem:[%s9917_s9 + $0x4d4] sm:$0xf0] }
 0xe7c   :  { %v6760_v38 = vld [vmem:[%s9917_s9 + $0x3c8] sm:$0xf0]  ;;  %v6853_v1 = vld [vmem:[%s9917_s9 + $0x6b0] sm:$0xf0] }
 0xe7d   :  { %2912 = vmatpush.bf16.msrb.mxu2 %v5505_v55  ;;  %2887 = vmatpush.bf16.msrb.mxu3 %v5465_v26  ;;  %v5936_v55 = vld [vmem:[%s9917_s9 + $0x528] sm:$0xf]  ;;  %v5740_v26 = vld [vmem:[%s9917_s9 + $0x420] sm:$0xf] }
 0xe7e   :  { %3275 = vmatpush.bf16.msrb.mxu0 %v5661_v4  ;;  %3303 = vmatpush.bf16.msrb.mxu1 %v5665_v9  ;;  %v5753_v4 = vor.u32 %v6775_v8, %v5752_v13  ;;  %v6804_v9 = vld [vmem:[%s9917_s9 + $0x52c] sm:$0xf]  ;;  %v5937_v29 = vor.u32 %v6805_v6, %v5936_v55  ;;  %v5741_v21 = vor.u32 %v6772_v19, %v5740_v26  ;;  %v5730_v8 = vld [vmem:[%s9917_s9 + $0x414] sm:$0xf0]  ;;  %v5718_v6 = vld [vmem:[%s9917_s9 + $0x3fc] sm:$0xf0] }
 0xe7f   :  { %v6768_v13 = vld [vmem:[%s9917_s9 + $0x40c] sm:$0xf]  ;;  %v5893_v55 = vor.u32 %v6792_v22, %v5890_v61  ;;  %v5878_v26 = vld [vmem:[%s9917_s9 + $0x4bc] sm:$0xf0]  ;;  %v5785_v19 = vor.u32 %v6782_v0, %v5784_v50  ;;  %v5736_v22 = vld [vmem:[%s9917_s9 + $0x410] sm:$0xf] }
 0xe80   :  { %v5733_v59 = vor.u32 %v6768_v13, %v5730_v8  ;;  %v5932_v13 = vld [vmem:[%s9917_s9 + $0x518] sm:$0xf]  ;;  %v6803_v8 = vld [vmem:[%s9917_s9 + $0x520] sm:$0xf0]  ;;  %v6770_v61 = vld [vmem:[%s9917_s9 + $0x418] sm:$0xf0] }
 0xe81   :  { %2913 = vmatpush.bf16.msrb.mxu2 %v5493_v24  ;;  %2888 = vmatpush.bf16.msrb.mxu3 %v5453_v23  ;;  %v5941_v24 = vor.u32 %v6804_v9, %v5938_v25  ;;  %v5926_v23 = vld [vmem:[%s9917_s9 + $0x51c] sm:$0xf0]  ;;  %v5876_v9 = vld [vmem:[%s9917_s9 + $0x4b0] sm:$0xf]  ;;  %v6823_v0 = vld [vmem:[%s9917_s9 + $0x5c0] sm:$0xf0] }
 0xe82   :  { %3276 = vmatpush.bf16.msrb.mxu0 %v5649_v14  ;;  %3304 = vmatpush.bf16.msrb.mxu1 %v5653_v53  ;;  %v6777_v14 = vld [vmem:[%s9917_s9 + $0x454] sm:$0xf]  ;;  %v5924_v53 = vld [vmem:[%s9917_s9 + $0x510] sm:$0xf] }
 0xe83   :  { %v5769_v10 = vor.u32 %v6777_v14, %v5766_v2  ;;  %v5925_v36 = vor.u32 %v6802_v27, %v5924_v53  ;;  %v6762_v2 = vld [vmem:[%s9917_s9 + $0x3dc] sm:$0xf]  ;;  %v5706_v53 = vld [vmem:[%s9917_s9 + $0x3e4] sm:$0xf0]  ;;  %v6787_v27 = vld [vmem:[%s9917_s9 + $0x4a0] sm:$0xf0] }
 0xe84   :  { %v5709_v63 = vor.u32 %v6762_v2, %v5706_v53  ;;  %v6156_v2 = vld [vmem:[%s9917_s9 + $0x660] sm:$0xf]  ;;  %v6844_v53 = vld [vmem:[%s9917_s9 + $0x668] sm:$0xf0] }
 0xe85   :  { %2914 = vmatpush.bf16.msrb.mxu2 %v5481_v32  ;;  %2889 = vmatpush.bf16.msrb.mxu3 %v5441_v45  ;;  %v5929_v32 = vor.u32 %v6801_v16, %v5926_v23  ;;  %v6766_v45 = vld [vmem:[%s9917_s9 + $0x3f8] sm:$0xf0]  ;;  %v5866_v23 = vld [vmem:[%s9917_s9 + $0x4a4] sm:$0xf0] }
 0xe86   :  { %3277 = vmatpush.bf16.msrb.mxu0 %v5637_v34  ;;  %3305 = vmatpush.bf16.msrb.mxu1 %v5641_v15  ;;  %v6774_v34 = vld [vmem:[%s9917_s9 + $0x43c] sm:$0xf]  ;;  %v6799_v15 = vld [vmem:[%s9917_s9 + $0x500] sm:$0xf0]  ;;  %v5717_v43 = vor.u32 %v6766_v45, %v5716_v44  ;;  %v6032_v44 = vld [vmem:[%s9917_s9 + $0x5e8] sm:$0xf] }
 0xe87   :  { %v5757_v46 = vor.u32 %v6774_v34, %v5754_v35  ;;  %v5913_v47 = vor.u32 %v6799_v15, %v5912_v51  ;;  %v6786_v16 = vld [vmem:[%s9917_s9 + $0x49c] sm:$0xf]  ;;  %v5694_v51 = vld [vmem:[%s9917_s9 + $0x3cc] sm:$0xf0]  ;;  %v6784_v15 = vld [vmem:[%s9917_s9 + $0x488] sm:$0xf0] }
 0xe88   :  { %2890 = vmatmul.bf16.vlgmr.msrb.gmra.mxu3 %v8489_v40  ;;  %v5869_v35 = vor.u32 %v6786_v16, %v5866_v23 }
 0xe89   :  { %3259 = vmatpush.bf16.msra.mxu3 %v5777_v39  ;;  %2915 = vmatpush.bf16.msrb.mxu2 %v5469_v48  ;;  %v5917_v39 = vor.u32 %v6798_v52, %v5914_v41  ;;  %v6771_v48 = vld [vmem:[%s9917_s9 + $0x424] sm:$0xf]  ;;  %v5854_v41 = vld [vmem:[%s9917_s9 + $0x48c] sm:$0xf0] }
 0xe8a   :  { %3278 = vmatpush.bf16.msrb.mxu0 %v5625_v33  ;;  %3306 = vmatpush.bf16.msrb.mxu1 %v5629_v54  ;;  %v5742_v33 = vld [vmem:[%s9917_s9 + $0x42c] sm:$0xf0]  ;;  %v6795_v54 = vld [vmem:[%s9917_s9 + $0x4e4] sm:$0xf] }
 0xe8b   :  { %v5745_v30 = vor.u32 %v6771_v48, %v5742_v33  ;;  %v6783_v52 = vld [vmem:[%s9917_s9 + $0x484] sm:$0xf]  ;;  %v6192_v33 = vld [vmem:[%s9917_s9 + $0x6a8] sm:$0xf] }
 0xe8c   :  { %v5857_v49 = vor.u32 %v6783_v52, %v5854_v41 }
 0xe8d   :  { %3260 = vmatpush.bf16.msra.mxu3 %v5765_v28  ;;  %2916 = vmatpush.bf16.msrb.mxu2 %v5457_v17  ;;  %v5905_v28 = vor.u32 %v6795_v54, %v5902_v42  ;;  %v5888_v17 = vld [vmem:[%s9917_s9 + $0x4c8] sm:$0xf]  ;;  %v6773_v42 = vld [vmem:[%s9917_s9 + $0x430] sm:$0xf0] }
 0xe8e   :  { %3279 = vmatpush.bf16.msrb.mxu0 %v5613_v18  ;;  %3307 = vmatpush.bf16.msrb.mxu1 %v5617_v7  ;;  %v5705_v18 = vor.u32 %v6763_v56, %v5704_v60  ;;  %v5692_v7 = vld [vmem:[%s9917_s9 + $0x3c0] sm:$0xf]  ;;  %v5889_v5 = vor.u32 %v6793_v57, %v5888_v17  ;;  %v5748_v54 = vld [vmem:[%s9917_s9 + $0x428] sm:$0xf]  ;;  %v6850_v57 = vld [vmem:[%s9917_s9 + $0x698] sm:$0xf0] }
 0xe8f   :  { %v5693_v25 = vor.u32 %v6760_v38, %v5692_v7  ;;  %v5749_v17 = vor.u32 %v6773_v42, %v5748_v54  ;;  %v5933_v38 = vor.u32 %v6803_v8, %v5932_v13  ;;  %v6811_v13 = vld [vmem:[%s9917_s9 + $0x560] sm:$0xf0]  ;;  %v5872_v8 = vld [vmem:[%s9917_s9 + $0x4a0] sm:$0xf] }
 0xe91   :  { %3261 = vmatpush.bf16.msra.mxu3 %v5753_v4  ;;  %2917 = vmatpush.bf16.msrb.mxu2 %v5445_v3  ;;  %v6765_v4 = vld [vmem:[%s9917_s9 + $0x3f4] sm:$0xf]  ;;  %v6790_v3 = vld [vmem:[%s9917_s9 + $0x4b8] sm:$0xf0] }
 0xe92   :  { %3280 = vmatpush.bf16.msrb.mxu0 %v5601_v11  ;;  %3308 = vmatpush.bf16.msrb.mxu1 %v5605_v20  ;;  %v6789_v11 = vld [vmem:[%s9917_s9 + $0x4b4] sm:$0xf]  ;;  %v5721_v20 = vor.u32 %v6765_v4, %v5718_v6  ;;  %v5737_v4 = vor.u32 %v6770_v61, %v5736_v22  ;;  %v6168_v6 = vld [vmem:[%s9917_s9 + $0x678] sm:$0xf]  ;;  %v6822_v61 = vld [vmem:[%s9917_s9 + $0x5bc] sm:$0xf] }
 0xe93   :  { %v5881_v14 = vor.u32 %v6789_v11, %v5878_v26 }
 0xe94   :  { %2918 = vmatmul.bf16.vlgmr.msrb.gmra.mxu2 %v8489_v40 }
 0xe95   :  { %3287 = vmatpush.bf16.msra.mxu2 %v5781_v12  ;;  %3262 = vmatpush.bf16.msra.mxu3 %v5741_v21  ;;  %v5772_v12 = vld [vmem:[%s9917_s9 + $0x458] sm:$0xf] }
 0xe96   :  { %3650 = vmatpush.bf16.msra.mxu0 %v5937_v29  ;;  %3678 = vmatpush.bf16.msra.mxu1 %v5941_v24  ;;  %v6779_v29 = vld [vmem:[%s9917_s9 + $0x460] sm:$0xf0]  ;;  %v5877_v24 = vor.u32 %v6790_v3, %v5876_v9  ;;  %v5864_v21 = vld [vmem:[%s9917_s9 + $0x498] sm:$0xf] }
 0xe97   :  { %3281 = vmatmul.bf16.vlgmr.msrb.gmra.mxu0 %v8361_v58  ;;  %3309 = vmatmul.bf16.vlgmr.msrb.gmra.mxu1 %v8361_v58  ;;  %v5773_v31 = vor.u32 %v6779_v29, %v5772_v12  ;;  %v5865_v34 = vor.u32 %v6787_v27, %v5864_v21  ;;  %v6847_v9 = vld [vmem:[%s9917_s9 + $0x680] sm:$0xf0]  ;;  %v6820_v12 = vld [vmem:[%s9917_s9 + $0x5a8] sm:$0xf0]  ;;  %v5908_v29 = vld [vmem:[%s9917_s9 + $0x4e8] sm:$0xf] }
 0xe98   :  { %v6767_v3 = vld [vmem:[%s9917_s9 + $0x400] sm:$0xf0]  ;;  %v5712_v21 = vld [vmem:[%s9917_s9 + $0x3e0] sm:$0xf]  ;;  %v6764_v27 = vld [vmem:[%s9917_s9 + $0x3e8] sm:$0xf0] }
 0xe99   :  { %3288 = vmatpush.bf16.msra.mxu2 %v5769_v10  ;;  %3263 = vmatpush.bf16.msra.mxu3 %v5729_v37  ;;  %v5760_v10 = vld [vmem:[%s9917_s9 + $0x440] sm:$0xf] }
 0xe9a   :  { %3651 = vmatpush.bf16.msra.mxu0 %v5925_v36  ;;  %3679 = vmatpush.bf16.msra.mxu1 %v5929_v32  ;;  %v6776_v36 = vld [vmem:[%s9917_s9 + $0x448] sm:$0xf0]  ;;  %v6759_v32 = vld [vmem:[%s9917_s9 + $0x3c4] sm:$0xf]  ;;  %v5852_v37 = vld [vmem:[%s9917_s9 + $0x480] sm:$0xf] }
 0xe9b   :  { %v5761_v45 = vor.u32 %v6776_v36, %v5760_v10  ;;  %v5697_v48 = vor.u32 %v6759_v32, %v5694_v51  ;;  %v6817_v10 = vld [vmem:[%s9917_s9 + $0x590] sm:$0xf0]  ;;  %v5896_v36 = vld [vmem:[%s9917_s9 + $0x4d0] sm:$0xf]  ;;  %v6794_v32 = vld [vmem:[%s9917_s9 + $0x4d8] sm:$0xf0] }
 0xe9c   :  { %v6841_v51 = vld [vmem:[%s9917_s9 + $0x650] sm:$0xf0]  ;;  %v5897_v41 = vor.u32 %v6794_v32, %v5896_v36  ;;  %v6182_v36 = vld [vmem:[%s9917_s9 + $0x69c] sm:$0xf0]  ;;  %v6188_v32 = vld [vmem:[%s9917_s9 + $0x698] sm:$0xf] }
 0xe9d   :  { %3289 = vmatpush.bf16.msra.mxu2 %v5757_v46  ;;  %3264 = vmatpush.bf16.msra.mxu3 %v5717_v43  ;;  %v6829_v46 = vld [vmem:[%s9917_s9 + $0x5f0] sm:$0xf0]  ;;  %v5853_v43 = vor.u32 %v6784_v15, %v5852_v37  ;;  %v5700_v37 = vld [vmem:[%s9917_s9 + $0x3c8] sm:$0xf] }
 0xe9e   :  { %3652 = vmatpush.bf16.msra.mxu0 %v5913_v47  ;;  %3680 = vmatpush.bf16.msra.mxu1 %v5917_v39  ;;  %v5944_v47 = vld [vmem:[%s9917_s9 + $0x530] sm:$0xf]  ;;  %v6806_v39 = vld [vmem:[%s9917_s9 + $0x538] sm:$0xf0]  ;;  %v6033_v60 = vor.u32 %v6829_v46, %v6032_v44  ;;  %v6761_v15 = vld [vmem:[%s9917_s9 + $0x3d0] sm:$0xf0] }
 0xe9f   :  { %v5945_v56 = vor.u32 %v6806_v39, %v5944_v47  ;;  %v6828_v44 = vld [vmem:[%s9917_s9 + $0x5ec] sm:$0xf]  ;;  %v5972_v46 = vld [vmem:[%s9917_s9 + $0x570] sm:$0xf]  ;;  %v6814_v39 = vld [vmem:[%s9917_s9 + $0x578] sm:$0xf0] }
 0xea0   :  { %v5973_v42 = vor.u32 %v6814_v39, %v5972_v46  ;;  %v6176_v39 = vld [vmem:[%s9917_s9 + $0x680] sm:$0xf] }
 0xea1   :  { %3290 = vmatpush.bf16.msra.mxu2 %v5745_v30  ;;  %3265 = vmatpush.bf16.msra.mxu3 %v5705_v18  ;;  %v6020_v30 = vld [vmem:[%s9917_s9 + $0x5d0] sm:$0xf] }
 0xea2   :  { %3653 = vmatpush.bf16.msra.mxu0 %v5901_v62  ;;  %3681 = vmatpush.bf16.msra.mxu1 %v5905_v28  ;;  %v6193_v62 = vor.u32 %v6853_v1, %v6192_v33  ;;  %v6826_v28 = vld [vmem:[%s9917_s9 + $0x5d8] sm:$0xf0]  ;;  %v6180_v18 = vld [vmem:[%s9917_s9 + $0x690] sm:$0xf]  ;;  %v6791_v33 = vld [vmem:[%s9917_s9 + $0x4c0] sm:$0xf0]  ;;  %v5701_v1 = vor.u32 %v6761_v15, %v5700_v37 }
 0xea3   :  { %v6021_v7 = vor.u32 %v6826_v28, %v6020_v30  ;;  %v6181_v50 = vor.u32 %v6850_v57, %v6180_v18  ;;  %v6022_v30 = vld [vmem:[%s9917_s9 + $0x5dc] sm:$0xf0]  ;;  %v6120_v18 = vld [vmem:[%s9917_s9 + $0x618] sm:$0xf]  ;;  %v6835_v57 = vld [vmem:[%s9917_s9 + $0x620] sm:$0xf0] }
 0xea5   :  { %3291 = vmatpush.bf16.msra.mxu2 %v5733_v59  ;;  %3266 = vmatpush.bf16.msra.mxu3 %v5693_v25  ;;  %v6008_v59 = vld [vmem:[%s9917_s9 + $0x5b8] sm:$0xf] }
 0xea6   :  { %3654 = vmatpush.bf16.msra.mxu0 %v5889_v5  ;;  %3682 = vmatpush.bf16.msra.mxu1 %v5893_v55  ;;  %v5920_v5 = vld [vmem:[%s9917_s9 + $0x500] sm:$0xf]  ;;  %v6800_v55 = vld [vmem:[%s9917_s9 + $0x508] sm:$0xf0]  ;;  %v5724_v25 = vld [vmem:[%s9917_s9 + $0x3f8] sm:$0xf]  ;;  %v6009_v11 = vor.u32 %v6823_v0, %v6008_v59 }
 0xea7   :  { %v5921_v26 = vor.u32 %v6800_v55, %v5920_v5  ;;  %v6808_v0 = vld [vmem:[%s9917_s9 + $0x548] sm:$0xf0]  ;;  %v5860_v5 = vld [vmem:[%s9917_s9 + $0x488] sm:$0xf]  ;;  %v6121_v55 = vor.u32 %v6835_v57, %v6120_v18 }
 0xea8   :  { %3267 = vmatmul.bf16.vlgmr.msra.gmra.mxu3 %v8489_v40 }
 0xea9   :  { %3315 = vmatpush.bf16.msrb.mxu3 %v5785_v19  ;;  %3292 = vmatpush.bf16.msra.mxu2 %v5721_v20  ;;  %v5996_v19 = vld [vmem:[%s9917_s9 + $0x5a0] sm:$0xf]  ;;  %v6169_v20 = vor.u32 %v6847_v9, %v6168_v6  ;;  %v6832_v9 = vld [vmem:[%s9917_s9 + $0x608] sm:$0xf0] }
 0xeaa   :  { %3655 = vmatpush.bf16.msra.mxu0 %v5877_v24  ;;  %3683 = vmatpush.bf16.msra.mxu1 %v5881_v14  ;;  %v6797_v24 = vld [vmem:[%s9917_s9 + $0x4f0] sm:$0xf0]  ;;  %v5725_v14 = vor.u32 %v6767_v3, %v5724_v25  ;;  %v5997_v16 = vor.u32 %v6820_v12, %v5996_v19  ;;  %v6108_v6 = vld [vmem:[%s9917_s9 + $0x600] sm:$0xf]  ;;  %v6040_v25 = vld [vmem:[%s9917_s9 + $0x5f0] sm:$0xf] }
 0xeab   :  { %v5909_v23 = vor.u32 %v6797_v24, %v5908_v29  ;;  %v6830_v3 = vld [vmem:[%s9917_s9 + $0x5f8] sm:$0xf0]  ;;  %v6194_v19 = vld [vmem:[%s9917_s9 + $0x6b4] sm:$0xf0] }
 0xeac   :  { %v6854_v12 = vld [vmem:[%s9917_s9 + $0x6b8] sm:$0xf0] }
 0xead   :  { %3316 = vmatpush.bf16.msrb.mxu3 %v5773_v31  ;;  %3293 = vmatpush.bf16.msra.mxu2 %v5709_v63  ;;  %v5984_v31 = vld [vmem:[%s9917_s9 + $0x588] sm:$0xf]  ;;  %v6157_v63 = vor.u32 %v6844_v53, %v6156_v2  ;;  %v5998_v2 = vld [vmem:[%s9917_s9 + $0x5ac] sm:$0xf0]  ;;  %v6109_v53 = vor.u32 %v6832_v9, %v6108_v6 }
 0xeae   :  { %3656 = vmatpush.bf16.msra.mxu0 %v5865_v34  ;;  %3684 = vmatpush.bf16.msra.mxu1 %v5869_v35  ;;  %v5713_v34 = vor.u32 %v6764_v27, %v5712_v21  ;;  %v6144_v35 = vld [vmem:[%s9917_s9 + $0x648] sm:$0xf]  ;;  %v5985_v52 = vor.u32 %v6817_v10, %v5984_v31  ;;  %v6041_v21 = vor.u32 %v6830_v3, %v6040_v25  ;;  %v6827_v31 = vld [vmem:[%s9917_s9 + $0x5e0] sm:$0xf0]  ;;  %v6877_v25 = vld [vmem:[%s9917_s9 + $0x770] sm:$0xf0] }
 0xeaf   :  { %v6145_v47 = vor.u32 %v6841_v51, %v6144_v35  ;;  %v6816_v35 = vld [vmem:[%s9917_s9 + $0x58c] sm:$0xf]  ;;  %v5986_v51 = vld [vmem:[%s9917_s9 + $0x594] sm:$0xf0]  ;;  %v6288_v9 = vld [vmem:[%s9917_s9 + $0x768] sm:$0xf] }
 0xeb0   :  { %v5989_v46 = vor.u32 %v6816_v35, %v5986_v51  ;;  %v6836_v35 = vld [vmem:[%s9917_s9 + $0x628] sm:$0xf0] }
 0xeb1   :  { %3317 = vmatpush.bf16.msrb.mxu3 %v5761_v45  ;;  %3294 = vmatpush.bf16.msra.mxu2 %v5697_v48  ;;  %v6034_v45 = vld [vmem:[%s9917_s9 + $0x5f4] sm:$0xf0] }
 0xeb2   :  { %3657 = vmatpush.bf16.msra.mxu0 %v5853_v43  ;;  %3685 = vmatpush.bf16.msra.mxu1 %v5857_v49  ;;  %v5884_v48 = vld [vmem:[%s9917_s9 + $0x4b8] sm:$0xf]  ;;  %v6132_v43 = vld [vmem:[%s9917_s9 + $0x630] sm:$0xf]  ;;  %v6838_v49 = vld [vmem:[%s9917_s9 + $0x638] sm:$0xf0]  ;;  %v6037_v54 = vor.u32 %v6828_v44, %v6034_v45 }
 0xeb3   :  { %v6133_v28 = vor.u32 %v6838_v49, %v6132_v43  ;;  %v6824_v44 = vld [vmem:[%s9917_s9 + $0x5c8] sm:$0xf0]  ;;  %v6846_v45 = vld [vmem:[%s9917_s9 + $0x67c] sm:$0xf] }
 0xeb4   :  { %3295 = vmatmul.bf16.vlgmr.msra.gmra.mxu2 %v8489_v40 }
 0xeb5   :  { %3664 = vmatpush.bf16.msrb.mxu2 %v6033_v60  ;;  %3318 = vmatpush.bf16.msrb.mxu3 %v5749_v17  ;;  %v5885_v60 = vor.u32 %v6791_v33, %v5884_v48  ;;  %v6788_v17 = vld [vmem:[%s9917_s9 + $0x4a8] sm:$0xf0]  ;;  %v6813_v33 = vld [vmem:[%s9917_s9 + $0x574] sm:$0xf] }
 0xeb6   :  { %3706 = vmatpush.bf16.msrb.mxu0 %v5945_v56  ;;  %4055 = vmatpush.bf16.msrb.mxu1 %v6193_v62  ;;  %v6825_v56 = vld [vmem:[%s9917_s9 + $0x5d4] sm:$0xf]  ;;  %v5960_v62 = vld [vmem:[%s9917_s9 + $0x558] sm:$0xf]  ;;  %v5873_v59 = vor.u32 %v6788_v17, %v5872_v8  ;;  %v6848_v48 = vld [vmem:[%s9917_s9 + $0x688] sm:$0xf0] }
 0xeb7   :  { %3658 = vmatmul.bf16.vlgmr.msra.gmra.mxu0 %v8361_v58  ;;  %3686 = vmatmul.bf16.vlgmr.msra.gmra.mxu1 %v8361_v58  ;;  %v6025_v22 = vor.u32 %v6825_v56, %v6022_v30  ;;  %v6843_v56 = vld [vmem:[%s9917_s9 + $0x664] sm:$0xf]  ;;  %v6810_v8 = vld [vmem:[%s9917_s9 + $0x55c] sm:$0xf]  ;;  %v5962_v17 = vld [vmem:[%s9917_s9 + $0x564] sm:$0xf0] }
 0xeb9   :  { %3665 = vmatpush.bf16.msrb.mxu2 %v6021_v7  ;;  %3319 = vmatpush.bf16.msrb.mxu3 %v5737_v4  ;;  %v6010_v7 = vld [vmem:[%s9917_s9 + $0x5c4] sm:$0xf0]  ;;  %v6785_v4 = vld [vmem:[%s9917_s9 + $0x490] sm:$0xf0] }
 0xeba   :  { %3707 = vmatpush.bf16.msrb.mxu0 %v5933_v38  ;;  %4056 = vmatpush.bf16.msrb.mxu1 %v6181_v50  ;;  %v5961_v38 = vor.u32 %v6811_v13, %v5960_v62  ;;  %v5948_v50 = vld [vmem:[%s9917_s9 + $0x540] sm:$0xf]  ;;  %v5861_v24 = vor.u32 %v6785_v4, %v5860_v5  ;;  %v6158_v62 = vld [vmem:[%s9917_s9 + $0x66c] sm:$0xf0]  ;;  %v6845_v13 = vld [vmem:[%s9917_s9 + $0x670] sm:$0xf0] }
 0xebb   :  { %v5949_v29 = vor.u32 %v6808_v0, %v5948_v50  ;;  %v6161_v57 = vor.u32 %v6843_v56, %v6158_v62  ;;  %v6146_v50 = vld [vmem:[%s9917_s9 + $0x654] sm:$0xf0]  ;;  %v6152_v0 = vld [vmem:[%s9917_s9 + $0x650] sm:$0xf]  ;;  %v6842_v5 = vld [vmem:[%s9917_s9 + $0x658] sm:$0xf0] }
 0xebc   :  { %v5950_v4 = vld [vmem:[%s9917_s9 + $0x54c] sm:$0xf0]  ;;  %v6450_v62 = vld [vmem:[%s9917_s9 + $0x834] sm:$0xf0] }
 0xebd   :  { %3666 = vmatpush.bf16.msrb.mxu2 %v6009_v11  ;;  %3320 = vmatpush.bf16.msrb.mxu3 %v5725_v14  ;;  %v6852_v11 = vld [vmem:[%s9917_s9 + $0x6ac] sm:$0xf]  ;;  %v6819_v14 = vld [vmem:[%s9917_s9 + $0x5a4] sm:$0xf] }
 0xebe   :  { %3708 = vmatpush.bf16.msrb.mxu0 %v5921_v26  ;;  %4057 = vmatpush.bf16.msrb.mxu1 %v6169_v20  ;;  %v6013_v26 = vor.u32 %v6822_v61, %v6010_v7  ;;  %v6200_v20 = vld [vmem:[%s9917_s9 + $0x6b0] sm:$0xf]  ;;  %v6197_v27 = vor.u32 %v6852_v11, %v6194_v19  ;;  %v6001_v10 = vor.u32 %v6819_v14, %v5998_v2  ;;  %v6818_v7 = vld [vmem:[%s9917_s9 + $0x598] sm:$0xf0]  ;;  %v6815_v19 = vld [vmem:[%s9917_s9 + $0x580] sm:$0xf0] }
 0xebf   :  { %v5992_v61 = vld [vmem:[%s9917_s9 + $0x590] sm:$0xf]  ;;  %v6153_v11 = vor.u32 %v6842_v5, %v6152_v0  ;;  %v6140_v14 = vld [vmem:[%s9917_s9 + $0x638] sm:$0xf]  ;;  %v6839_v2 = vld [vmem:[%s9917_s9 + $0x640] sm:$0xf0] }
 0xec0   :  { %v5993_v6 = vor.u32 %v6818_v7, %v5992_v61  ;;  %v6897_v5 = vld [vmem:[%s9917_s9 + $0x814] sm:$0xf] }
 0xec1   :  { %3667 = vmatpush.bf16.msrb.mxu2 %v5997_v16  ;;  %3321 = vmatpush.bf16.msrb.mxu3 %v5713_v34  ;;  %v6201_v16 = vor.u32 %v6854_v12, %v6200_v20  ;;  %v6851_v34 = vld [vmem:[%s9917_s9 + $0x6a0] sm:$0xf0]  ;;  %v6837_v20 = vld [vmem:[%s9917_s9 + $0x634] sm:$0xf] }
 0xec2   :  { %3709 = vmatpush.bf16.msrb.mxu0 %v5909_v23  ;;  %4058 = vmatpush.bf16.msrb.mxu1 %v6157_v63  ;;  %v6028_v23 = vld [vmem:[%s9917_s9 + $0x5d8] sm:$0xf]  ;;  %v6849_v63 = vld [vmem:[%s9917_s9 + $0x694] sm:$0xf] }
 0xec3   :  { %v6029_v37 = vor.u32 %v6827_v31, %v6028_v23  ;;  %v6185_v15 = vor.u32 %v6849_v63, %v6182_v36  ;;  %v6141_v31 = vor.u32 %v6839_v2, %v6140_v14  ;;  %v5968_v63 = vld [vmem:[%s9917_s9 + $0x560] sm:$0xf]  ;;  %v6834_v36 = vld [vmem:[%s9917_s9 + $0x61c] sm:$0xf] }
 0xec4   :  { %v6894_v2 = vld [vmem:[%s9917_s9 + $0x7fc] sm:$0xf] }
 0xec5   :  { %3668 = vmatpush.bf16.msrb.mxu2 %v5985_v52  ;;  %3322 = vmatpush.bf16.msrb.mxu3 %v5701_v1  ;;  %v6189_v52 = vor.u32 %v6851_v34, %v6188_v32  ;;  %v5974_v1 = vld [vmem:[%s9917_s9 + $0x57c] sm:$0xf0]  ;;  %v6122_v32 = vld [vmem:[%s9917_s9 + $0x624] sm:$0xf0] }
 0xec6   :  { %3710 = vmatpush.bf16.msrb.mxu0 %v5897_v41  ;;  %4059 = vmatpush.bf16.msrb.mxu1 %v6145_v47  ;;  %v6016_v41 = vld [vmem:[%s9917_s9 + $0x5c0] sm:$0xf]  ;;  %v6170_v47 = vld [vmem:[%s9917_s9 + $0x684] sm:$0xf0]  ;;  %v5977_v30 = vor.u32 %v6813_v33, %v5974_v1  ;;  %v6833_v33 = vld [vmem:[%s9917_s9 + $0x610] sm:$0xf0] }
 0xec7   :  { %v6017_v43 = vor.u32 %v6824_v44, %v6016_v41  ;;  %v6173_v49 = vor.u32 %v6846_v45, %v6170_v47  ;;  %v6128_v34 = vld [vmem:[%s9917_s9 + $0x620] sm:$0xf]  ;;  %v5956_v41 = vld [vmem:[%s9917_s9 + $0x548] sm:$0xf]  ;;  %v6125_v44 = vor.u32 %v6834_v36, %v6122_v32  ;;  %v6831_v47 = vld [vmem:[%s9917_s9 + $0x604] sm:$0xf] }
 0xec8   :  { %3323 = vmatmul.bf16.vlgmr.msrb.gmra.mxu3 %v8489_v40  ;;  %v6129_v45 = vor.u32 %v6836_v35, %v6128_v34  ;;  %v6876_v1 = vld [vmem:[%s9917_s9 + $0x76c] sm:$0xf]  ;;  %v6254_v36 = vld [vmem:[%s9917_s9 + $0x72c] sm:$0xf0]  ;;  %v6412_v32 = vld [vmem:[%s9917_s9 + $0x7e0] sm:$0xf] }
 0xec9   :  { %3692 = vmatpush.bf16.msra.mxu3 %v6037_v54  ;;  %3669 = vmatpush.bf16.msrb.mxu2 %v5973_v42  ;;  %v6177_v54 = vor.u32 %v6848_v48, %v6176_v39  ;;  %v6004_v42 = vld [vmem:[%s9917_s9 + $0x5a8] sm:$0xf]  ;;  %v6110_v39 = vld [vmem:[%s9917_s9 + $0x60c] sm:$0xf0]  ;;  %v6892_v34 = vld [vmem:[%s9917_s9 + $0x7e8] sm:$0xf0] }
 0xeca   :  { %3711 = vmatpush.bf16.msrb.mxu0 %v5885_v60  ;;  %4060 = vmatpush.bf16.msrb.mxu1 %v6133_v28  ;;  %v6821_v60 = vld [vmem:[%s9917_s9 + $0x5b0] sm:$0xf0]  ;;  %v6164_v28 = vld [vmem:[%s9917_s9 + $0x668] sm:$0xf] }
 0xecb   :  { %v6005_v18 = vor.u32 %v6821_v60, %v6004_v42  ;;  %v6116_v48 = vld [vmem:[%s9917_s9 + $0x608] sm:$0xf]  ;;  %v6901_v42 = vld [vmem:[%s9917_s9 + $0x830] sm:$0xf0] }
 0xecd   :  { %3693 = vmatpush.bf16.msra.mxu3 %v6025_v22  ;;  %3670 = vmatpush.bf16.msrb.mxu2 %v5961_v38  ;;  %v6165_v22 = vor.u32 %v6845_v13, %v6164_v28  ;;  %v6840_v38 = vld [vmem:[%s9917_s9 + $0x64c] sm:$0xf]  ;;  %v6113_v28 = vor.u32 %v6831_v47, %v6110_v39  ;;  %v6117_v13 = vor.u32 %v6833_v33, %v6116_v48  ;;  %v6242_v39 = vld [vmem:[%s9917_s9 + $0x714] sm:$0xf0]  ;;  %v6400_v48 = vld [vmem:[%s9917_s9 + $0x7c8] sm:$0xf] }
 0xece   :  { %3712 = vmatpush.bf16.msrb.mxu0 %v5873_v59  ;;  %4061 = vmatpush.bf16.msrb.mxu1 %v6121_v55  ;;  %v5965_v59 = vor.u32 %v6810_v8, %v5962_v17  ;;  %v6807_v55 = vld [vmem:[%s9917_s9 + $0x544] sm:$0xf]  ;;  %v6149_v3 = vor.u32 %v6840_v38, %v6146_v50  ;;  %v6252_v8 = vld [vmem:[%s9917_s9 + $0x720] sm:$0xf]  ;;  %v6868_v17 = vld [vmem:[%s9917_s9 + $0x728] sm:$0xf0] }
 0xecf   :  { %v6278_v38 = vld [vmem:[%s9917_s9 + $0x75c] sm:$0xf0]  ;;  %v6898_v50 = vld [vmem:[%s9917_s9 + $0x818] sm:$0xf0]  ;;  %v6253_v0 = vor.u32 %v6868_v17, %v6252_v8  ;;  %v6889_v33 = vld [vmem:[%s9917_s9 + $0x7d0] sm:$0xf0] }
 0xed0   :  { %v6401_v17 = vor.u32 %v6889_v33, %v6400_v48  ;;  %v6902_v48 = vld [vmem:[%s9917_s9 + $0x838] sm:$0xf0] }
 0xed1   :  { %3694 = vmatpush.bf16.msra.mxu3 %v6013_v26  ;;  %3671 = vmatpush.bf16.msrb.mxu2 %v5949_v29  ;;  %v5980_v26 = vld [vmem:[%s9917_s9 + $0x578] sm:$0xf]  ;;  %v5953_v29 = vor.u32 %v6807_v55, %v5950_v4  ;;  %v2472_v61 = vpop.f32.mrf.mxu0  ;;  %v6438_v55 = vld [vmem:[%s9917_s9 + $0x81c] sm:$0xf0]  ;;  %v6240_v4 = vld [vmem:[%s9917_s9 + $0x708] sm:$0xf] }
 0xed2   :  { %3713 = vmatpush.bf16.msrb.mxu0 %v5861_v24  ;;  %4062 = vmatpush.bf16.msrb.mxu1 %v6109_v53  ;;  %v6134_v24 = vld [vmem:[%s9917_s9 + $0x63c] sm:$0xf0]  ;;  %v6289_v53 = vor.u32 %v6877_v25, %v6288_v9 }
 0xed3   :  { %v6137_v23 = vor.u32 %v6837_v20, %v6134_v24  ;;  %v6895_v20 = vld [vmem:[%s9917_s9 + $0x800] sm:$0xf0] }
 0xed4   :  { %3672 = vmatmul.bf16.vlgmr.msrb.gmra.mxu2 %v8489_v40 }
 0xed5   :  { %3720 = vmatpush.bf16.msra.mxu2 %v6041_v21  ;;  %3695 = vmatpush.bf16.msra.mxu3 %v6001_v10  ;;  %v5981_v21 = vor.u32 %v6815_v19, %v5980_v26  ;;  %v6812_v10 = vld [vmem:[%s9917_s9 + $0x568] sm:$0xf0]  ;;  %v6266_v26 = vld [vmem:[%s9917_s9 + $0x744] sm:$0xf0]  ;;  %v6424_v19 = vld [vmem:[%s9917_s9 + $0x7f8] sm:$0xf] }
 0xed6   :  { %4083 = vmatpush.bf16.msra.mxu0 %v6197_v27  ;;  %4111 = vmatpush.bf16.msra.mxu1 %v6201_v16  ;;  %v6276_v27 = vld [vmem:[%s9917_s9 + $0x750] sm:$0xf]  ;;  %v6874_v16 = vld [vmem:[%s9917_s9 + $0x758] sm:$0xf0] }
 0xed7   :  { %3714 = vmatmul.bf16.vlgmr.msrb.gmra.mxu0 %v8361_v58  ;;  %4063 = vmatmul.bf16.vlgmr.msrb.gmra.mxu1 %v8361_v58  ;;  %v9262_v12 = vpop.f32.mrf.mxu2  ;;  %v6277_v51 = vor.u32 %v6874_v16, %v6276_v27  ;;  %v6228_v16 = vld [vmem:[%s9917_s9 + $0x6f0] sm:$0xf] }
 0xed9   :  { %3721 = vmatpush.bf16.msra.mxu2 %v6029_v37  ;;  %3696 = vmatpush.bf16.msra.mxu3 %v5989_v46  ;;  %v5969_v37 = vor.u32 %v6812_v10, %v5968_v63  ;;  %v6809_v46 = vld [vmem:[%s9917_s9 + $0x550] sm:$0xf0]  ;;  %v6425_v63 = vor.u32 %v6895_v20, %v6424_v19  ;;  %v6867_v10 = vld [vmem:[%s9917_s9 + $0x724] sm:$0xf]  ;;  %v6218_v20 = vld [vmem:[%s9917_s9 + $0x6e4] sm:$0xf0] }
 0xeda   :  { %4084 = vmatpush.bf16.msra.mxu0 %v6185_v15  ;;  %4112 = vmatpush.bf16.msra.mxu1 %v6189_v52  ;;  %v6264_v15 = vld [vmem:[%s9917_s9 + $0x738] sm:$0xf]  ;;  %v6871_v52 = vld [vmem:[%s9917_s9 + $0x740] sm:$0xf0]  ;;  %v5957_v56 = vor.u32 %v6809_v46, %v5956_v41  ;;  %v6864_v46 = vld [vmem:[%s9917_s9 + $0x70c] sm:$0xf] }
 0xedb   :  { %v6859_v41 = vld [vmem:[%s9917_s9 + $0x6e0] sm:$0xf0]  ;;  %v6245_v8 = vor.u32 %v6864_v46, %v6242_v39  ;;  %v6925_v46 = vld [vmem:[%s9917_s9 + $0x8f0] sm:$0xf0]  ;;  %v6456_v39 = vld [vmem:[%s9917_s9 + $0x830] sm:$0xf] }
 0xedd   :  { %3722 = vmatpush.bf16.msra.mxu2 %v6017_v43  ;;  %3697 = vmatpush.bf16.msra.mxu3 %v5977_v30  ;;  %v6265_v43 = vor.u32 %v6871_v52, %v6264_v15  ;;  %v6900_v30 = vld [vmem:[%s9917_s9 + $0x82c] sm:$0xf]  ;;  %v2474_v15 = vpop.f32.mrf.mxu0  ;;  %v6216_v52 = vld [vmem:[%s9917_s9 + $0x6d8] sm:$0xf] }
 0xede   :  { %4085 = vmatpush.bf16.msra.mxu0 %v6173_v49  ;;  %4113 = vmatpush.bf16.msra.mxu1 %v6177_v54  ;;  %v6290_v49 = vld [vmem:[%s9917_s9 + $0x774] sm:$0xf0]  ;;  %v6448_v54 = vld [vmem:[%s9917_s9 + $0x828] sm:$0xf]  ;;  %v6453_v7 = vor.u32 %v6900_v30, %v6450_v62  ;;  %v6204_v62 = vld [vmem:[%s9917_s9 + $0x6c0] sm:$0xf] }
 0xedf   :  { %v9334_v60 = vpop.f32.mrf.mxu2 }
 0xee1   :  { %3723 = vmatpush.bf16.msra.mxu2 %v6005_v18  ;;  %3698 = vmatpush.bf16.msra.mxu3 %v5965_v59  ;;  %v6293_v18 = vor.u32 %v6876_v1, %v6290_v49  ;;  %v6436_v59 = vld [vmem:[%s9917_s9 + $0x810] sm:$0xf]  ;;  %v6888_v49 = vld [vmem:[%s9917_s9 + $0x7cc] sm:$0xf] }
 0xee2   :  { %4086 = vmatpush.bf16.msra.mxu0 %v6161_v57  ;;  %4114 = vmatpush.bf16.msra.mxu1 %v6165_v22  ;;  %v6449_v57 = vor.u32 %v6901_v42, %v6448_v54  ;;  %v6873_v22 = vld [vmem:[%s9917_s9 + $0x754] sm:$0xf]  ;;  %v6437_v25 = vor.u32 %v6898_v50, %v6436_v59  ;;  %v6402_v54 = vld [vmem:[%s9917_s9 + $0x7d4] sm:$0xf0]  ;;  %v2500_v42 = vpop.f32.mrf.mxu1  ;;  %v6886_v59 = vld [vmem:[%s9917_s9 + $0x7b8] sm:$0xf0] }
 0xee3   :  { %v6281_v9 = vor.u32 %v6873_v22, %v6278_v38  ;;  %v6388_v38 = vld [vmem:[%s9917_s9 + $0x7b0] sm:$0xf] }
 0xee5   :  { %3724 = vmatpush.bf16.msra.mxu2 %v5993_v6  ;;  %3699 = vmatpush.bf16.msra.mxu3 %v5953_v29  ;;  %v6865_v6 = vld [vmem:[%s9917_s9 + $0x710] sm:$0xf0] }
 0xee6   :  { %4087 = vmatpush.bf16.msra.mxu0 %v6149_v3  ;;  %4115 = vmatpush.bf16.msra.mxu1 %v6153_v11  ;;  %v6870_v3 = vld [vmem:[%s9917_s9 + $0x73c] sm:$0xf]  ;;  %v6441_v11 = vor.u32 %v6897_v5, %v6438_v55  ;;  %v6241_v14 = vor.u32 %v6865_v6, %v6240_v4  ;;  %v6885_v5 = vld [vmem:[%s9917_s9 + $0x7b4] sm:$0xf]  ;;  %v6390_v55 = vld [vmem:[%s9917_s9 + $0x7bc] sm:$0xf0] }
 0xee7   :  { %v6393_v19 = vor.u32 %v6885_v5, %v6390_v55 }
 0xee8   :  { %3700 = vmatmul.bf16.vlgmr.msra.gmra.mxu3 %v8489_v40 }
 0xee9   :  { %4069 = vmatpush.bf16.msrb.mxu3 %v6289_v53  ;;  %3725 = vmatpush.bf16.msra.mxu2 %v5981_v21  ;;  %v6426_v53 = vld [vmem:[%s9917_s9 + $0x804] sm:$0xf0] }
 0xeea   :  { %4088 = vmatpush.bf16.msra.mxu0 %v6137_v23  ;;  %4116 = vmatpush.bf16.msra.mxu1 %v6141_v31  ;;  %v6862_v23 = vld [vmem:[%s9917_s9 + $0x6f8] sm:$0xf0]  ;;  %v6269_v31 = vor.u32 %v6870_v3, %v6266_v26  ;;  %v6875_v3 = vld [vmem:[%s9917_s9 + $0x760] sm:$0xf0]  ;;  %v2849_v26 = vpop.f32.mrf.mxu0 }
 0xeeb   :  { %v2458_v29 = vpop.f32.mrf.mxu3  ;;  %v2486_v24 = vpop.f32.mrf.mxu2  ;;  %v6229_v35 = vor.u32 %v6862_v23, %v6228_v16 }
 0xeec   :  { %v9394_v21 = vadd.f32 %v2458_v29, %v9262_v12  ;;  %v9396_v27 = vadd.f32 %v2486_v24, %v2472_v61  ;;  %v6429_v12 = vor.u32 %v6894_v2, %v6426_v53  ;;  %v6405_v61 = vor.u32 %v6888_v49, %v6402_v54  ;;  %v6376_v29 = vld [vmem:[%s9917_s9 + $0x798] sm:$0xf]  ;;  %v6883_v24 = vld [vmem:[%s9917_s9 + $0x7a0] sm:$0xf0]  ;;  %v6882_v2 = vld [vmem:[%s9917_s9 + $0x79c] sm:$0xf] }
 0xeed   :  { %4070 = vmatpush.bf16.msrb.mxu3 %v6277_v51  ;;  %3726 = vmatpush.bf16.msra.mxu2 %v5969_v37  ;;  %v6891_v51 = vld [vmem:[%s9917_s9 + $0x7e4] sm:$0xf]  ;;  %v6414_v37 = vld [vmem:[%s9917_s9 + $0x7ec] sm:$0xf0]  ;;  %v6378_v53 = vld [vmem:[%s9917_s9 + $0x7a4] sm:$0xf0] }
 0xeee   :  { %4089 = vmatpush.bf16.msra.mxu0 %v6125_v44  ;;  %4117 = vmatpush.bf16.msra.mxu1 %v6129_v45  ;;  %v6257_v44 = vor.u32 %v6867_v10, %v6254_v36  ;;  %v6413_v45 = vor.u32 %v6892_v34, %v6412_v32  ;;  %v6417_v47 = vor.u32 %v6891_v51, %v6414_v37  ;;  %v6872_v32 = vld [vmem:[%s9917_s9 + $0x748] sm:$0xf0]  ;;  %v6855_v34 = vld [vmem:[%s9917_s9 + $0x6c4] sm:$0xf]  ;;  %v2502_v51 = vpop.f32.mrf.mxu1  ;;  %v6869_v49 = vld [vmem:[%s9917_s9 + $0x730] sm:$0xf0] }
 0xeef   :  { %v6377_v36 = vor.u32 %v6883_v24, %v6376_v29  ;;  %v6381_v37 = vor.u32 %v6882_v2, %v6378_v53  ;;  %v6863_v29 = vld [vmem:[%s9917_s9 + $0x700] sm:$0xf0]  ;;  %v6508_v53 = vld [vmem:[%s9917_s9 + $0x8a0] sm:$0xf] }
 0xef1   :  { %4071 = vmatpush.bf16.msrb.mxu3 %v6265_v43  ;;  %3727 = vmatpush.bf16.msra.mxu2 %v5957_v56  ;;  %v6217_v43 = vor.u32 %v6859_v41, %v6216_v52  ;;  %v6880_v52 = vld [vmem:[%s9917_s9 + $0x788] sm:$0xf0]  ;;  %v6879_v41 = vld [vmem:[%s9917_s9 + $0x784] sm:$0xf] }
 0xef2   :  { %4090 = vmatpush.bf16.msra.mxu0 %v6113_v28  ;;  %4118 = vmatpush.bf16.msra.mxu1 %v6117_v13  ;;  %v6856_v28 = vld [vmem:[%s9917_s9 + $0x6c8] sm:$0xf0] }
 0xef3   :  { %v2460_v1 = vpop.f32.mrf.mxu3  ;;  %v2488_v30 = vpop.f32.mrf.mxu2 }
 0xef4   :  { %3728 = vmatmul.bf16.vlgmr.msra.gmra.mxu2 %v8489_v40  ;;  %v9447_v56 = vadd.f32 %v2460_v1, %v9334_v60  ;;  %v9455_v13 = vadd.f32 %v2488_v30, %v2474_v15  ;;  %v6296_v60 = vld [vmem:[%s9917_s9 + $0x770] sm:$0xf]  ;;  %v6364_v15 = vld [vmem:[%s9917_s9 + $0x780] sm:$0xf] }
 0xef5   :  { %4097 = vmatpush.bf16.msrb.mxu2 %v6293_v18  ;;  %4072 = vmatpush.bf16.msrb.mxu3 %v6253_v0  ;;  %v6878_v18 = vld [vmem:[%s9917_s9 + $0x778] sm:$0xf0]  ;;  %v6205_v0 = vor.u32 %v6856_v28, %v6204_v62  ;;  %v6365_v1 = vor.u32 %v6880_v52, %v6364_v15  ;;  %v6457_v62 = vor.u32 %v6902_v48, %v6456_v39  ;;  %v6532_v28 = vld [vmem:[%s9917_s9 + $0x8d0] sm:$0xf]  ;;  %v6913_v15 = vld [vmem:[%s9917_s9 + $0x890] sm:$0xf0] }
 0xef6   :  { %4460 = vmatpush.bf16.msrb.mxu0 %v6449_v57  ;;  %4488 = vmatpush.bf16.msrb.mxu1 %v6453_v7  ;;  %v6861_v57 = vld [vmem:[%s9917_s9 + $0x6f4] sm:$0xf]  ;;  %v4544_v22 = vpack.c.bf16 %v9447_v56, %v9394_v21  ;;  %v6230_v7 = vld [vmem:[%s9917_s9 + $0x6fc] sm:$0xf0]  ;;  %v4545_v50 = vpack.c.bf16 %v9455_v13, %v9396_v27  ;;  %v6297_v4 = vor.u32 %v6878_v18, %v6296_v60  ;;  %v6924_v48 = vld [vmem:[%s9917_s9 + $0x8ec] sm:$0xf] }
 0xef7   :  { %4091 = vmatmul.bf16.vlgmr.msra.gmra.mxu0 %v8361_v58  ;;  %4119 = vmatmul.bf16.vlgmr.msra.gmra.mxu1 %v8361_v58  ;;  %v6233_v6 = vor.u32 %v6861_v57, %v6230_v7  ;;  %v6899_v7 = vld [vmem:[%s9917_s9 + $0x820] sm:$0xf0] }
 0xef9   :  { %4098 = vmatpush.bf16.msrb.mxu2 %v6281_v9  ;;  %4073 = vmatpush.bf16.msrb.mxu3 %v6241_v14  ;;  %v6389_v9 = vor.u32 %v6886_v59, %v6388_v38  ;;  %v6248_v59 = vld [vmem:[%s9917_s9 + $0x710] sm:$0xf] }
 0xefa   :  { %4461 = vmatpush.bf16.msrb.mxu0 %v6437_v25  ;;  %4489 = vmatpush.bf16.msrb.mxu1 %v6441_v11  ;;  %v6284_v25 = vld [vmem:[%s9917_s9 + $0x758] sm:$0xf]  ;;  %v6858_v11 = vld [vmem:[%s9917_s9 + $0x6dc] sm:$0xf] }
 0xefb   :  { %v2514_v14 = vpop.f32.mrf.mxu3  ;;  %v2863_v23 = vpop.f32.mrf.mxu2 }
 0xefc   :  { %v9509_v16 = vadd.f32 %v2514_v14, %v2500_v42  ;;  %v9514_v10 = vadd.f32 %v2863_v23, %v2849_v26  ;;  %v6432_v26 = vld [vmem:[%s9917_s9 + $0x800] sm:$0xf]  ;;  %v6916_v23 = vld [vmem:[%s9917_s9 + $0x8a8] sm:$0xf0] }
 0xefd   :  { %4099 = vmatpush.bf16.msrb.mxu2 %v6269_v31  ;;  %4074 = vmatpush.bf16.msrb.mxu3 %v6229_v35  ;;  %v6285_v31 = vor.u32 %v6875_v3, %v6284_v25  ;;  %v6206_v35 = vld [vmem:[%s9917_s9 + $0x6cc] sm:$0xf0]  ;;  %v6919_v25 = vld [vmem:[%s9917_s9 + $0x8c0] sm:$0xf0]  ;;  %v2877_v3 = vpop.f32.mrf.mxu1 }
 0xefe   :  { %4462 = vmatpush.bf16.msrb.mxu0 %v6425_v63  ;;  %4490 = vmatpush.bf16.msrb.mxu1 %v6429_v12  ;;  %v6272_v63 = vld [vmem:[%s9917_s9 + $0x740] sm:$0xf]  ;;  %v6221_v12 = vor.u32 %v6858_v11, %v6218_v20  ;;  %v6209_v33 = vor.u32 %v6855_v34, %v6206_v35  ;;  %v6236_v20 = vld [vmem:[%s9917_s9 + $0x6f8] sm:$0xf]  ;;  %v6860_v34 = vld [vmem:[%s9917_s9 + $0x6e8] sm:$0xf0]  ;;  %v6509_v35 = vor.u32 %v6916_v23, %v6508_v53 }
 0xeff   :  { %v6881_v53 = vld [vmem:[%s9917_s9 + $0x790] sm:$0xf0]  ;;  %v6552_v23 = vld [vmem:[%s9917_s9 + $0x8f0] sm:$0xf] }
 0xf01   :  { %4100 = vmatpush.bf16.msrb.mxu2 %v6257_v44  ;;  %4075 = vmatpush.bf16.msrb.mxu3 %v6217_v43  ;;  %v6366_v44 = vld [vmem:[%s9917_s9 + $0x78c] sm:$0xf0]  ;;  %v6260_v43 = vld [vmem:[%s9917_s9 + $0x728] sm:$0xf] }
 0xf02   :  { %4463 = vmatpush.bf16.msrb.mxu0 %v6413_v45  ;;  %4491 = vmatpush.bf16.msrb.mxu1 %v6417_v47  ;;  %v6544_v45 = vld [vmem:[%s9917_s9 + $0x8e8] sm:$0xf]  ;;  %v6273_v47 = vor.u32 %v6872_v32, %v6272_v63  ;;  %v6369_v54 = vor.u32 %v6879_v41, %v6366_v44  ;;  %v6261_v57 = vor.u32 %v6869_v49, %v6260_v43  ;;  %v6224_v32 = vld [vmem:[%s9917_s9 + $0x6e0] sm:$0xf]  ;;  %v6408_v41 = vld [vmem:[%s9917_s9 + $0x7d0] sm:$0xf] }
 0xf03   :  { %v6545_v42 = vor.u32 %v6925_v46, %v6544_v45  ;;  %v2516_v30 = vpop.f32.mrf.mxu3  ;;  %v2865_v18 = vpop.f32.mrf.mxu2  ;;  %v6237_v63 = vor.u32 %v6863_v29, %v6236_v20  ;;  %v6225_v52 = vor.u32 %v6860_v34, %v6224_v32  ;;  %v6890_v44 = vld [vmem:[%s9917_s9 + $0x7d8] sm:$0xf0]  ;;  %v6212_v45 = vld [vmem:[%s9917_s9 + $0x6c8] sm:$0xf]  ;;  %v6857_v46 = vld [vmem:[%s9917_s9 + $0x6d0] sm:$0xf0] }
 0xf04   :  { %v9562_v60 = vadd.f32 %v2516_v30, %v2502_v51  ;;  %v6409_v49 = vor.u32 %v6890_v44, %v6408_v41  ;;  %v6522_v20 = vld [vmem:[%s9917_s9 + $0x8c4] sm:$0xf0]  ;;  %v6540_v44 = vld [vmem:[%s9917_s9 + $0x8d8] sm:$0xf] }
 0xf05   :  { %4101 = vmatpush.bf16.msrb.mxu2 %v6245_v8  ;;  %4076 = vmatpush.bf16.msrb.mxu3 %v6205_v0  ;;  %v6922_v8 = vld [vmem:[%s9917_s9 + $0x8d8] sm:$0xf0] }
 0xf06   :  { %4464 = vmatpush.bf16.msrb.mxu0 %v6401_v17  ;;  %4492 = vmatpush.bf16.msrb.mxu1 %v6405_v61  ;;  %v2851_v17 = vpop.f32.mrf.mxu0  ;;  %v6444_v61 = vld [vmem:[%s9917_s9 + $0x818] sm:$0xf]  ;;  %v6866_v0 = vld [vmem:[%s9917_s9 + $0x718] sm:$0xf0]  ;;  %v4546_v5 = vpack.c.bf16 %v9562_v60, %v9509_v16  ;;  %v6533_v55 = vor.u32 %v6922_v8, %v6532_v28  ;;  %v6887_v8 = vld [vmem:[%s9917_s9 + $0x7c0] sm:$0xf0] }
 0xf07   :  { %v9570_v38 = vadd.f32 %v2865_v18, %v2851_v17  ;;  %v6249_v11 = vor.u32 %v6866_v0, %v6248_v59  ;;  %v6396_v28 = vld [vmem:[%s9917_s9 + $0x7b8] sm:$0xf]  ;;  %v6921_v59 = vld [vmem:[%s9917_s9 + $0x8d4] sm:$0xf]  ;;  %v6534_v0 = vld [vmem:[%s9917_s9 + $0x8dc] sm:$0xf0] }
 0xf08   :  { %4077 = vmatmul.bf16.vlgmr.msrb.gmra.mxu3 %v8489_v40 }
 0xf09   :  { %4125 = vmatpush.bf16.msra.mxu3 %v6297_v4  ;;  %4102 = vmatpush.bf16.msrb.mxu2 %v6233_v6  ;;  %v4547_v4 = vpack.c.bf16 %v9570_v38, %v9514_v10  ;;  %v6445_v6 = vor.u32 %v6899_v7, %v6444_v61 }
 0xf0a   :  { %4465 = vmatpush.bf16.msrb.mxu0 %v6389_v9  ;;  %4493 = vmatpush.bf16.msrb.mxu1 %v6393_v19  ;;  %v6520_v9 = vld [vmem:[%s9917_s9 + $0x8b8] sm:$0xf]  ;;  %v6896_v19 = vld [vmem:[%s9917_s9 + $0x808] sm:$0xf0] }
 0xf0b   :  { %v6521_v24 = vor.u32 %v6919_v25, %v6520_v9  ;;  %v2891_v14 = vpop.f32.mrf.mxu3  ;;  %v6433_v2 = vor.u32 %v6896_v19, %v6432_v26  ;;  %v6907_v9 = vld [vmem:[%s9917_s9 + $0x860] sm:$0xf0]  ;;  %v6384_v25 = vld [vmem:[%s9917_s9 + $0x7a0] sm:$0xf]  ;;  %v6918_v19 = vld [vmem:[%s9917_s9 + $0x8bc] sm:$0xf] }
 0xf0c   :  { %v6525_v32 = vor.u32 %v6918_v19, %v6522_v20  ;;  %v6492_v19 = vld [vmem:[%s9917_s9 + $0x878] sm:$0xf]  ;;  %v6911_v20 = vld [vmem:[%s9917_s9 + $0x880] sm:$0xf0] }
 0xf0d   :  { %4126 = vmatpush.bf16.msra.mxu3 %v6285_v31  ;;  %4103 = vmatpush.bf16.msrb.mxu2 %v6221_v12  ;;  %v9609_v31 = vadd.f32 %v2891_v14, %v2877_v3  ;;  %v6420_v12 = vld [vmem:[%s9917_s9 + $0x7e8] sm:$0xf]  ;;  %v6884_v3 = vld [vmem:[%s9917_s9 + $0x7a8] sm:$0xf0] }
 0xf0e   :  { %4466 = vmatpush.bf16.msrb.mxu0 %v6377_v36  ;;  %4494 = vmatpush.bf16.msrb.mxu1 %v6381_v37  ;;  %v6893_v36 = vld [vmem:[%s9917_s9 + $0x7f0] sm:$0xf0]  ;;  %v6496_v37 = vld [vmem:[%s9917_s9 + $0x888] sm:$0xf]  ;;  %v6385_v29 = vor.u32 %v6884_v3, %v6384_v25  ;;  %v6904_v14 = vld [vmem:[%s9917_s9 + $0x848] sm:$0xf0] }
 0xf0f   :  { %v6421_v51 = vor.u32 %v6893_v36, %v6420_v12  ;;  %v6497_v39 = vor.u32 %v6913_v15, %v6496_v37  ;;  %v6510_v37 = vld [vmem:[%s9917_s9 + $0x8ac] sm:$0xf0]  ;;  %v6903_v25 = vld [vmem:[%s9917_s9 + $0x844] sm:$0xf] }
 0xf10   :  { %v6462_v3 = vld [vmem:[%s9917_s9 + $0x84c] sm:$0xf0] }
 0xf11   :  { %4127 = vmatpush.bf16.msra.mxu3 %v6273_v47  ;;  %4104 = vmatpush.bf16.msrb.mxu2 %v6209_v33  ;;  %v2879_v47 = vpop.f32.mrf.mxu1  ;;  %v6546_v33 = vld [vmem:[%s9917_s9 + $0x8f4] sm:$0xf0] }
 0xf12   :  { %4467 = vmatpush.bf16.msrb.mxu0 %v6365_v1  ;;  %4495 = vmatpush.bf16.msrb.mxu1 %v6369_v54  ;;  %v2905_v1 = vpop.f32.mrf.mxu0  ;;  %v6484_v54 = vld [vmem:[%s9917_s9 + $0x870] sm:$0xf]  ;;  %v6549_v18 = vor.u32 %v6924_v48, %v6546_v33  ;;  %v6528_v33 = vld [vmem:[%s9917_s9 + $0x8c0] sm:$0xf] }
 0xf13   :  { %v2893_v43 = vpop.f32.mrf.mxu3 }
 0xf14   :  { %4105 = vmatmul.bf16.vlgmr.msrb.gmra.mxu2 %v8489_v40  ;;  %v9653_v30 = vadd.f32 %v2893_v43, %v2879_v47  ;;  %v6912_v47 = vld [vmem:[%s9917_s9 + $0x88c] sm:$0xf] }
 0xf15   :  { %4474 = vmatpush.bf16.msra.mxu2 %v6545_v42  ;;  %4128 = vmatpush.bf16.msra.mxu3 %v6261_v57  ;;  %v6910_v42 = vld [vmem:[%s9917_s9 + $0x878] sm:$0xf0] }
 0xf16   :  { %4516 = vmatpush.bf16.msra.mxu0 %v6457_v62  ;;  %4496 = vmatmul.bf16.vlgmr.msrb.gmra.mxu1 %v8361_v58  ;;  %v6213_v62 = vor.u32 %v6857_v46, %v6212_v45  ;;  %v4548_v57 = vpack.c.bf16 %v9653_v30, %v9609_v31  ;;  %v6485_v7 = vor.u32 %v6910_v42, %v6484_v54  ;;  %v6923_v45 = vld [vmem:[%s9917_s9 + $0x8e0] sm:$0xf0]  ;;  %v6486_v54 = vld [vmem:[%s9917_s9 + $0x87c] sm:$0xf0]  ;;  %v4566_v31 = vld [vmem:[%s9918_s10 + $0x10] sm:$0xf] }
 0xf17   :  { %4468 = vmatmul.bf16.vlgmr.msrb.gmra.mxu0 %v8361_v58  ;;  %v2919_v17 = vpop.f32.mrf.mxu2  ;;  %v6541_v48 = vor.u32 %v6923_v45, %v6540_v44  ;;  %v4576_v27 = vunpack.c.l.b16 %v4566_v31 }
 0xf18   :  { %v9663_v61 = vadd.f32 %v2919_v17, %v2905_v1  ;;  %v6920_v1 = vld [vmem:[%s9917_s9 + $0x8c8] sm:$0xf0] }
 0xf19   :  { %4475 = vmatpush.bf16.msra.mxu2 %v6533_v55  ;;  %4129 = vmatpush.bf16.msra.mxu3 %v6249_v11  ;;  %v6397_v55 = vor.u32 %v6887_v8, %v6396_v28  ;;  %v6537_v11 = vor.u32 %v6921_v59, %v6534_v0  ;;  %v3254_v42 = vpop.f32.mrf.mxu1  ;;  %v6516_v28 = vld [vmem:[%s9917_s9 + $0x8a8] sm:$0xf]  ;;  %v6917_v8 = vld [vmem:[%s9917_s9 + $0x8b0] sm:$0xf0]  ;;  %v4579_v13 = vpack.c.b16 %v4576_v27, %v4576_v27 }
 0xf1a   :  { %4517 = vmatpush.bf16.msra.mxu0 %v6445_v6  ;;  %v6472_v6 = vld [vmem:[%s9917_s9 + $0x858] sm:$0xf]  ;;  %v2907_v12 = vpop.f32.mrf.mxu0  ;;  %v6474_v59 = vld [vmem:[%s9917_s9 + $0x864] sm:$0xf0]  ;;  %v6517_v0 = vor.u32 %v6917_v8, %v6516_v28 }
 0xf1b   :  { %v6473_v26 = vor.u32 %v6907_v9, %v6472_v6  ;;  %v6914_v6 = vld [vmem:[%s9917_s9 + $0x898] sm:$0xf0] }
 0xf1d   :  { %4476 = vmatpush.bf16.msra.mxu2 %v6521_v24  ;;  %4130 = vmatpush.bf16.msra.mxu3 %v6237_v63  ;;  %v6460_v24 = vld [vmem:[%s9917_s9 + $0x840] sm:$0xf]  ;;  %v6926_v63 = vld [vmem:[%s9917_s9 + $0x8f8] sm:$0xf0] }
 0xf1e   :  { %4518 = vmatpush.bf16.msra.mxu0 %v6433_v2  ;;  %v6372_v2 = vld [vmem:[%s9917_s9 + $0x788] sm:$0xf] }
 0xf1f   :  { %v2921_v36 = vpop.f32.mrf.mxu2  ;;  %v6373_v15 = vor.u32 %v6881_v53, %v6372_v2 }
 0xf20   :  { %v9708_v34 = vadd.f32 %v2921_v36, %v2907_v12  ;;  %v6480_v36 = vld [vmem:[%s9917_s9 + $0x860] sm:$0xf] }
 0xf21   :  { %4477 = vmatpush.bf16.msra.mxu2 %v6509_v35  ;;  %4131 = vmatpush.bf16.msra.mxu3 %v6225_v52  ;;  %v6461_v35 = vor.u32 %v6904_v14, %v6460_v24  ;;  %v6553_v52 = vor.u32 %v6926_v63, %v6552_v23  ;;  %v6465_v14 = vor.u32 %v6903_v25, %v6462_v3 }
 0xf22   :  { %4519 = vmatpush.bf16.msra.mxu0 %v6421_v51  ;;  %v6915_v51 = vld [vmem:[%s9917_s9 + $0x8a4] sm:$0xf]  ;;  %v4549_v41 = vpack.c.bf16 %v9708_v34, %v9663_v61  ;;  %v6493_v63 = vor.u32 %v6911_v20, %v6492_v19 }
 0xf23   :  { %v6513_v46 = vor.u32 %v6915_v51, %v6510_v37  ;;  %v6468_v51 = vld [vmem:[%s9917_s9 + $0x848] sm:$0xf]  ;;  %v6905_v37 = vld [vmem:[%s9917_s9 + $0x850] sm:$0xf0] }
 0xf24   :  { %v6469_v45 = vor.u32 %v6905_v37, %v6468_v51 }
 0xf25   :  { %4478 = vmatpush.bf16.msra.mxu2 %v6497_v39  ;;  %4132 = vmatpush.bf16.msra.mxu3 %v6213_v62  ;;  %v6498_v39 = vld [vmem:[%s9917_s9 + $0x894] sm:$0xf0]  ;;  %v6529_v62 = vor.u32 %v6920_v1, %v6528_v33 }
 0xf26   :  { %4520 = vmatpush.bf16.msra.mxu0 %v6409_v49  ;;  %v6501_v43 = vor.u32 %v6912_v47, %v6498_v39  ;;  %v6909_v49 = vld [vmem:[%s9917_s9 + $0x874] sm:$0xf] }
 0xf27   :  { %v6489_v17 = vor.u32 %v6909_v49, %v6486_v54 }
 0xf28   :  { %4133 = vmatmul.bf16.vlgmr.msra.gmra.mxu3 %v8489_v40 }
 0xf29   :  { %4502 = vmatpush.bf16.msrb.mxu3 %v6549_v18  ;;  %4479 = vmatpush.bf16.msra.mxu2 %v6485_v7  ;;  %v6906_v7 = vld [vmem:[%s9917_s9 + $0x85c] sm:$0xf] }
 0xf2a   :  { %4521 = vmatpush.bf16.msra.mxu0 %v6397_v55  ;;  %v6504_v55 = vld [vmem:[%s9917_s9 + $0x890] sm:$0xf]  ;;  %v6477_v9 = vor.u32 %v6906_v7, %v6474_v59 }
 0xf2d   :  { %4503 = vmatpush.bf16.msrb.mxu3 %v6537_v11  ;;  %4480 = vmatpush.bf16.msra.mxu2 %v6473_v26  ;;  %v6505_v11 = vor.u32 %v6914_v6, %v6504_v55  ;;  %v3282_v26 = vpop.f32.mrf.mxu0 }
 0xf2e   :  { %4522 = vmatpush.bf16.msra.mxu0 %v6385_v29  ;;  %v3256_v29 = vpop.f32.mrf.mxu1 }
 0xf31   :  { %4504 = vmatpush.bf16.msrb.mxu3 %v6525_v32  ;;  %4481 = vmatpush.bf16.msra.mxu2 %v6461_v35  ;;  %v6908_v32 = vld [vmem:[%s9917_s9 + $0x868] sm:$0xf0] }
 0xf32   :  { %4523 = vmatpush.bf16.msra.mxu0 %v6373_v15  ;;  %v6481_v35 = vor.u32 %v6908_v32, %v6480_v36 }
 0xf34   :  { %4482 = vmatmul.bf16.vlgmr.msra.gmra.mxu2 %v8489_v40 }
 0xf35   :  { %4530 = vmatpush.bf16.msrb.mxu2 %v6553_v52  ;;  %4505 = vmatpush.bf16.msrb.mxu3 %v6513_v46  ;;  %v3284_v15 = vpop.f32.mrf.mxu0 }
 0xf36   :  { %4524 = vmatmul.bf16.vlgmr.msra.gmra.mxu0 %v8361_v58  ;;  %v3268_v58 = vpop.f32.mrf.mxu3  ;;  %v3310_v47 = vpop.f32.mrf.mxu1 }
 0xf37   :  { %v9750_v18 = vadd.f32 %v3268_v58, %v3254_v42  ;;  %v3296_v53 = vpop.f32.mrf.mxu2 }
 0xf38   :  { %v9778_v23 = vadd.f32 %v3296_v53, %v3282_v26 }
 0xf39   :  { %4531 = vmatpush.bf16.msrb.mxu2 %v6541_v48  ;;  %4506 = vmatpush.bf16.msrb.mxu3 %v6501_v43 }
 0xf3d   :  { %4532 = vmatpush.bf16.msrb.mxu2 %v6529_v62  ;;  %4507 = vmatpush.bf16.msrb.mxu3 %v6489_v17  ;;  %v3659_v49 = vpop.f32.mrf.mxu0 }
 0xf3e   :  { %v3270_v24 = vpop.f32.mrf.mxu3  ;;  %v3312_v33 = vpop.f32.mrf.mxu1 }
 0xf3f   :  { %v9776_v2 = vadd.f32 %v3270_v24, %v3256_v29  ;;  %v3298_v52 = vpop.f32.mrf.mxu2 }
 0xf40   :  { %v9795_v44 = vadd.f32 %v3298_v52, %v3284_v15 }
 0xf41   :  { %4533 = vmatpush.bf16.msrb.mxu2 %v6517_v0  ;;  %4508 = vmatpush.bf16.msrb.mxu3 %v6477_v9  ;;  %v4550_v12 = vpack.c.bf16 %v9776_v2, %v9750_v18 }
 0xf42   :  { %v4551_v46 = vpack.c.bf16 %v9795_v44, %v9778_v23 }
 0xf45   :  { %4534 = vmatpush.bf16.msrb.mxu2 %v6505_v11  ;;  %4509 = vmatpush.bf16.msrb.mxu3 %v6465_v14  ;;  %v3661_v28 = vpop.f32.mrf.mxu0 }
 0xf46   :  { %v3687_v8 = vpop.f32.mrf.mxu1 }
 0xf48   :  { %4510 = vmatmul.bf16.vlgmr.msrb.gmra.mxu3 %v8489_v40 }
 0xf49   :  { %4535 = vmatpush.bf16.msrb.mxu2 %v6493_v63 }
 0xf4b   :  { %v3324_v39 = vpop.f32.mrf.mxu3 }
 0xf4c   :  { %v9800_v48 = vadd.f32 %v3324_v39, %v3310_v47 }
 0xf4d   :  { %4536 = vmatpush.bf16.msrb.mxu2 %v6481_v35 }
 0xf4e   :  { %v3689_v3 = vpop.f32.mrf.mxu1 }
 0xf51   :  { %4537 = vmatpush.bf16.msrb.mxu2 %v6469_v45 }
 0xf53   :  { %v3326_v1 = vpop.f32.mrf.mxu3 }
 0xf54   :  { %4538 = vmatmul.bf16.vlgmr.msrb.gmra.mxu2 %v8489_v40  ;;  %v9802_v43 = vadd.f32 %v3326_v1, %v3312_v33  ;;  %v3715_v40 = vpop.f32.mrf.mxu0 }
 0xf56   :  { %v4552_v42 = vpack.c.bf16 %v9802_v43, %v9800_v48  ;;  %v4064_v26 = vpop.f32.mrf.mxu1 }
 0xf57   :  { %v3673_v54 = vpop.f32.mrf.mxu2 }
 0xf58   :  { %v3674_v62 = vadd.f32 %v3673_v54, %v3659_v49 }
 0xf5c   :  { %v3717_v55 = vpop.f32.mrf.mxu0 }
 0xf5e   :  { %v4066_v24 = vpop.f32.mrf.mxu1 }
 0xf5f   :  { %v3675_v17 = vpop.f32.mrf.mxu2 }
 0xf60   :  { %v3676_v54 = vadd.f32 %v3675_v17, %v3661_v28 }
 0xf6b   :  { %v3701_v58 = vpop.f32.mrf.mxu3 }
 0xf6c   :  { %v9806_v7 = vadd.f32 %v3701_v58, %v3687_v8 }
 0xf73   :  { %v3703_v11 = vpop.f32.mrf.mxu3 }
 0xf74   :  { %v4092_v19 = vpop.f32.mrf.mxu0  ;;  %v4120_v36 = vpop.f32.mrf.mxu1  ;;  %v3704_v18 = vadd.f32 %v3703_v11, %v3689_v3 }
 0xf77   :  { %v3729_v59 = vpop.f32.mrf.mxu2 }
 0xf78   :  { %v9808_v0 = vadd.f32 %v3729_v59, %v3715_v40  ;;  %v4553_v40 = vpack.c.bf16 %v3676_v54, %v3674_v62 }
 0xf7c   :  { %v4094_v14 = vpop.f32.mrf.mxu0  ;;  %v4122_v37 = vpop.f32.mrf.mxu1 }
 0xf7f   :  { %v3731_v6 = vpop.f32.mrf.mxu2 }
 0xf80   :  { %v9810_v9 = vadd.f32 %v3731_v6, %v3717_v55 }
 0xf82   :  { %v4555_v25 = vpack.c.bf16 %v9810_v9, %v9808_v0 }
 0xf8b   :  { %v4078_v29 = vpop.f32.mrf.mxu3 }
 0xf8c   :  { %v4079_v49 = vadd.f32 %v4078_v29, %v4064_v26 }
 0xf93   :  { %v4080_v63 = vpop.f32.mrf.mxu3  ;;  %v4497_v58 = vpop.f32.mrf.mxu1 }
 0xf94   :  { %v4469_v32 = vpop.f32.mrf.mxu0  ;;  %v4081_v39 = vadd.f32 %v4080_v63, %v4066_v24 }
 0xf96   :  { %v4556_v8 = vpack.c.bf16 %v4081_v39, %v4079_v49 }
 0xf97   :  { %v4106_v20 = vpop.f32.mrf.mxu2 }
 0xf98   :  { %v4107_v26 = vadd.f32 %v4106_v20, %v4092_v19 }
 0xf9b   :  { %v4499_v55 = vpop.f32.mrf.mxu1 }
 0xf9c   :  { %v4471_v15 = vpop.f32.mrf.mxu0 }
 0xf9f   :  { %v4108_v53 = vpop.f32.mrf.mxu2 }
 0xfa0   :  { %v4109_v28 = vadd.f32 %v4108_v53, %v4094_v14 }
 0xfa2   :  { %v4557_v2 = vpack.c.bf16 %v4109_v28, %v4107_v26 }
 0xfab   :  { %v4134_v51 = vpop.f32.mrf.mxu3 }
 0xfac   :  { %v4135_v21 = vadd.f32 %v4134_v51, %v4120_v36 }
 0xfb3   :  { %v4136_v33 = vpop.f32.mrf.mxu3  ;;  %v4525_v6 = vpop.f32.mrf.mxu0 }
 0xfb4   :  { %v4137_v20 = vadd.f32 %v4136_v33, %v4122_v37 }
 0xfb6   :  { %v4558_v56 = vpack.c.bf16 %v4137_v20, %v4135_v21 }
 0xfb7   :  { %v4483_v35 = vpop.f32.mrf.mxu2 }
 0xfb8   :  { %v4484_v45 = vadd.f32 %v4483_v35, %v4469_v32 }
 0xfbb   :  { %v4527_v10 = vpop.f32.mrf.mxu0 }
 0xfbf   :  { %v4485_v52 = vpop.f32.mrf.mxu2 }
 0xfc0   :  { %v4486_v47 = vadd.f32 %v4485_v52, %v4471_v15 }
 0xfc2   :  { %v4559_v1 = vpack.c.bf16 %v4486_v47, %v4484_v45 }
 0xfc4   :  { %4592 = vmatpush.bf16.msra.mxu1 %v4559_v1 }
 0xfc8   :  { %4593 = vmatpush.bf16.msra.mxu1 %v4556_v8 }
 0xfcb   :  { %v4511_v59 = vpop.f32.mrf.mxu3 }
 0xfcc   :  { %4594 = vmatpush.bf16.msra.mxu1 %v4553_v40  ;;  %v4512_v35 = vadd.f32 %v4511_v59, %v4497_v58 }
 0xfd0   :  { %4595 = vmatpush.bf16.msra.mxu1 %v4550_v12  ;;  %v6927_v12 = vld [vmem:[%s9918_s10] sm:$0xff] }
 0xfd3   :  { %v4513_v32 = vpop.f32.mrf.mxu3 }
 0xfd4   :  { %v4514_v24 = vadd.f32 %v4513_v32, %v4499_v55  ;;  %4596 = vmatpush.bf16.msra.mxu1 %v4547_v4  ;;  %v4554_v4 = vpack.c.bf16 %v3704_v18, %v9806_v7 }
 0xfd6   :  { %v4560_v17 = vpack.c.bf16 %v4514_v24, %v4512_v35 }
 0xfd7   :  { %v4539_v63 = vpop.f32.mrf.mxu2 }
 0xfd8   :  { %4615 = vmatpush.bf16.msra.mxu3 %v4560_v17  ;;  %4597 = vmatpush.bf16.msra.mxu1 %v4544_v22  ;;  %v4540_v62 = vadd.f32 %v4539_v63, %v4525_v6  ;;  %v6928_v22 = vld [vmem:[%s9918_s10 + $0x8] sm:$0xff] }
 0xfdb   :  { %6562 = vmatmul.msk.bf16.vlgmr.msra.gmra.mxu1 %vm4580_vm0, %v6927_v12 }
 0xfdc   :  { %4616 = vmatpush.bf16.msra.mxu3 %v4557_v2 }
 0xfdf   :  { %v4541_v38 = vpop.f32.mrf.mxu2 }
 0xfe0   :  { %v4542_v19 = vadd.f32 %v4541_v38, %v4527_v10  ;;  %4617 = vmatpush.bf16.msra.mxu3 %v4554_v4 }
 0xfe2   :  { %v4561_v29 = vpack.c.bf16 %v4542_v19, %v4540_v62 }
 0xfe4   :  { %4638 = vmatpush.bf16.msrb.mxu0 %v4561_v29  ;;  %4618 = vmatpush.bf16.msra.mxu3 %v4551_v46 }
 0xfe8   :  { %4639 = vmatpush.bf16.msrb.mxu0 %v4558_v56  ;;  %4619 = vmatpush.bf16.msra.mxu3 %v4548_v57 }
 0xfeb   :  { %6563 = vmatmul.msk.bf16.gmra.mxu1 %vm4580_vm0, %v6928_v22 }
 0xfec   :  { %4640 = vmatpush.bf16.msrb.mxu0 %v4555_v25  ;;  %4620 = vmatpush.bf16.msra.mxu3 %v4545_v50 }
 0xfef   :  { %6565 = vmatmul.msk.bf16.vlgmr.msra.gmra.mxu3 %vm4580_vm0, %v6927_v12 }
 0xff0   :  { %4641 = vmatpush.bf16.msrb.mxu0 %v4552_v42 }
 0xff4   :  { %4642 = vmatpush.bf16.msrb.mxu0 %v4549_v41 }
 0xff8   :  { %4643 = vmatpush.bf16.msrb.mxu0 %v4546_v5 }
 0xffb   :  { %6568 = vmatmul.msk.bf16.vlgmr.msrb.gmra.mxu0 %vm4580_vm0, %v6927_v12  ;;  %6564 = vmatmul.msk.bf16.gmra.mxu1 %vm4580_vm0, %v4579_v13 }
 0xfff   :  { %6566 = vmatmul.msk.bf16.gmra.mxu3 %vm4580_vm0, %v6928_v22 }
0x100b   :  { %6569 = vmatmul.msk.bf16.gmra.mxu0 %vm4580_vm0, %v6928_v22 }
0x100f   :  { %6567 = vmatmul.msk.bf16.gmra.mxu3 %vm4580_vm0, %v4579_v13 }
0x101b   :  { %6570 = vmatmul.msk.bf16.gmra.mxu0 %vm4580_vm0, %v4579_v13 }
0x1058   :  { %v4599_v50 = vpop.f32.mrf.mxu1 }
0x1059   :  { %4659 = vst [vmem:[%s9920_s12] sm:$0xff] %v4599_v50 }
0x1060   :  { %v4601_v16 = vpop.f32.mrf.mxu1 }
0x1061   :  { %4662 = vst [vmem:[%s9920_s12 + $0x18] sm:$0xff] %v4601_v16 }
0x1068   :  { %v4604_v60 = vpop.f32.mrf.mxu1 }
0x1069   :  { %4665 = vst [vmem:[%s9920_s12 + $0x30] sm:$0xff] %v4604_v60 }
0x1070   :  { %v4606_v5 = vpop.f32.mrf.mxu1 }
0x1071   :  { %4668 = vst [vmem:[%s9920_s12 + $0x48] sm:$0xff] %v4606_v5 }
0x1072   :  { %v4622_v30 = vpop.f32.mrf.mxu3 }
0x1073   :  { %4660 = vst [vmem:[%s9920_s12 + $0x8] sm:$0xff] %v4622_v30 }
0x1078   :  { %v4645_v57 = vpop.f32.mrf.mxu0  ;;  %v4609_v61 = vpop.f32.mrf.mxu1 }
0x1079   :  { %4661 = vst [vmem:[%s9920_s12 + $0x10] sm:$0xff] %v4645_v57 }
0x107a   :  { %v4624_v34 = vpop.f32.mrf.mxu3  ;;  %4671 = vst [vmem:[%s9920_s12 + $0x60] sm:$0xff] %v4609_v61 }
0x107b   :  { %4663 = vst [vmem:[%s9920_s12 + $0x20] sm:$0xff] %v4624_v34 }
0x1080   :  { %v4647_v41 = vpop.f32.mrf.mxu0  ;;  %v4611_v23 = vpop.f32.mrf.mxu1 }
0x1081   :  { %4664 = vst [vmem:[%s9920_s12 + $0x28] sm:$0xff] %v4647_v41 }
0x1082   :  { %v4627_v44 = vpop.f32.mrf.mxu3 }
0x1083   :  { %4666 = vst [vmem:[%s9920_s12 + $0x38] sm:$0xff] %v4627_v44 }
0x1088   :  { %v4650_v46 = vpop.f32.mrf.mxu0 }
0x1089   :  { %4667 = vst [vmem:[%s9920_s12 + $0x40] sm:$0xff] %v4650_v46 }
0x108a   :  { %v4629_v48 = vpop.f32.mrf.mxu3 }
0x108b   :  { %4669 = vst [vmem:[%s9920_s12 + $0x50] sm:$0xff] %v4629_v48 }
0x1090   :  { %v4652_v43 = vpop.f32.mrf.mxu0 }
0x1091   :  { %4670 = vst [vmem:[%s9920_s12 + $0x58] sm:$0xff] %v4652_v43 }
0x1092   :  { %v4632_v42 = vpop.f32.mrf.mxu3 }
0x1093   :  { %4672 = vst [vmem:[%s9920_s12 + $0x68] sm:$0xff] %v4632_v42 }
0x1098   :  { %v4655_v7 = vpop.f32.mrf.mxu0 }
0x1099   :  { %4673 = vst [vmem:[%s9920_s12 + $0x70] sm:$0xff] %v4655_v7 }
0x109a   :  { %v4634_v0 = vpop.f32.mrf.mxu3 }
0x10a0   :  { %v4657_v9 = vpop.f32.mrf.mxu0 }
0x10a1   :  { %4678 = vsyncpa [#allocation3], 1 }

</bundles_post_ra>
